<compile_context>
chip_gen: v6e
topology: v6e:2x2x1
jax: 0.10.0
libtpu: 0.0.40
codegen_flags: <defaults>
</compile_context>

<pallas_src>
import numpy as np
import jax
import jax.numpy as jnp
from jax.experimental import pallas as pl
from jax.experimental.pallas import tpu as pltpu


# ----------------------------------------------------------------------------
# Fused sub-flow kernel: one grid step == one full flow block
#   ActNorm -> coupling half 0 -> coupling half 1 (swapped) -> Shuffle
# ----------------------------------------------------------------------------
def _make_subflow_kernel(half, hidden, depth):
    h2 = 2 * hidden

    def leaky(v):                       # PyTorch default negative_slope = 0.01
        return jnp.where(v > 0, v, 0.01 * v)

    def kernel(*refs):
        if depth > 0:
            (x_ref, ans_ref, anl_ref, w0_ref, b0_ref, wm_ref, bm_ref,
             wl_ref, bl_ref, perm_ref, xo_ref, ld_ref, xbuf, ldbuf) = refs
        else:
            (x_ref, ans_ref, anl_ref, w0_ref, b0_ref,
             wl_ref, bl_ref, perm_ref, xo_ref, ld_ref, xbuf, ldbuf) = refs
            wm_ref = bm_ref = None

        blk = pl.program_id(1)
        nblk = pl.num_programs(1)

        @pl.when(blk == 0)
        def _():
            xbuf[...] = x_ref[...]
            ldbuf[...] = jnp.zeros_like(ldbuf)

        # ActNorm: x = scale * (x + loc); its constant logdet is added in the wrapper.
        x = ans_ref[0] * (xbuf[...] + anl_ref[0])
        ld = ldbuf[...]

        # Two coupling half-steps; the second one swaps halves (matches reference).
        for h_idx in range(2):
            if h_idx == 0:
                cond, target = x[:, :half], x[:, half:]
            else:
                cond, target = x[:, half:], x[:, :half]

            # Fused s/t MLP: one bf16 MXU matmul per layer, f32 accumulation.
            h = jnp.dot(cond.astype(jnp.bfloat16), w0_ref[0, h_idx],
                        preferred_element_type=jnp.float32) + b0_ref[0, h_idx]
            h = leaky(h)
            for l in range(depth):
                h = jnp.dot(h.astype(jnp.bfloat16), wm_ref[0, h_idx * depth + l],
                            preferred_element_type=jnp.float32) + bm_ref[0, h_idx * depth + l]
                h = leaky(h)
            h = jnp.dot(h.astype(jnp.bfloat16), wl_ref[0, h_idx],
                        preferred_element_type=jnp.float32) + bl_ref[0, h_idx]

            s = jnp.tanh(h[:, :half])           # f32
            t = h[:, half:]
            target = target * jnp.exp(s) + t
            ld = ld + jnp.sum(s, axis=1, keepdims=True)
            x = jnp.concatenate([cond, target], axis=1)

        # Shuffle: exact channel permutation as an f32 matmul with a 0/1 matrix.
        x = jnp.dot(x, perm_ref[0], preferred_element_type=jnp.float32)

        xbuf[...] = x
        ldbuf[...] = ld

        @pl.when(blk == nblk - 1)
        def _():
            xo_ref[...] = x
            ld_ref[...] = ld

    return kernel


def _pick_tile_b(batch):
    if batch % 8 != 0:
        return batch
    for t in (1024, 512, 256, 128, 64, 32, 16, 8):
        if batch % t == 0:
            return t
    return batch


def subflow_forward(p, x):
    """Run one ConditionalFlow (n_flow blocks) as a single fused pallas_call."""
    B, ch = x.shape
    half = ch // 2
    hidden, depth, n_flow = p["hidden"], p["depth"], p["n_flow"]
    h2 = 2 * hidden
    tile_b = _pick_tile_b(B)
    grid = (B // tile_b, n_flow)

    xmap = lambda b, f: (b, 0)
    pmap = lambda b, f: (f, 0, 0)
    wmap = lambda b, f: (f, 0, 0, 0)

    in_arrays = [x, p["an_scale"], p["an_loc"], p["w0"], p["b0"]]
    in_specs = [
        pl.BlockSpec((tile_b, ch), xmap),
        pl.BlockSpec((1, 1, ch), pmap),
        pl.BlockSpec((1, 1, ch), pmap),
        pl.BlockSpec((1, 2, half, h2), wmap),
        pl.BlockSpec((1, 2, 1, h2), wmap),
    ]
    if depth > 0:
        in_arrays += [p["wm"], p["bm"]]
        in_specs += [
            pl.BlockSpec((1, 2 * depth, h2, h2), wmap),
            pl.BlockSpec((1, 2 * depth, 1, h2), wmap),
        ]
    in_arrays += [p["wl"], p["bl"], p["perm"]]
    in_specs += [
        pl.BlockSpec((1, 2, h2, 2 * half), wmap),
        pl.BlockSpec((1, 2, 1, 2 * half), wmap),
        pl.BlockSpec((1, ch, ch), pmap),
    ]

    x_out, ld = pl.pallas_call(
        _make_subflow_kernel(half, hidden, depth),
        out_shape=(jax.ShapeDtypeStruct((B, ch), jnp.float32),
                   jax.ShapeDtypeStruct((B, 1), jnp.float32)),
        grid_spec=pltpu.PrefetchScalarGridSpec(
            num_scalar_prefetch=0,
            grid=grid,
            in_specs=in_specs,
            out_specs=[pl.BlockSpec((tile_b, ch), xmap),
                       pl.BlockSpec((tile_b, 1), xmap)],
            scratch_shapes=[pltpu.VMEM((tile_b, ch), jnp.float32),
                            pltpu.VMEM((tile_b, 1), jnp.float32)]),
        compiler_params=pltpu.CompilerParams(
            dimension_semantics=("parallel", "arbitrary")),
    )(*in_arrays)

    logdet = ld[:, 0] + p["an_logdet_const"]
    return x_out, logdet


# ----------------------------------------------------------------------------
# Deterministic parameter initialization + packing (mirrors nn.Linear shapes).
# ----------------------------------------------------------------------------
def _init_linear(key, din, dout):
    kw, kb = jax.random.split(key)
    bound = 1.0 / np.sqrt(din)
    W = jax.random.uniform(kw, (din, dout), jnp.float32, -bound, bound)
    b = jax.random.uniform(kb, (1, dout), jnp.float32, -bound, bound)
    return (W, b)


def _init_mlp(key, din, hidden, dout, depth):
    # BasicFullyConnectedNet: Linear(din,h), LReLU, depth x [Linear(h,h), LReLU], Linear(h,dout)
    keys = jax.random.split(key, depth + 2)
    layers = [_init_linear(keys[0], din, hidden)]
    for d in range(depth):
        layers.append(_init_linear(keys[1 + d], hidden, hidden))
    layers.append(_init_linear(keys[-1], hidden, dout))
    return layers


def _block_diag(a, b):
    ai, ao = a.shape
    bi, bo = b.shape
    top = jnp.concatenate([a, jnp.zeros((ai, bo), a.dtype)], axis=1)
    bot = jnp.concatenate([jnp.zeros((bi, ao), b.dtype), b], axis=1)
    return jnp.concatenate([top, bot], axis=0)


def _init_subflow(key, in_ch, hidden, depth, n_flow):
    half = in_ch // 2
    keys = jax.random.split(key, n_flow)
    an_s, an_l, w0, b0, wm, bm, wl, bl, perm_m = ([] for _ in range(9))
    an_ld_const = jnp.float32(0.0)

    for bk in keys:
        k = jax.random.split(bk, 7)
        scale = 1.0 + 0.05 * jax.random.normal(k[0], (1, in_ch), jnp.float32)
        loc = 0.05 * jax.random.normal(k[1], (1, in_ch), jnp.float32)
        s_nets = [_init_mlp(k[2], half, hidden, half, depth),
                  _init_mlp(k[3], half, hidden, half, depth)]
        t_nets = [_init_mlp(k[4], half, hidden, half, depth),
                  _init_mlp(k[5], half, hidden, half, depth)]
        perm = jax.random.permutation(k[6], in_ch)

        an_s.append(scale)
        an_l.append(loc)
        an_ld_const = an_ld_const + jnp.sum(jnp.log(jnp.abs(scale)))

        w0_h, b0_h, wm_h, bm_h, wl_h, bl_h = [], [], [], [], [], []
        for h_idx in range(2):
            s_l, t_l = s_nets[h_idx], t_nets[h_idx]
            w0_h.append(jnp.concatenate([s_l[0][0], t_l[0][0]], axis=1))
            b0_h.append(jnp.concatenate([s_l[0][1], t_l[0][1]], axis=1))
            for l in range(depth):
                wm_h.append(_block_diag(s_l[1 + l][0], t_l[1 + l][0]))
                bm_h.append(jnp.concatenate([s_l[1 + l][1], t_l[1 + l][1]], axis=1))
            wl_h.append(_block_diag(s_l[-1][0], t_l[-1][0]))
            bl_h.append(jnp.concatenate([s_l[-1][1], t_l[-1][1]], axis=1))

        w0.append(jnp.stack(w0_h))                     # (2, half, 2h)
        b0.append(jnp.stack(b0_h))                     # (2, 1, 2h)
        if depth > 0:
            wm.append(jnp.stack(wm_h))                 # (2*depth, 2h, 2h)
            bm.append(jnp.stack(bm_h))                 # (2*depth, 1, 2h)
        wl.append(jnp.stack(wl_h))                     # (2, 2h, 2*half)
        bl.append(jnp.stack(bl_h))                     # (2, 1, 2*half)
        # (x @ P)[:, j] == x[:, perm[j]]  (exact 0/1 matrix, kept f32)
        perm_m.append(jax.nn.one_hot(perm, in_ch, dtype=jnp.float32).T)

    p = {
        "n_flow": n_flow, "depth": depth, "hidden": hidden,
        "an_scale": jnp.stack(an_s),                   # (n_flow, 1, ch)
        "an_loc": jnp.stack(an_l),
        "an_logdet_const": an_ld_const,
        "w0": jnp.stack(w0).astype(jnp.bfloat16),
        "b0": jnp.stack(b0),
        "wl": jnp.stack(wl).astype(jnp.bfloat16),
        "bl": jnp.stack(bl),
        "perm": jnp.stack(perm_m),
    }
    if depth > 0:
        p["wm"] = jnp.stack(wm).astype(jnp.bfloat16)
        p["bm"] = jnp.stack(bm)
    return p


# ----------------------------------------------------------------------------
# UnsupervisedTransformer == ConditionalFlatSplitFlow.f (early Gaussianization)
# ----------------------------------------------------------------------------
class UnsupervisedTransformerPallas:
    def __init__(self, config, key):
        self.n_split = config["Transformer/n_split"]
        in_channel = config["Transformer/in_channels"]
        n_flow = config["Transformer/n_flow_sub"]
        depth = config["Transformer/hidden_depth"]
        mult = config["Transformer/hidden_dim_multiplier"]

        self.z_dim = in_channel
        dims = self._make_dims(self.n_split, in_channel)
        self.all_dims = dims + [dims[-1]]
        diffs = np.abs(np.diff(np.array(dims)))
        assert diffs[-1] > 1
        self.dim_diffs = list(diffs) + [diffs[-1] // 2, diffs[-1] // 2]

        keys = jax.random.split(key, len(dims))
        self.subflows = [
            _init_subflow(kk, d, d * mult, depth, n_flow) for d, kk in zip(dims, keys)
        ]

    @staticmethod
    def _make_dims(n_factor, z_dim):
        dims = [z_dim, 2 ** int(np.log2(z_dim))]
        for _ in range(1, n_factor):
            dims.append(dims[-1] // 2)
        assert dims[-1] > 0
        return dims

    def forward(self, x):
        z_early_out = []
        logdet = jnp.zeros((x.shape[0],), jnp.float32)
        current_dim = self.z_dim
        for i, sf in enumerate(self.subflows):
            x, sub_ld = subflow_forward(sf, x)
            dim_out = current_dim - self.all_dims[i + 1]
            z_early_out.append(x[:, :dim_out])
            x = x[:, dim_out:]
            logdet = logdet + sub_ld
            current_dim = self.all_dims[i + 1]
        z_early_out.append(x)
        return jnp.concatenate(z_early_out, axis=1), logdet


# ----------------------------------------------------------------------------
if __name__ == "__main__":
    config = {
        "Transformer/n_split": 2,
        "Transformer/in_channels": 48,        # non power-of-2 -> dims [48, 32, 16]
        "Transformer/n_flow_sub": 2,
        "Transformer/hidden_depth": 1,
        "Transformer/hidden_dim_multiplier": 2,
    }

    key = jax.random.PRNGKey(0)
    k_params, k_x = jax.random.split(key)

    model = UnsupervisedTransformerPallas(config, k_params)

    batch = 2
    x = jax.random.normal(k_x, (batch, config["Transformer/in_channels"]), jnp.float32)

    fwd = jax.jit(model.forward)
    out, logdet = fwd(x)
    jax.block_until_ready((out, logdet))

    assert out.shape == (batch, config["Transformer/in_channels"]), out.shape
    assert logdet.shape == (batch,), logdet.shape
    assert bool(jnp.all(jnp.isfinite(out))) and bool(jnp.all(jnp.isfinite(logdet)))

    print("KERNEL_OK")
</pallas_src>

<mosaic_0001>
module attributes {stable_mosaic.version = 11 : i64} {
  func.func @kernel(%arg0: i32, %arg1: i32, %arg2: memref<2x32xf32, #tpu.memory_space<vmem>>, %arg3: memref<1x1x32xf32, #tpu.memory_space<vmem>>, %arg4: memref<1x1x32xf32, #tpu.memory_space<vmem>>, %arg5: memref<1x2x16x128xbf16, #tpu.memory_space<vmem>>, %arg6: memref<1x2x1x128xf32, #tpu.memory_space<vmem>>, %arg7: memref<1x2x128x128xbf16, #tpu.memory_space<vmem>>, %arg8: memref<1x2x1x128xf32, #tpu.memory_space<vmem>>, %arg9: memref<1x2x128x32xbf16, #tpu.memory_space<vmem>>, %arg10: memref<1x2x1x32xf32, #tpu.memory_space<vmem>>, %arg11: memref<1x32x32xf32, #tpu.memory_space<vmem>>, %arg12: memref<2x32xf32, #tpu.memory_space<vmem>>, %arg13: memref<2x1xf32, #tpu.memory_space<vmem>>, %arg14: memref<2x32xf32, #tpu.memory_space<vmem>>, %arg15: memref<2x1xf32, #tpu.memory_space<vmem>>) attributes {dimension_semantics = [#tpu.dimension_semantics<parallel>, #tpu.dimension_semantics<arbitrary>], iteration_bounds = array<i64: 1, 2>, scalar_prefetch = 0 : i64, scratch_operands = 2 : i64, tpu.core_type = #tpu.core_type<tc>, window_params = [{transform_indices = @transform_0, window_bounds = array<i64: 2, 32>}, {transform_indices = @transform_1, window_bounds = array<i64: 1, 1, 32>}, {transform_indices = @transform_2, window_bounds = array<i64: 1, 1, 32>}, {transform_indices = @transform_3, window_bounds = array<i64: 1, 2, 16, 128>}, {transform_indices = @transform_4, window_bounds = array<i64: 1, 2, 1, 128>}, {transform_indices = @transform_5, window_bounds = array<i64: 1, 2, 128, 128>}, {transform_indices = @transform_6, window_bounds = array<i64: 1, 2, 1, 128>}, {transform_indices = @transform_7, window_bounds = array<i64: 1, 2, 128, 32>}, {transform_indices = @transform_8, window_bounds = array<i64: 1, 2, 1, 32>}, {transform_indices = @transform_9, window_bounds = array<i64: 1, 32, 32>}, {transform_indices = @transform_10, window_bounds = array<i64: 2, 32>}, {transform_indices = @transform_11, window_bounds = array<i64: 2, 1>}]} {
    %c0_i32 = arith.constant 0 : i32
    %0 = arith.cmpi eq, %arg1, %c0_i32 : i32
    %1 = arith.extui %0 : i1 to i32
    %c0_i32_0 = arith.constant 0 : i32
    %2 = arith.cmpi ne, %1, %c0_i32_0 : i32
    scf.if %2 {
      %c0_81 = arith.constant 0 : index
      %c0_82 = arith.constant 0 : index
      %113 = vector.load %arg2[%c0_81, %c0_82] : memref<2x32xf32, #tpu.memory_space<vmem>>, vector<2x32xf32>
      %c0_83 = arith.constant 0 : index
      %c0_84 = arith.constant 0 : index
      %114 = vector.load %arg14[%c0_83, %c0_84] : memref<2x32xf32, #tpu.memory_space<vmem>>, vector<2x32xf32>
      tpu.vector_store %arg14[%c0_83, %c0_84], %113 {strides = array<i32>} : memref<2x32xf32, #tpu.memory_space<vmem>>, vector<2x32xf32>,
      %cst_85 = arith.constant 0.000000e+00 : f32
      %115 = vector.broadcast %cst_85 : f32 to vector<2x1xf32>
      %c0_86 = arith.constant 0 : index
      %c0_87 = arith.constant 0 : index
      %116 = vector.load %arg15[%c0_86, %c0_87] : memref<2x1xf32, #tpu.memory_space<vmem>>, vector<2x1xf32>
      tpu.vector_store %arg15[%c0_86, %c0_87], %115 {strides = array<i32>} : memref<2x1xf32, #tpu.memory_space<vmem>>, vector<2x1xf32>,
    } else {
    }
    %c0 = arith.constant 0 : index
    %c0_1 = arith.constant 0 : index
    %c0_2 = arith.constant 0 : index
    %3 = vector.load %arg3[%c0, %c0_1, %c0_2] : memref<1x1x32xf32, #tpu.memory_space<vmem>>, vector<1x1x32xf32>
    %4 = vector.shape_cast %3 : vector<1x1x32xf32> to vector<1x32xf32>
    %c0_3 = arith.constant 0 : index
    %c0_4 = arith.constant 0 : index
    %5 = vector.load %arg14[%c0_3, %c0_4] : memref<2x32xf32, #tpu.memory_space<vmem>>, vector<2x32xf32>
    %c0_5 = arith.constant 0 : index
    %c0_6 = arith.constant 0 : index
    %c0_7 = arith.constant 0 : index
    %6 = vector.load %arg4[%c0_5, %c0_6, %c0_7] : memref<1x1x32xf32, #tpu.memory_space<vmem>>, vector<1x1x32xf32>
    %7 = vector.shape_cast %6 : vector<1x1x32xf32> to vector<1x32xf32>
    %8 = vector.broadcast %7 : vector<1x32xf32> to vector<2x32xf32>
    %9 = arith.addf %5, %8 : vector<2x32xf32>
    %10 = vector.broadcast %4 : vector<1x32xf32> to vector<2x32xf32>
    %11 = arith.mulf %10, %9 : vector<2x32xf32>
    %c0_8 = arith.constant 0 : index
    %c0_9 = arith.constant 0 : index
    %12 = vector.load %arg15[%c0_8, %c0_9] : memref<2x1xf32, #tpu.memory_space<vmem>>, vector<2x1xf32>
    %13 = vector.extract_strided_slice %11 {offsets = [0, 0], sizes = [2, 16], strides = [1, 1]} : vector<2x32xf32> to vector<2x16xf32>
    %14 = vector.extract_strided_slice %11 {offsets = [0, 16], sizes = [2, 16], strides = [1, 1]} : vector<2x32xf32> to vector<2x16xf32>
    %15 = arith.truncf %13 : vector<2x16xf32> to vector<2x16xbf16>
    %c0_10 = arith.constant 0 : index
    %c0_11 = arith.constant 0 : index
    %c0_12 = arith.constant 0 : index
    %c0_13 = arith.constant 0 : index
    %16 = vector.load %arg5[%c0_10, %c0_11, %c0_12, %c0_13] : memref<1x2x16x128xbf16, #tpu.memory_space<vmem>>, vector<1x1x16x128xbf16>
    %17 = vector.shape_cast %16 : vector<1x1x16x128xbf16> to vector<16x128xbf16>
    %cst = arith.constant dense<0.000000e+00> : vector<2x128xf32>
    %18 = tpu.matmul %15, %17, %cst {dimension_numbers = #tpu.dot_dimension_numbers<[1], [0], [0], [1], [0, 0, 1, 1], [], []>} : vector<2x16xbf16>, vector<16x128xbf16>, vector<2x128xf32> -> vector<2x128xf32>
    %c0_14 = arith.constant 0 : index
    %c0_15 = arith.constant 0 : index
    %c0_16 = arith.constant 0 : index
    %c0_17 = arith.constant 0 : index
    %19 = vector.load %arg6[%c0_14, %c0_15, %c0_16, %c0_17] : memref<1x2x1x128xf32, #tpu.memory_space<vmem>>, vector<1x1x1x128xf32>
    %20 = vector.shape_cast %19 : vector<1x1x1x128xf32> to vector<1x128xf32>
    %21 = vector.broadcast %20 : vector<1x128xf32> to vector<2x128xf32>
    %22 = arith.addf %18, %21 : vector<2x128xf32>
    %cst_18 = arith.constant 0.000000e+00 : f32
    %23 = vector.broadcast %cst_18 : f32 to vector<2x128xf32>
    %24 = arith.cmpf ogt, %22, %23 : vector<2x128xf32>
    %cst_19 = arith.constant 0.00999999977 : f32
    %25 = vector.broadcast %cst_19 : f32 to vector<2x128xf32>
    %26 = arith.mulf %25, %22 : vector<2x128xf32>
    %27 = arith.select %24, %22, %26 : vector<2x128xi1>, vector<2x128xf32>
    %28 = arith.truncf %27 : vector<2x128xf32> to vector<2x128xbf16>
    %c0_20 = arith.constant 0 : index
    %c0_21 = arith.constant 0 : index
    %c0_22 = arith.constant 0 : index
    %c0_23 = arith.constant 0 : index
    %29 = vector.load %arg7[%c0_20, %c0_21, %c0_22, %c0_23] : memref<1x2x128x128xbf16, #tpu.memory_space<vmem>>, vector<1x1x128x128xbf16>
    %30 = vector.shape_cast %29 : vector<1x1x128x128xbf16> to vector<128x128xbf16>
    %cst_24 = arith.constant dense<0.000000e+00> : vector<2x128xf32>
    %31 = tpu.matmul %28, %30, %cst_24 {dimension_numbers = #tpu.dot_dimension_numbers<[1], [0], [0], [1], [0, 0, 1, 1], [], []>} : vector<2x128xbf16>, vector<128x128xbf16>, vector<2x128xf32> -> vector<2x128xf32>
    %c0_25 = arith.constant 0 : index
    %c0_26 = arith.constant 0 : index
    %c0_27 = arith.constant 0 : index
    %c0_28 = arith.constant 0 : index
    %32 = vector.load %arg8[%c0_25, %c0_26, %c0_27, %c0_28] : memref<1x2x1x128xf32, #tpu.memory_space<vmem>>, vector<1x1x1x128xf32>
    %33 = vector.shape_cast %32 : vector<1x1x1x128xf32> to vector<1x128xf32>
    %34 = vector.broadcast %33 : vector<1x128xf32> to vector<2x128xf32>
    %35 = arith.addf %31, %34 : vector<2x128xf32>
    %cst_29 = arith.constant 0.000000e+00 : f32
    %36 = vector.broadcast %cst_29 : f32 to vector<2x128xf32>
    %37 = arith.cmpf ogt, %35, %36 : vector<2x128xf32>
    %cst_30 = arith.constant 0.00999999977 : f32
    %38 = vector.broadcast %cst_30 : f32 to vector<2x128xf32>
    %39 = arith.mulf %38, %35 : vector<2x128xf32>
    %40 = arith.select %37, %35, %39 : vector<2x128xi1>, vector<2x128xf32>
    %41 = arith.truncf %40 : vector<2x128xf32> to vector<2x128xbf16>
    %c0_31 = arith.constant 0 : index
    %c0_32 = arith.constant 0 : index
    %c0_33 = arith.constant 0 : index
    %c0_34 = arith.constant 0 : index
    %42 = vector.load %arg9[%c0_31, %c0_32, %c0_33, %c0_34] : memref<1x2x128x32xbf16, #tpu.memory_space<vmem>>, vector<1x1x128x32xbf16>
    %43 = vector.shape_cast %42 : vector<1x1x128x32xbf16> to vector<128x32xbf16>
    %cst_35 = arith.constant dense<0.000000e+00> : vector<2x32xf32>
    %44 = tpu.matmul %41, %43, %cst_35 {dimension_numbers = #tpu.dot_dimension_numbers<[1], [0], [0], [1], [0, 0, 1, 1], [], []>} : vector<2x128xbf16>, vector<128x32xbf16>, vector<2x32xf32> -> vector<2x32xf32>
    %c0_36 = arith.constant 0 : index
    %c0_37 = arith.constant 0 : index
    %c0_38 = arith.constant 0 : index
    %c0_39 = arith.constant 0 : index
    %45 = vector.load %arg10[%c0_36, %c0_37, %c0_38, %c0_39] : memref<1x2x1x32xf32, #tpu.memory_space<vmem>>, vector<1x1x1x32xf32>
    %46 = vector.shape_cast %45 : vector<1x1x1x32xf32> to vector<1x32xf32>
    %47 = vector.broadcast %46 : vector<1x32xf32> to vector<2x32xf32>
    %48 = arith.addf %44, %47 : vector<2x32xf32>
    %49 = vector.extract_strided_slice %48 {offsets = [0, 0], sizes = [2, 16], strides = [1, 1]} : vector<2x32xf32> to vector<2x16xf32>
    %50 = math.tanh %49 : vector<2x16xf32>
    %51 = vector.extract_strided_slice %48 {offsets = [0, 16], sizes = [2, 16], strides = [1, 1]} : vector<2x32xf32> to vector<2x16xf32>
    %52 = math.exp %50 : vector<2x16xf32>
    %53 = arith.mulf %14, %52 : vector<2x16xf32>
    %54 = arith.addf %53, %51 : vector<2x16xf32>
    %cst_40 = arith.constant dense<0.000000e+00> : vector<2xf32>
    %55 = vector.multi_reduction <add>, %50, %cst_40 [1] : vector<2x16xf32> to vector<2xf32>
    %56 = vector.shape_cast %55 : vector<2xf32> to vector<2x1xf32>
    %57 = arith.addf %12, %56 : vector<2x1xf32>
    %58 = tpu.concatenate %13, %54 in 1 : vector<2x16xf32>, vector<2x16xf32> -> vector<2x32xf32>
    %59 = vector.extract_strided_slice %58 {offsets = [0, 16], sizes = [2, 16], strides = [1, 1]} : vector<2x32xf32> to vector<2x16xf32>
    %60 = vector.extract_strided_slice %58 {offsets = [0, 0], sizes = [2, 16], strides = [1, 1]} : vector<2x32xf32> to vector<2x16xf32>
    %61 = arith.truncf %59 : vector<2x16xf32> to vector<2x16xbf16>
    %c0_41 = arith.constant 0 : index
    %c1 = arith.constant 1 : index
    %c0_42 = arith.constant 0 : index
    %c0_43 = arith.constant 0 : index
    %62 = vector.load %arg5[%c0_41, %c1, %c0_42, %c0_43] : memref<1x2x16x128xbf16, #tpu.memory_space<vmem>>, vector<1x1x16x128xbf16>
    %63 = vector.shape_cast %62 : vector<1x1x16x128xbf16> to vector<16x128xbf16>
    %cst_44 = arith.constant dense<0.000000e+00> : vector<2x128xf32>
    %64 = tpu.matmul %61, %63, %cst_44 {dimension_numbers = #tpu.dot_dimension_numbers<[1], [0], [0], [1], [0, 0, 1, 1], [], []>} : vector<2x16xbf16>, vector<16x128xbf16>, vector<2x128xf32> -> vector<2x128xf32>
    %c0_45 = arith.constant 0 : index
    %c1_46 = arith.constant 1 : index
    %c0_47 = arith.constant 0 : index
    %c0_48 = arith.constant 0 : index
    %65 = vector.load %arg6[%c0_45, %c1_46, %c0_47, %c0_48] : memref<1x2x1x128xf32, #tpu.memory_space<vmem>>, vector<1x1x1x128xf32>
    %66 = vector.shape_cast %65 : vector<1x1x1x128xf32> to vector<1x128xf32>
    %67 = vector.broadcast %66 : vector<1x128xf32> to vector<2x128xf32>
    %68 = arith.addf %64, %67 : vector<2x128xf32>
    %cst_49 = arith.constant 0.000000e+00 : f32
    %69 = vector.broadcast %cst_49 : f32 to vector<2x128xf32>
    %70 = arith.cmpf ogt, %68, %69 : vector<2x128xf32>
    %cst_50 = arith.constant 0.00999999977 : f32
    %71 = vector.broadcast %cst_50 : f32 to vector<2x128xf32>
    %72 = arith.mulf %71, %68 : vector<2x128xf32>
    %73 = arith.select %70, %68, %72 : vector<2x128xi1>, vector<2x128xf32>
    %74 = arith.truncf %73 : vector<2x128xf32> to vector<2x128xbf16>
    %c0_51 = arith.constant 0 : index
    %c1_52 = arith.constant 1 : index
    %c0_53 = arith.constant 0 : index
    %c0_54 = arith.constant 0 : index
    %75 = vector.load %arg7[%c0_51, %c1_52, %c0_53, %c0_54] : memref<1x2x128x128xbf16, #tpu.memory_space<vmem>>, vector<1x1x128x128xbf16>
    %76 = vector.shape_cast %75 : vector<1x1x128x128xbf16> to vector<128x128xbf16>
    %cst_55 = arith.constant dense<0.000000e+00> : vector<2x128xf32>
    %77 = tpu.matmul %74, %76, %cst_55 {dimension_numbers = #tpu.dot_dimension_numbers<[1], [0], [0], [1], [0, 0, 1, 1], [], []>} : vector<2x128xbf16>, vector<128x128xbf16>, vector<2x128xf32> -> vector<2x128xf32>
    %c0_56 = arith.constant 0 : index
    %c1_57 = arith.constant 1 : index
    %c0_58 = arith.constant 0 : index
    %c0_59 = arith.constant 0 : index
    %78 = vector.load %arg8[%c0_56, %c1_57, %c0_58, %c0_59] : memref<1x2x1x128xf32, #tpu.memory_space<vmem>>, vector<1x1x1x128xf32>
    %79 = vector.shape_cast %78 : vector<1x1x1x128xf32> to vector<1x128xf32>
    %80 = vector.broadcast %79 : vector<1x128xf32> to vector<2x128xf32>
    %81 = arith.addf %77, %80 : vector<2x128xf32>
    %cst_60 = arith.constant 0.000000e+00 : f32
    %82 = vector.broadcast %cst_60 : f32 to vector<2x128xf32>
    %83 = arith.cmpf ogt, %81, %82 : vector<2x128xf32>
    %cst_61 = arith.constant 0.00999999977 : f32
    %84 = vector.broadcast %cst_61 : f32 to vector<2x128xf32>
    %85 = arith.mulf %84, %81 : vector<2x128xf32>
    %86 = arith.select %83, %81, %85 : vector<2x128xi1>, vector<2x128xf32>
    %87 = arith.truncf %86 : vector<2x128xf32> to vector<2x128xbf16>
    %c0_62 = arith.constant 0 : index
    %c1_63 = arith.constant 1 : index
    %c0_64 = arith.constant 0 : index
    %c0_65 = arith.constant 0 : index
    %88 = vector.load %arg9[%c0_62, %c1_63, %c0_64, %c0_65] : memref<1x2x128x32xbf16, #tpu.memory_space<vmem>>, vector<1x1x128x32xbf16>
    %89 = vector.shape_cast %88 : vector<1x1x128x32xbf16> to vector<128x32xbf16>
    %cst_66 = arith.constant dense<0.000000e+00> : vector<2x32xf32>
    %90 = tpu.matmul %87, %89, %cst_66 {dimension_numbers = #tpu.dot_dimension_numbers<[1], [0], [0], [1], [0, 0, 1, 1], [], []>} : vector<2x128xbf16>, vector<128x32xbf16>, vector<2x32xf32> -> vector<2x32xf32>
    %c0_67 = arith.constant 0 : index
    %c1_68 = arith.constant 1 : index
    %c0_69 = arith.constant 0 : index
    %c0_70 = arith.constant 0 : index
    %91 = vector.load %arg10[%c0_67, %c1_68, %c0_69, %c0_70] : memref<1x2x1x32xf32, #tpu.memory_space<vmem>>, vector<1x1x1x32xf32>
    %92 = vector.shape_cast %91 : vector<1x1x1x32xf32> to vector<1x32xf32>
    %93 = vector.broadcast %92 : vector<1x32xf32> to vector<2x32xf32>
    %94 = arith.addf %90, %93 : vector<2x32xf32>
    %95 = vector.extract_strided_slice %94 {offsets = [0, 0], sizes = [2, 16], strides = [1, 1]} : vector<2x32xf32> to vector<2x16xf32>
    %96 = math.tanh %95 : vector<2x16xf32>
    %97 = vector.extract_strided_slice %94 {offsets = [0, 16], sizes = [2, 16], strides = [1, 1]} : vector<2x32xf32> to vector<2x16xf32>
    %98 = math.exp %96 : vector<2x16xf32>
    %99 = arith.mulf %60, %98 : vector<2x16xf32>
    %100 = arith.addf %99, %97 : vector<2x16xf32>
    %cst_71 = arith.constant dense<0.000000e+00> : vector<2xf32>
    %101 = vector.multi_reduction <add>, %96, %cst_71 [1] : vector<2x16xf32> to vector<2xf32>
    %102 = vector.shape_cast %101 : vector<2xf32> to vector<2x1xf32>
    %103 = arith.addf %57, %102 : vector<2x1xf32>
    %104 = tpu.concatenate %59, %100 in 1 : vector<2x16xf32>, vector<2x16xf32> -> vector<2x32xf32>
    %c0_72 = arith.constant 0 : index
    %c0_73 = arith.constant 0 : index
    %c0_74 = arith.constant 0 : index
    %105 = vector.load %arg11[%c0_72, %c0_73, %c0_74] : memref<1x32x32xf32, #tpu.memory_space<vmem>>, vector<1x32x32xf32>
    %106 = vector.shape_cast %105 : vector<1x32x32xf32> to vector<32x32xf32>
    %cst_75 = arith.constant dense<0.000000e+00> : vector<2x32xf32>
    %107 = tpu.matmul %104, %106, %cst_75 {dimension_numbers = #tpu.dot_dimension_numbers<[1], [0], [0], [1], [0, 0, 1, 1], [], []>} : vector<2x32xf32>, vector<32x32xf32>, vector<2x32xf32> -> vector<2x32xf32>
    %c0_76 = arith.constant 0 : index
    %c0_77 = arith.constant 0 : index
    %108 = vector.load %arg14[%c0_76, %c0_77] : memref<2x32xf32, #tpu.memory_space<vmem>>, vector<2x32xf32>
    tpu.vector_store %arg14[%c0_76, %c0_77], %107 {strides = array<i32>} : memref<2x32xf32, #tpu.memory_space<vmem>>, vector<2x32xf32>,
    %c0_78 = arith.constant 0 : index
    %c0_79 = arith.constant 0 : index
    %109 = vector.load %arg15[%c0_78, %c0_79] : memref<2x1xf32, #tpu.memory_space<vmem>>, vector<2x1xf32>
    tpu.vector_store %arg15[%c0_78, %c0_79], %103 {strides = array<i32>} : memref<2x1xf32, #tpu.memory_space<vmem>>, vector<2x1xf32>,
    %c1_i32 = arith.constant 1 : i32
    %110 = arith.cmpi eq, %arg1, %c1_i32 : i32
    %111 = arith.extui %110 : i1 to i32
    %c0_i32_80 = arith.constant 0 : i32
    %112 = arith.cmpi ne, %111, %c0_i32_80 : i32
    scf.if %112 {
      %c0_81 = arith.constant 0 : index
      %c0_82 = arith.constant 0 : index
      %113 = vector.load %arg12[%c0_81, %c0_82] : memref<2x32xf32, #tpu.memory_space<vmem>>, vector<2x32xf32>
      tpu.vector_store %arg12[%c0_81, %c0_82], %107 {strides = array<i32>} : memref<2x32xf32, #tpu.memory_space<vmem>>, vector<2x32xf32>,
      %c0_83 = arith.constant 0 : index
      %c0_84 = arith.constant 0 : index
      %114 = vector.load %arg13[%c0_83, %c0_84] : memref<2x1xf32, #tpu.memory_space<vmem>>, vector<2x1xf32>
      tpu.vector_store %arg13[%c0_83, %c0_84], %103 {strides = array<i32>} : memref<2x1xf32, #tpu.memory_space<vmem>>, vector<2x1xf32>,
    } else {
    }
    return
  }
  func.func @transform_0(%arg0: i32, %arg1: i32) -> (i32, i32) {
    %c0_i32 = arith.constant 0 : i32
    %c0_i32_0 = arith.constant 0 : i32
    return %arg0, %c0_i32 : i32, i32
  }
  func.func @transform_1(%arg0: i32, %arg1: i32) -> (i32, i32, i32) {
    %c0_i32 = arith.constant 0 : i32
    %c0_i32_0 = arith.constant 0 : i32
    %c0_i32_1 = arith.constant 0 : i32
    return %arg1, %c0_i32, %c0_i32_0 : i32, i32, i32
  }
  func.func @transform_2(%arg0: i32, %arg1: i32) -> (i32, i32, i32) {
    %c0_i32 = arith.constant 0 : i32
    %c0_i32_0 = arith.constant 0 : i32
    %c0_i32_1 = arith.constant 0 : i32
    return %arg1, %c0_i32, %c0_i32_0 : i32, i32, i32
  }
  func.func @transform_3(%arg0: i32, %arg1: i32) -> (i32, i32, i32, i32) {
    %c0_i32 = arith.constant 0 : i32
    %c0_i32_0 = arith.constant 0 : i32
    %c0_i32_1 = arith.constant 0 : i32
    %c0_i32_2 = arith.constant 0 : i32
    return %arg1, %c0_i32, %c0_i32_0, %c0_i32_1 : i32, i32, i32, i32
  }
  func.func @transform_4(%arg0: i32, %arg1: i32) -> (i32, i32, i32, i32) {
    %c0_i32 = arith.constant 0 : i32
    %c0_i32_0 = arith.constant 0 : i32
    %c0_i32_1 = arith.constant 0 : i32
    %c0_i32_2 = arith.constant 0 : i32
    return %arg1, %c0_i32, %c0_i32_0, %c0_i32_1 : i32, i32, i32, i32
  }
  func.func @transform_5(%arg0: i32, %arg1: i32) -> (i32, i32, i32, i32) {
    %c0_i32 = arith.constant 0 : i32
    %c0_i32_0 = arith.constant 0 : i32
    %c0_i32_1 = arith.constant 0 : i32
    %c0_i32_2 = arith.constant 0 : i32
    return %arg1, %c0_i32, %c0_i32_0, %c0_i32_1 : i32, i32, i32, i32
  }
  func.func @transform_6(%arg0: i32, %arg1: i32) -> (i32, i32, i32, i32) {
    %c0_i32 = arith.constant 0 : i32
    %c0_i32_0 = arith.constant 0 : i32
    %c0_i32_1 = arith.constant 0 : i32
    %c0_i32_2 = arith.constant 0 : i32
    return %arg1, %c0_i32, %c0_i32_0, %c0_i32_1 : i32, i32, i32, i32
  }
  func.func @transform_7(%arg0: i32, %arg1: i32) -> (i32, i32, i32, i32) {
    %c0_i32 = arith.constant 0 : i32
    %c0_i32_0 = arith.constant 0 : i32
    %c0_i32_1 = arith.constant 0 : i32
    %c0_i32_2 = arith.constant 0 : i32
    return %arg1, %c0_i32, %c0_i32_0, %c0_i32_1 : i32, i32, i32, i32
  }
  func.func @transform_8(%arg0: i32, %arg1: i32) -> (i32, i32, i32, i32) {
    %c0_i32 = arith.constant 0 : i32
    %c0_i32_0 = arith.constant 0 : i32
    %c0_i32_1 = arith.constant 0 : i32
    %c0_i32_2 = arith.constant 0 : i32
    return %arg1, %c0_i32, %c0_i32_0, %c0_i32_1 : i32, i32, i32, i32
  }
  func.func @transform_9(%arg0: i32, %arg1: i32) -> (i32, i32, i32) {
    %c0_i32 = arith.constant 0 : i32
    %c0_i32_0 = arith.constant 0 : i32
    %c0_i32_1 = arith.constant 0 : i32
    return %arg1, %c0_i32, %c0_i32_0 : i32, i32, i32
  }
  func.func @transform_10(%arg0: i32, %arg1: i32) -> (i32, i32) {
    %c0_i32 = arith.constant 0 : i32
    %c0_i32_0 = arith.constant 0 : i32
    return %arg0, %c0_i32 : i32, i32
  }
  func.func @transform_11(%arg0: i32, %arg1: i32) -> (i32, i32) {
    %c0_i32 = arith.constant 0 : i32
    %c0_i32_0 = arith.constant 0 : i32
    return %arg0, %c0_i32 : i32, i32
  }
}

module attributes {stable_mosaic.version = 11 : i64} {
  func.func @kernel(%arg0: i32, %arg1: i32, %arg2: memref<2x48xf32, #tpu.memory_space<vmem>>, %arg3: memref<1x1x48xf32, #tpu.memory_space<vmem>>, %arg4: memref<1x1x48xf32, #tpu.memory_space<vmem>>, %arg5: memref<1x2x24x192xbf16, #tpu.memory_space<vmem>>, %arg6: memref<1x2x1x192xf32, #tpu.memory_space<vmem>>, %arg7: memref<1x2x192x192xbf16, #tpu.memory_space<vmem>>, %arg8: memref<1x2x1x192xf32, #tpu.memory_space<vmem>>, %arg9: memref<1x2x192x48xbf16, #tpu.memory_space<vmem>>, %arg10: memref<1x2x1x48xf32, #tpu.memory_space<vmem>>, %arg11: memref<1x48x48xf32, #tpu.memory_space<vmem>>, %arg12: memref<2x48xf32, #tpu.memory_space<vmem>>, %arg13: memref<2x1xf32, #tpu.memory_space<vmem>>, %arg14: memref<2x48xf32, #tpu.memory_space<vmem>>, %arg15: memref<2x1xf32, #tpu.memory_space<vmem>>) attributes {dimension_semantics = [#tpu.dimension_semantics<parallel>, #tpu.dimension_semantics<arbitrary>], iteration_bounds = array<i64: 1, 2>, scalar_prefetch = 0 : i64, scratch_operands = 2 : i64, tpu.core_type = #tpu.core_type<tc>, window_params = [{transform_indices = @transform_0, window_bounds = array<i64: 2, 48>}, {transform_indices = @transform_1, window_bounds = array<i64: 1, 1, 48>}, {transform_indices = @transform_2, window_bounds = array<i64: 1, 1, 48>}, {transform_indices = @transform_3, window_bounds = array<i64: 1, 2, 24, 192>}, {transform_indices = @transform_4, window_bounds = array<i64: 1, 2, 1, 192>}, {transform_indices = @transform_5, window_bounds = array<i64: 1, 2, 192, 192>}, {transform_indices = @transform_6, window_bounds = array<i64: 1, 2, 1, 192>}, {transform_indices = @transform_7, window_bounds = array<i64: 1, 2, 192, 48>}, {transform_indices = @transform_8, window_bounds = array<i64: 1, 2, 1, 48>}, {transform_indices = @transform_9, window_bounds = array<i64: 1, 48, 48>}, {transform_indices = @transform_10, window_bounds = array<i64: 2, 48>}, {transform_indices = @transform_11, window_bounds = array<i64: 2, 1>}]} {
    %c0_i32 = arith.constant 0 : i32
    %0 = arith.cmpi eq, %arg1, %c0_i32 : i32
    %1 = arith.extui %0 : i1 to i32
    %c0_i32_0 = arith.constant 0 : i32
    %2 = arith.cmpi ne, %1, %c0_i32_0 : i32
    scf.if %2 {
      %c0_81 = arith.constant 0 : index
      %c0_82 = arith.constant 0 : index
      %113 = vector.load %arg2[%c0_81, %c0_82] : memref<2x48xf32, #tpu.memory_space<vmem>>, vector<2x48xf32>
      %c0_83 = arith.constant 0 : index
      %c0_84 = arith.constant 0 : index
      %114 = vector.load %arg14[%c0_83, %c0_84] : memref<2x48xf32, #tpu.memory_space<vmem>>, vector<2x48xf32>
      tpu.vector_store %arg14[%c0_83, %c0_84], %113 {strides = array<i32>} : memref<2x48xf32, #tpu.memory_space<vmem>>, vector<2x48xf32>,
      %cst_85 = arith.constant 0.000000e+00 : f32
      %115 = vector.broadcast %cst_85 : f32 to vector<2x1xf32>
      %c0_86 = arith.constant 0 : index
      %c0_87 = arith.constant 0 : index
      %116 = vector.load %arg15[%c0_86, %c0_87] : memref<2x1xf32, #tpu.memory_space<vmem>>, vector<2x1xf32>
      tpu.vector_store %arg15[%c0_86, %c0_87], %115 {strides = array<i32>} : memref<2x1xf32, #tpu.memory_space<vmem>>, vector<2x1xf32>,
    } else {
    }
    %c0 = arith.constant 0 : index
    %c0_1 = arith.constant 0 : index
    %c0_2 = arith.constant 0 : index
    %3 = vector.load %arg3[%c0, %c0_1, %c0_2] : memref<1x1x48xf32, #tpu.memory_space<vmem>>, vector<1x1x48xf32>
    %4 = vector.shape_cast %3 : vector<1x1x48xf32> to vector<1x48xf32>
    %c0_3 = arith.constant 0 : index
    %c0_4 = arith.constant 0 : index
    %5 = vector.load %arg14[%c0_3, %c0_4] : memref<2x48xf32, #tpu.memory_space<vmem>>, vector<2x48xf32>
    %c0_5 = arith.constant 0 : index
    %c0_6 = arith.constant 0 : index
    %c0_7 = arith.constant 0 : index
    %6 = vector.load %arg4[%c0_5, %c0_6, %c0_7] : memref<1x1x48xf32, #tpu.memory_space<vmem>>, vector<1x1x48xf32>
    %7 = vector.shape_cast %6 : vector<1x1x48xf32> to vector<1x48xf32>
    %8 = vector.broadcast %7 : vector<1x48xf32> to vector<2x48xf32>
    %9 = arith.addf %5, %8 : vector<2x48xf32>
    %10 = vector.broadcast %4 : vector<1x48xf32> to vector<2x48xf32>
    %11 = arith.mulf %10, %9 : vector<2x48xf32>
    %c0_8 = arith.constant 0 : index
    %c0_9 = arith.constant 0 : index
    %12 = vector.load %arg15[%c0_8, %c0_9] : memref<2x1xf32, #tpu.memory_space<vmem>>, vector<2x1xf32>
    %13 = vector.extract_strided_slice %11 {offsets = [0, 0], sizes = [2, 24], strides = [1, 1]} : vector<2x48xf32> to vector<2x24xf32>
    %14 = vector.extract_strided_slice %11 {offsets = [0, 24], sizes = [2, 24], strides = [1, 1]} : vector<2x48xf32> to vector<2x24xf32>
    %15 = arith.truncf %13 : vector<2x24xf32> to vector<2x24xbf16>
    %c0_10 = arith.constant 0 : index
    %c0_11 = arith.constant 0 : index
    %c0_12 = arith.constant 0 : index
    %c0_13 = arith.constant 0 : index
    %16 = vector.load %arg5[%c0_10, %c0_11, %c0_12, %c0_13] : memref<1x2x24x192xbf16, #tpu.memory_space<vmem>>, vector<1x1x24x192xbf16>
    %17 = vector.shape_cast %16 : vector<1x1x24x192xbf16> to vector<24x192xbf16>
    %cst = arith.constant dense<0.000000e+00> : vector<2x192xf32>
    %18 = tpu.matmul %15, %17, %cst {dimension_numbers = #tpu.dot_dimension_numbers<[1], [0], [0], [1], [0, 0, 1, 1], [], []>} : vector<2x24xbf16>, vector<24x192xbf16>, vector<2x192xf32> -> vector<2x192xf32>
    %c0_14 = arith.constant 0 : index
    %c0_15 = arith.constant 0 : index
    %c0_16 = arith.constant 0 : index
    %c0_17 = arith.constant 0 : index
    %19 = vector.load %arg6[%c0_14, %c0_15, %c0_16, %c0_17] : memref<1x2x1x192xf32, #tpu.memory_space<vmem>>, vector<1x1x1x192xf32>
    %20 = vector.shape_cast %19 : vector<1x1x1x192xf32> to vector<1x192xf32>
    %21 = vector.broadcast %20 : vector<1x192xf32> to vector<2x192xf32>
    %22 = arith.addf %18, %21 : vector<2x192xf32>
    %cst_18 = arith.constant 0.000000e+00 : f32
    %23 = vector.broadcast %cst_18 : f32 to vector<2x192xf32>
    %24 = arith.cmpf ogt, %22, %23 : vector<2x192xf32>
    %cst_19 = arith.constant 0.00999999977 : f32
    %25 = vector.broadcast %cst_19 : f32 to vector<2x192xf32>
    %26 = arith.mulf %25, %22 : vector<2x192xf32>
    %27 = arith.select %24, %22, %26 : vector<2x192xi1>, vector<2x192xf32>
    %28 = arith.truncf %27 : vector<2x192xf32> to vector<2x192xbf16>
    %c0_20 = arith.constant 0 : index
    %c0_21 = arith.constant 0 : index
    %c0_22 = arith.constant 0 : index
    %c0_23 = arith.constant 0 : index
    %29 = vector.load %arg7[%c0_20, %c0_21, %c0_22, %c0_23] : memref<1x2x192x192xbf16, #tpu.memory_space<vmem>>, vector<1x1x192x192xbf16>
    %30 = vector.shape_cast %29 : vector<1x1x192x192xbf16> to vector<192x192xbf16>
    %cst_24 = arith.constant dense<0.000000e+00> : vector<2x192xf32>
    %31 = tpu.matmul %28, %30, %cst_24 {dimension_numbers = #tpu.dot_dimension_numbers<[1], [0], [0], [1], [0, 0, 1, 1], [], []>} : vector<2x192xbf16>, vector<192x192xbf16>, vector<2x192xf32> -> vector<2x192xf32>
    %c0_25 = arith.constant 0 : index
    %c0_26 = arith.constant 0 : index
    %c0_27 = arith.constant 0 : index
    %c0_28 = arith.constant 0 : index
    %32 = vector.load %arg8[%c0_25, %c0_26, %c0_27, %c0_28] : memref<1x2x1x192xf32, #tpu.memory_space<vmem>>, vector<1x1x1x192xf32>
    %33 = vector.shape_cast %32 : vector<1x1x1x192xf32> to vector<1x192xf32>
    %34 = vector.broadcast %33 : vector<1x192xf32> to vector<2x192xf32>
    %35 = arith.addf %31, %34 : vector<2x192xf32>
    %cst_29 = arith.constant 0.000000e+00 : f32
    %36 = vector.broadcast %cst_29 : f32 to vector<2x192xf32>
    %37 = arith.cmpf ogt, %35, %36 : vector<2x192xf32>
    %cst_30 = arith.constant 0.00999999977 : f32
    %38 = vector.broadcast %cst_30 : f32 to vector<2x192xf32>
    %39 = arith.mulf %38, %35 : vector<2x192xf32>
    %40 = arith.select %37, %35, %39 : vector<2x192xi1>, vector<2x192xf32>
    %41 = arith.truncf %40 : vector<2x192xf32> to vector<2x192xbf16>
    %c0_31 = arith.constant 0 : index
    %c0_32 = arith.constant 0 : index
    %c0_33 = arith.constant 0 : index
    %c0_34 = arith.constant 0 : index
    %42 = vector.load %arg9[%c0_31, %c0_32, %c0_33, %c0_34] : memref<1x2x192x48xbf16, #tpu.memory_space<vmem>>, vector<1x1x192x48xbf16>
    %43 = vector.shape_cast %42 : vector<1x1x192x48xbf16> to vector<192x48xbf16>
    %cst_35 = arith.constant dense<0.000000e+00> : vector<2x48xf32>
    %44 = tpu.matmul %41, %43, %cst_35 {dimension_numbers = #tpu.dot_dimension_numbers<[1], [0], [0], [1], [0, 0, 1, 1], [], []>} : vector<2x192xbf16>, vector<192x48xbf16>, vector<2x48xf32> -> vector<2x48xf32>
    %c0_36 = arith.constant 0 : index
    %c0_37 = arith.constant 0 : index
    %c0_38 = arith.constant 0 : index
    %c0_39 = arith.constant 0 : index
    %45 = vector.load %arg10[%c0_36, %c0_37, %c0_38, %c0_39] : memref<1x2x1x48xf32, #tpu.memory_space<vmem>>, vector<1x1x1x48xf32>
    %46 = vector.shape_cast %45 : vector<1x1x1x48xf32> to vector<1x48xf32>
    %47 = vector.broadcast %46 : vector<1x48xf32> to vector<2x48xf32>
    %48 = arith.addf %44, %47 : vector<2x48xf32>
    %49 = vector.extract_strided_slice %48 {offsets = [0, 0], sizes = [2, 24], strides = [1, 1]} : vector<2x48xf32> to vector<2x24xf32>
    %50 = math.tanh %49 : vector<2x24xf32>
    %51 = vector.extract_strided_slice %48 {offsets = [0, 24], sizes = [2, 24], strides = [1, 1]} : vector<2x48xf32> to vector<2x24xf32>
    %52 = math.exp %50 : vector<2x24xf32>
    %53 = arith.mulf %14, %52 : vector<2x24xf32>
    %54 = arith.addf %53, %51 : vector<2x24xf32>
    %cst_40 = arith.constant dense<0.000000e+00> : vector<2xf32>
    %55 = vector.multi_reduction <add>, %50, %cst_40 [1] : vector<2x24xf32> to vector<2xf32>
    %56 = vector.shape_cast %55 : vector<2xf32> to vector<2x1xf32>
    %57 = arith.addf %12, %56 : vector<2x1xf32>
    %58 = tpu.concatenate %13, %54 in 1 : vector<2x24xf32>, vector<2x24xf32> -> vector<2x48xf32>
    %59 = vector.extract_strided_slice %58 {offsets = [0, 24], sizes = [2, 24], strides = [1, 1]} : vector<2x48xf32> to vector<2x24xf32>
    %60 = vector.extract_strided_slice %58 {offsets = [0, 0], sizes = [2, 24], strides = [1, 1]} : vector<2x48xf32> to vector<2x24xf32>
    %61 = arith.truncf %59 : vector<2x24xf32> to vector<2x24xbf16>
    %c0_41 = arith.constant 0 : index
    %c1 = arith.constant 1 : index
    %c0_42 = arith.constant 0 : index
    %c0_43 = arith.constant 0 : index
    %62 = vector.load %arg5[%c0_41, %c1, %c0_42, %c0_43] : memref<1x2x24x192xbf16, #tpu.memory_space<vmem>>, vector<1x1x24x192xbf16>
    %63 = vector.shape_cast %62 : vector<1x1x24x192xbf16> to vector<24x192xbf16>
    %cst_44 = arith.constant dense<0.000000e+00> : vector<2x192xf32>
    %64 = tpu.matmul %61, %63, %cst_44 {dimension_numbers = #tpu.dot_dimension_numbers<[1], [0], [0], [1], [0, 0, 1, 1], [], []>} : vector<2x24xbf16>, vector<24x192xbf16>, vector<2x192xf32> -> vector<2x192xf32>
    %c0_45 = arith.constant 0 : index
    %c1_46 = arith.constant 1 : index
    %c0_47 = arith.constant 0 : index
    %c0_48 = arith.constant 0 : index
    %65 = vector.load %arg6[%c0_45, %c1_46, %c0_47, %c0_48] : memref<1x2x1x192xf32, #tpu.memory_space<vmem>>, vector<1x1x1x192xf32>
    %66 = vector.shape_cast %65 : vector<1x1x1x192xf32> to vector<1x192xf32>
    %67 = vector.broadcast %66 : vector<1x192xf32> to vector<2x192xf32>
    %68 = arith.addf %64, %67 : vector<2x192xf32>
    %cst_49 = arith.constant 0.000000e+00 : f32
    %69 = vector.broadcast %cst_49 : f32 to vector<2x192xf32>
    %70 = arith.cmpf ogt, %68, %69 : vector<2x192xf32>
    %cst_50 = arith.constant 0.00999999977 : f32
    %71 = vector.broadcast %cst_50 : f32 to vector<2x192xf32>
    %72 = arith.mulf %71, %68 : vector<2x192xf32>
    %73 = arith.select %70, %68, %72 : vector<2x192xi1>, vector<2x192xf32>
    %74 = arith.truncf %73 : vector<2x192xf32> to vector<2x192xbf16>
    %c0_51 = arith.constant 0 : index
    %c1_52 = arith.constant 1 : index
    %c0_53 = arith.constant 0 : index
    %c0_54 = arith.constant 0 : index
    %75 = vector.load %arg7[%c0_51, %c1_52, %c0_53, %c0_54] : memref<1x2x192x192xbf16, #tpu.memory_space<vmem>>, vector<1x1x192x192xbf16>
    %76 = vector.shape_cast %75 : vector<1x1x192x192xbf16> to vector<192x192xbf16>
    %cst_55 = arith.constant dense<0.000000e+00> : vector<2x192xf32>
    %77 = tpu.matmul %74, %76, %cst_55 {dimension_numbers = #tpu.dot_dimension_numbers<[1], [0], [0], [1], [0, 0, 1, 1], [], []>} : vector<2x192xbf16>, vector<192x192xbf16>, vector<2x192xf32> -> vector<2x192xf32>
    %c0_56 = arith.constant 0 : index
    %c1_57 = arith.constant 1 : index
    %c0_58 = arith.constant 0 : index
    %c0_59 = arith.constant 0 : index
    %78 = vector.load %arg8[%c0_56, %c1_57, %c0_58, %c0_59] : memref<1x2x1x192xf32, #tpu.memory_space<vmem>>, vector<1x1x1x192xf32>
    %79 = vector.shape_cast %78 : vector<1x1x1x192xf32> to vector<1x192xf32>
    %80 = vector.broadcast %79 : vector<1x192xf32> to vector<2x192xf32>
    %81 = arith.addf %77, %80 : vector<2x192xf32>
    %cst_60 = arith.constant 0.000000e+00 : f32
    %82 = vector.broadcast %cst_60 : f32 to vector<2x192xf32>
    %83 = arith.cmpf ogt, %81, %82 : vector<2x192xf32>
    %cst_61 = arith.constant 0.00999999977 : f32
    %84 = vector.broadcast %cst_61 : f32 to vector<2x192xf32>
    %85 = arith.mulf %84, %81 : vector<2x192xf32>
    %86 = arith.select %83, %81, %85 : vector<2x192xi1>, vector<2x192xf32>
    %87 = arith.truncf %86 : vector<2x192xf32> to vector<2x192xbf16>
    %c0_62 = arith.constant 0 : index
    %c1_63 = arith.constant 1 : index
    %c0_64 = arith.constant 0 : index
    %c0_65 = arith.constant 0 : index
    %88 = vector.load %arg9[%c0_62, %c1_63, %c0_64, %c0_65] : memref<1x2x192x48xbf16, #tpu.memory_space<vmem>>, vector<1x1x192x48xbf16>
    %89 = vector.shape_cast %88 : vector<1x1x192x48xbf16> to vector<192x48xbf16>
    %cst_66 = arith.constant dense<0.000000e+00> : vector<2x48xf32>
    %90 = tpu.matmul %87, %89, %cst_66 {dimension_numbers = #tpu.dot_dimension_numbers<[1], [0], [0], [1], [0, 0, 1, 1], [], []>} : vector<2x192xbf16>, vector<192x48xbf16>, vector<2x48xf32> -> vector<2x48xf32>
    %c0_67 = arith.constant 0 : index
    %c1_68 = arith.constant 1 : index
    %c0_69 = arith.constant 0 : index
    %c0_70 = arith.constant 0 : index
    %91 = vector.load %arg10[%c0_67, %c1_68, %c0_69, %c0_70] : memref<1x2x1x48xf32, #tpu.memory_space<vmem>>, vector<1x1x1x48xf32>
    %92 = vector.shape_cast %91 : vector<1x1x1x48xf32> to vector<1x48xf32>
    %93 = vector.broadcast %92 : vector<1x48xf32> to vector<2x48xf32>
    %94 = arith.addf %90, %93 : vector<2x48xf32>
    %95 = vector.extract_strided_slice %94 {offsets = [0, 0], sizes = [2, 24], strides = [1, 1]} : vector<2x48xf32> to vector<2x24xf32>
    %96 = math.tanh %95 : vector<2x24xf32>
    %97 = vector.extract_strided_slice %94 {offsets = [0, 24], sizes = [2, 24], strides = [1, 1]} : vector<2x48xf32> to vector<2x24xf32>
    %98 = math.exp %96 : vector<2x24xf32>
    %99 = arith.mulf %60, %98 : vector<2x24xf32>
    %100 = arith.addf %99, %97 : vector<2x24xf32>
    %cst_71 = arith.constant dense<0.000000e+00> : vector<2xf32>
    %101 = vector.multi_reduction <add>, %96, %cst_71 [1] : vector<2x24xf32> to vector<2xf32>
    %102 = vector.shape_cast %101 : vector<2xf32> to vector<2x1xf32>
    %103 = arith.addf %57, %102 : vector<2x1xf32>
    %104 = tpu.concatenate %59, %100 in 1 : vector<2x24xf32>, vector<2x24xf32> -> vector<2x48xf32>
    %c0_72 = arith.constant 0 : index
    %c0_73 = arith.constant 0 : index
    %c0_74 = arith.constant 0 : index
    %105 = vector.load %arg11[%c0_72, %c0_73, %c0_74] : memref<1x48x48xf32, #tpu.memory_space<vmem>>, vector<1x48x48xf32>
    %106 = vector.shape_cast %105 : vector<1x48x48xf32> to vector<48x48xf32>
    %cst_75 = arith.constant dense<0.000000e+00> : vector<2x48xf32>
    %107 = tpu.matmul %104, %106, %cst_75 {dimension_numbers = #tpu.dot_dimension_numbers<[1], [0], [0], [1], [0, 0, 1, 1], [], []>} : vector<2x48xf32>, vector<48x48xf32>, vector<2x48xf32> -> vector<2x48xf32>
    %c0_76 = arith.constant 0 : index
    %c0_77 = arith.constant 0 : index
    %108 = vector.load %arg14[%c0_76, %c0_77] : memref<2x48xf32, #tpu.memory_space<vmem>>, vector<2x48xf32>
    tpu.vector_store %arg14[%c0_76, %c0_77], %107 {strides = array<i32>} : memref<2x48xf32, #tpu.memory_space<vmem>>, vector<2x48xf32>,
    %c0_78 = arith.constant 0 : index
    %c0_79 = arith.constant 0 : index
    %109 = vector.load %arg15[%c0_78, %c0_79] : memref<2x1xf32, #tpu.memory_space<vmem>>, vector<2x1xf32>
    tpu.vector_store %arg15[%c0_78, %c0_79], %103 {strides = array<i32>} : memref<2x1xf32, #tpu.memory_space<vmem>>, vector<2x1xf32>,
    %c1_i32 = arith.constant 1 : i32
    %110 = arith.cmpi eq, %arg1, %c1_i32 : i32
    %111 = arith.extui %110 : i1 to i32
    %c0_i32_80 = arith.constant 0 : i32
    %112 = arith.cmpi ne, %111, %c0_i32_80 : i32
    scf.if %112 {
      %c0_81 = arith.constant 0 : index
      %c0_82 = arith.constant 0 : index
      %113 = vector.load %arg12[%c0_81, %c0_82] : memref<2x48xf32, #tpu.memory_space<vmem>>, vector<2x48xf32>
      tpu.vector_store %arg12[%c0_81, %c0_82], %107 {strides = array<i32>} : memref<2x48xf32, #tpu.memory_space<vmem>>, vector<2x48xf32>,
      %c0_83 = arith.constant 0 : index
      %c0_84 = arith.constant 0 : index
      %114 = vector.load %arg13[%c0_83, %c0_84] : memref<2x1xf32, #tpu.memory_space<vmem>>, vector<2x1xf32>
      tpu.vector_store %arg13[%c0_83, %c0_84], %103 {strides = array<i32>} : memref<2x1xf32, #tpu.memory_space<vmem>>, vector<2x1xf32>,
    } else {
    }
    return
  }
  func.func @transform_0(%arg0: i32, %arg1: i32) -> (i32, i32) {
    %c0_i32 = arith.constant 0 : i32
    %c0_i32_0 = arith.constant 0 : i32
    return %arg0, %c0_i32 : i32, i32
  }
  func.func @transform_1(%arg0: i32, %arg1: i32) -> (i32, i32, i32) {
    %c0_i32 = arith.constant 0 : i32
    %c0_i32_0 = arith.constant 0 : i32
    %c0_i32_1 = arith.constant 0 : i32
    return %arg1, %c0_i32, %c0_i32_0 : i32, i32, i32
  }
  func.func @transform_2(%arg0: i32, %arg1: i32) -> (i32, i32, i32) {
    %c0_i32 = arith.constant 0 : i32
    %c0_i32_0 = arith.constant 0 : i32
    %c0_i32_1 = arith.constant 0 : i32
    return %arg1, %c0_i32, %c0_i32_0 : i32, i32, i32
  }
  func.func @transform_3(%arg0: i32, %arg1: i32) -> (i32, i32, i32, i32) {
    %c0_i32 = arith.constant 0 : i32
    %c0_i32_0 = arith.constant 0 : i32
    %c0_i32_1 = arith.constant 0 : i32
    %c0_i32_2 = arith.constant 0 : i32
    return %arg1, %c0_i32, %c0_i32_0, %c0_i32_1 : i32, i32, i32, i32
  }
  func.func @transform_4(%arg0: i32, %arg1: i32) -> (i32, i32, i32, i32) {
    %c0_i32 = arith.constant 0 : i32
    %c0_i32_0 = arith.constant 0 : i32
    %c0_i32_1 = arith.constant 0 : i32
    %c0_i32_2 = arith.constant 0 : i32
    return %arg1, %c0_i32, %c0_i32_0, %c0_i32_1 : i32, i32, i32, i32
  }
  func.func @transform_5(%arg0: i32, %arg1: i32) -> (i32, i32, i32, i32) {
    %c0_i32 = arith.constant 0 : i32
    %c0_i32_0 = arith.constant 0 : i32
    %c0_i32_1 = arith.constant 0 : i32
    %c0_i32_2 = arith.constant 0 : i32
    return %arg1, %c0_i32, %c0_i32_0, %c0_i32_1 : i32, i32, i32, i32
  }
  func.func @transform_6(%arg0: i32, %arg1: i32) -> (i32, i32, i32, i32) {
    %c0_i32 = arith.constant 0 : i32
    %c0_i32_0 = arith.constant 0 : i32
    %c0_i32_1 = arith.constant 0 : i32
    %c0_i32_2 = arith.constant 0 : i32
    return %arg1, %c0_i32, %c0_i32_0, %c0_i32_1 : i32, i32, i32, i32
  }
  func.func @transform_7(%arg0: i32, %arg1: i32) -> (i32, i32, i32, i32) {
    %c0_i32 = arith.constant 0 : i32
    %c0_i32_0 = arith.constant 0 : i32
    %c0_i32_1 = arith.constant 0 : i32
    %c0_i32_2 = arith.constant 0 : i32
    return %arg1, %c0_i32, %c0_i32_0, %c0_i32_1 : i32, i32, i32, i32
  }
  func.func @transform_8(%arg0: i32, %arg1: i32) -> (i32, i32, i32, i32) {
    %c0_i32 = arith.constant 0 : i32
    %c0_i32_0 = arith.constant 0 : i32
    %c0_i32_1 = arith.constant 0 : i32
    %c0_i32_2 = arith.constant 0 : i32
    return %arg1, %c0_i32, %c0_i32_0, %c0_i32_1 : i32, i32, i32, i32
  }
  func.func @transform_9(%arg0: i32, %arg1: i32) -> (i32, i32, i32) {
    %c0_i32 = arith.constant 0 : i32
    %c0_i32_0 = arith.constant 0 : i32
    %c0_i32_1 = arith.constant 0 : i32
    return %arg1, %c0_i32, %c0_i32_0 : i32, i32, i32
  }
  func.func @transform_10(%arg0: i32, %arg1: i32) -> (i32, i32) {
    %c0_i32 = arith.constant 0 : i32
    %c0_i32_0 = arith.constant 0 : i32
    return %arg0, %c0_i32 : i32, i32
  }
  func.func @transform_11(%arg0: i32, %arg1: i32) -> (i32, i32) {
    %c0_i32 = arith.constant 0 : i32
    %c0_i32_0 = arith.constant 0 : i32
    return %arg0, %c0_i32 : i32, i32
  }
}

module attributes {stable_mosaic.version = 11 : i64} {
  func.func @kernel(%arg0: i32, %arg1: i32, %arg2: memref<2x16xf32, #tpu.memory_space<vmem>>, %arg3: memref<1x1x16xf32, #tpu.memory_space<vmem>>, %arg4: memref<1x1x16xf32, #tpu.memory_space<vmem>>, %arg5: memref<1x2x8x64xbf16, #tpu.memory_space<vmem>>, %arg6: memref<1x2x1x64xf32, #tpu.memory_space<vmem>>, %arg7: memref<1x2x64x64xbf16, #tpu.memory_space<vmem>>, %arg8: memref<1x2x1x64xf32, #tpu.memory_space<vmem>>, %arg9: memref<1x2x64x16xbf16, #tpu.memory_space<vmem>>, %arg10: memref<1x2x1x16xf32, #tpu.memory_space<vmem>>, %arg11: memref<1x16x16xf32, #tpu.memory_space<vmem>>, %arg12: memref<2x16xf32, #tpu.memory_space<vmem>>, %arg13: memref<2x1xf32, #tpu.memory_space<vmem>>, %arg14: memref<2x16xf32, #tpu.memory_space<vmem>>, %arg15: memref<2x1xf32, #tpu.memory_space<vmem>>) attributes {dimension_semantics = [#tpu.dimension_semantics<parallel>, #tpu.dimension_semantics<arbitrary>], iteration_bounds = array<i64: 1, 2>, scalar_prefetch = 0 : i64, scratch_operands = 2 : i64, tpu.core_type = #tpu.core_type<tc>, window_params = [{transform_indices = @transform_0, window_bounds = array<i64: 2, 16>}, {transform_indices = @transform_1, window_bounds = array<i64: 1, 1, 16>}, {transform_indices = @transform_2, window_bounds = array<i64: 1, 1, 16>}, {transform_indices = @transform_3, window_bounds = array<i64: 1, 2, 8, 64>}, {transform_indices = @transform_4, window_bounds = array<i64: 1, 2, 1, 64>}, {transform_indices = @transform_5, window_bounds = array<i64: 1, 2, 64, 64>}, {transform_indices = @transform_6, window_bounds = array<i64: 1, 2, 1, 64>}, {transform_indices = @transform_7, window_bounds = array<i64: 1, 2, 64, 16>}, {transform_indices = @transform_8, window_bounds = array<i64: 1, 2, 1, 16>}, {transform_indices = @transform_9, window_bounds = array<i64: 1, 16, 16>}, {transform_indices = @transform_10, window_bounds = array<i64: 2, 16>}, {transform_indices = @transform_11, window_bounds = array<i64: 2, 1>}]} {
    %c0_i32 = arith.constant 0 : i32
    %0 = arith.cmpi eq, %arg1, %c0_i32 : i32
    %1 = arith.extui %0 : i1 to i32
    %c0_i32_0 = arith.constant 0 : i32
    %2 = arith.cmpi ne, %1, %c0_i32_0 : i32
    scf.if %2 {
      %c0_81 = arith.constant 0 : index
      %c0_82 = arith.constant 0 : index
      %113 = vector.load %arg2[%c0_81, %c0_82] : memref<2x16xf32, #tpu.memory_space<vmem>>, vector<2x16xf32>
      %c0_83 = arith.constant 0 : index
      %c0_84 = arith.constant 0 : index
      %114 = vector.load %arg14[%c0_83, %c0_84] : memref<2x16xf32, #tpu.memory_space<vmem>>, vector<2x16xf32>
      tpu.vector_store %arg14[%c0_83, %c0_84], %113 {strides = array<i32>} : memref<2x16xf32, #tpu.memory_space<vmem>>, vector<2x16xf32>,
      %cst_85 = arith.constant 0.000000e+00 : f32
      %115 = vector.broadcast %cst_85 : f32 to vector<2x1xf32>
      %c0_86 = arith.constant 0 : index
      %c0_87 = arith.constant 0 : index
      %116 = vector.load %arg15[%c0_86, %c0_87] : memref<2x1xf32, #tpu.memory_space<vmem>>, vector<2x1xf32>
      tpu.vector_store %arg15[%c0_86, %c0_87], %115 {strides = array<i32>} : memref<2x1xf32, #tpu.memory_space<vmem>>, vector<2x1xf32>,
    } else {
    }
    %c0 = arith.constant 0 : index
    %c0_1 = arith.constant 0 : index
    %c0_2 = arith.constant 0 : index
    %3 = vector.load %arg3[%c0, %c0_1, %c0_2] : memref<1x1x16xf32, #tpu.memory_space<vmem>>, vector<1x1x16xf32>
    %4 = vector.shape_cast %3 : vector<1x1x16xf32> to vector<1x16xf32>
    %c0_3 = arith.constant 0 : index
    %c0_4 = arith.constant 0 : index
    %5 = vector.load %arg14[%c0_3, %c0_4] : memref<2x16xf32, #tpu.memory_space<vmem>>, vector<2x16xf32>
    %c0_5 = arith.constant 0 : index
    %c0_6 = arith.constant 0 : index
    %c0_7 = arith.constant 0 : index
    %6 = vector.load %arg4[%c0_5, %c0_6, %c0_7] : memref<1x1x16xf32, #tpu.memory_space<vmem>>, vector<1x1x16xf32>
    %7 = vector.shape_cast %6 : vector<1x1x16xf32> to vector<1x16xf32>
    %8 = vector.broadcast %7 : vector<1x16xf32> to vector<2x16xf32>
    %9 = arith.addf %5, %8 : vector<2x16xf32>
    %10 = vector.broadcast %4 : vector<1x16xf32> to vector<2x16xf32>
    %11 = arith.mulf %10, %9 : vector<2x16xf32>
    %c0_8 = arith.constant 0 : index
    %c0_9 = arith.constant 0 : index
    %12 = vector.load %arg15[%c0_8, %c0_9] : memref<2x1xf32, #tpu.memory_space<vmem>>, vector<2x1xf32>
    %13 = vector.extract_strided_slice %11 {offsets = [0, 0], sizes = [2, 8], strides = [1, 1]} : vector<2x16xf32> to vector<2x8xf32>
    %14 = vector.extract_strided_slice %11 {offsets = [0, 8], sizes = [2, 8], strides = [1, 1]} : vector<2x16xf32> to vector<2x8xf32>
    %15 = arith.truncf %13 : vector<2x8xf32> to vector<2x8xbf16>
    %c0_10 = arith.constant 0 : index
    %c0_11 = arith.constant 0 : index
    %c0_12 = arith.constant 0 : index
    %c0_13 = arith.constant 0 : index
    %16 = vector.load %arg5[%c0_10, %c0_11, %c0_12, %c0_13] : memref<1x2x8x64xbf16, #tpu.memory_space<vmem>>, vector<1x1x8x64xbf16>
    %17 = vector.shape_cast %16 : vector<1x1x8x64xbf16> to vector<8x64xbf16>
    %cst = arith.constant dense<0.000000e+00> : vector<2x64xf32>
    %18 = tpu.matmul %15, %17, %cst {dimension_numbers = #tpu.dot_dimension_numbers<[1], [0], [0], [1], [0, 0, 1, 1], [], []>} : vector<2x8xbf16>, vector<8x64xbf16>, vector<2x64xf32> -> vector<2x64xf32>
    %c0_14 = arith.constant 0 : index
    %c0_15 = arith.constant 0 : index
    %c0_16 = arith.constant 0 : index
    %c0_17 = arith.constant 0 : index
    %19 = vector.load %arg6[%c0_14, %c0_15, %c0_16, %c0_17] : memref<1x2x1x64xf32, #tpu.memory_space<vmem>>, vector<1x1x1x64xf32>
    %20 = vector.shape_cast %19 : vector<1x1x1x64xf32> to vector<1x64xf32>
    %21 = vector.broadcast %20 : vector<1x64xf32> to vector<2x64xf32>
    %22 = arith.addf %18, %21 : vector<2x64xf32>
    %cst_18 = arith.constant 0.000000e+00 : f32
    %23 = vector.broadcast %cst_18 : f32 to vector<2x64xf32>
    %24 = arith.cmpf ogt, %22, %23 : vector<2x64xf32>
    %cst_19 = arith.constant 0.00999999977 : f32
    %25 = vector.broadcast %cst_19 : f32 to vector<2x64xf32>
    %26 = arith.mulf %25, %22 : vector<2x64xf32>
    %27 = arith.select %24, %22, %26 : vector<2x64xi1>, vector<2x64xf32>
    %28 = arith.truncf %27 : vector<2x64xf32> to vector<2x64xbf16>
    %c0_20 = arith.constant 0 : index
    %c0_21 = arith.constant 0 : index
    %c0_22 = arith.constant 0 : index
    %c0_23 = arith.constant 0 : index
    %29 = vector.load %arg7[%c0_20, %c0_21, %c0_22, %c0_23] : memref<1x2x64x64xbf16, #tpu.memory_space<vmem>>, vector<1x1x64x64xbf16>
    %30 = vector.shape_cast %29 : vector<1x1x64x64xbf16> to vector<64x64xbf16>
    %cst_24 = arith.constant dense<0.000000e+00> : vector<2x64xf32>
    %31 = tpu.matmul %28, %30, %cst_24 {dimension_numbers = #tpu.dot_dimension_numbers<[1], [0], [0], [1], [0, 0, 1, 1], [], []>} : vector<2x64xbf16>, vector<64x64xbf16>, vector<2x64xf32> -> vector<2x64xf32>
    %c0_25 = arith.constant 0 : index
    %c0_26 = arith.constant 0 : index
    %c0_27 = arith.constant 0 : index
    %c0_28 = arith.constant 0 : index
    %32 = vector.load %arg8[%c0_25, %c0_26, %c0_27, %c0_28] : memref<1x2x1x64xf32, #tpu.memory_space<vmem>>, vector<1x1x1x64xf32>
    %33 = vector.shape_cast %32 : vector<1x1x1x64xf32> to vector<1x64xf32>
    %34 = vector.broadcast %33 : vector<1x64xf32> to vector<2x64xf32>
    %35 = arith.addf %31, %34 : vector<2x64xf32>
    %cst_29 = arith.constant 0.000000e+00 : f32
    %36 = vector.broadcast %cst_29 : f32 to vector<2x64xf32>
    %37 = arith.cmpf ogt, %35, %36 : vector<2x64xf32>
    %cst_30 = arith.constant 0.00999999977 : f32
    %38 = vector.broadcast %cst_30 : f32 to vector<2x64xf32>
    %39 = arith.mulf %38, %35 : vector<2x64xf32>
    %40 = arith.select %37, %35, %39 : vector<2x64xi1>, vector<2x64xf32>
    %41 = arith.truncf %40 : vector<2x64xf32> to vector<2x64xbf16>
    %c0_31 = arith.constant 0 : index
    %c0_32 = arith.constant 0 : index
    %c0_33 = arith.constant 0 : index
    %c0_34 = arith.constant 0 : index
    %42 = vector.load %arg9[%c0_31, %c0_32, %c0_33, %c0_34] : memref<1x2x64x16xbf16, #tpu.memory_space<vmem>>, vector<1x1x64x16xbf16>
    %43 = vector.shape_cast %42 : vector<1x1x64x16xbf16> to vector<64x16xbf16>
    %cst_35 = arith.constant dense<0.000000e+00> : vector<2x16xf32>
    %44 = tpu.matmul %41, %43, %cst_35 {dimension_numbers = #tpu.dot_dimension_numbers<[1], [0], [0], [1], [0, 0, 1, 1], [], []>} : vector<2x64xbf16>, vector<64x16xbf16>, vector<2x16xf32> -> vector<2x16xf32>
    %c0_36 = arith.constant 0 : index
    %c0_37 = arith.constant 0 : index
    %c0_38 = arith.constant 0 : index
    %c0_39 = arith.constant 0 : index
    %45 = vector.load %arg10[%c0_36, %c0_37, %c0_38, %c0_39] : memref<1x2x1x16xf32, #tpu.memory_space<vmem>>, vector<1x1x1x16xf32>
    %46 = vector.shape_cast %45 : vector<1x1x1x16xf32> to vector<1x16xf32>
    %47 = vector.broadcast %46 : vector<1x16xf32> to vector<2x16xf32>
    %48 = arith.addf %44, %47 : vector<2x16xf32>
    %49 = vector.extract_strided_slice %48 {offsets = [0, 0], sizes = [2, 8], strides = [1, 1]} : vector<2x16xf32> to vector<2x8xf32>
    %50 = math.tanh %49 : vector<2x8xf32>
    %51 = vector.extract_strided_slice %48 {offsets = [0, 8], sizes = [2, 8], strides = [1, 1]} : vector<2x16xf32> to vector<2x8xf32>
    %52 = math.exp %50 : vector<2x8xf32>
    %53 = arith.mulf %14, %52 : vector<2x8xf32>
    %54 = arith.addf %53, %51 : vector<2x8xf32>
    %cst_40 = arith.constant dense<0.000000e+00> : vector<2xf32>
    %55 = vector.multi_reduction <add>, %50, %cst_40 [1] : vector<2x8xf32> to vector<2xf32>
    %56 = vector.shape_cast %55 : vector<2xf32> to vector<2x1xf32>
    %57 = arith.addf %12, %56 : vector<2x1xf32>
    %58 = tpu.concatenate %13, %54 in 1 : vector<2x8xf32>, vector<2x8xf32> -> vector<2x16xf32>
    %59 = vector.extract_strided_slice %58 {offsets = [0, 8], sizes = [2, 8], strides = [1, 1]} : vector<2x16xf32> to vector<2x8xf32>
    %60 = vector.extract_strided_slice %58 {offsets = [0, 0], sizes = [2, 8], strides = [1, 1]} : vector<2x16xf32> to vector<2x8xf32>
    %61 = arith.truncf %59 : vector<2x8xf32> to vector<2x8xbf16>
    %c0_41 = arith.constant 0 : index
    %c1 = arith.constant 1 : index
    %c0_42 = arith.constant 0 : index
    %c0_43 = arith.constant 0 : index
    %62 = vector.load %arg5[%c0_41, %c1, %c0_42, %c0_43] : memref<1x2x8x64xbf16, #tpu.memory_space<vmem>>, vector<1x1x8x64xbf16>
    %63 = vector.shape_cast %62 : vector<1x1x8x64xbf16> to vector<8x64xbf16>
    %cst_44 = arith.constant dense<0.000000e+00> : vector<2x64xf32>
    %64 = tpu.matmul %61, %63, %cst_44 {dimension_numbers = #tpu.dot_dimension_numbers<[1], [0], [0], [1], [0, 0, 1, 1], [], []>} : vector<2x8xbf16>, vector<8x64xbf16>, vector<2x64xf32> -> vector<2x64xf32>
    %c0_45 = arith.constant 0 : index
    %c1_46 = arith.constant 1 : index
    %c0_47 = arith.constant 0 : index
    %c0_48 = arith.constant 0 : index
    %65 = vector.load %arg6[%c0_45, %c1_46, %c0_47, %c0_48] : memref<1x2x1x64xf32, #tpu.memory_space<vmem>>, vector<1x1x1x64xf32>
    %66 = vector.shape_cast %65 : vector<1x1x1x64xf32> to vector<1x64xf32>
    %67 = vector.broadcast %66 : vector<1x64xf32> to vector<2x64xf32>
    %68 = arith.addf %64, %67 : vector<2x64xf32>
    %cst_49 = arith.constant 0.000000e+00 : f32
    %69 = vector.broadcast %cst_49 : f32 to vector<2x64xf32>
    %70 = arith.cmpf ogt, %68, %69 : vector<2x64xf32>
    %cst_50 = arith.constant 0.00999999977 : f32
    %71 = vector.broadcast %cst_50 : f32 to vector<2x64xf32>
    %72 = arith.mulf %71, %68 : vector<2x64xf32>
    %73 = arith.select %70, %68, %72 : vector<2x64xi1>, vector<2x64xf32>
    %74 = arith.truncf %73 : vector<2x64xf32> to vector<2x64xbf16>
    %c0_51 = arith.constant 0 : index
    %c1_52 = arith.constant 1 : index
    %c0_53 = arith.constant 0 : index
    %c0_54 = arith.constant 0 : index
    %75 = vector.load %arg7[%c0_51, %c1_52, %c0_53, %c0_54] : memref<1x2x64x64xbf16, #tpu.memory_space<vmem>>, vector<1x1x64x64xbf16>
    %76 = vector.shape_cast %75 : vector<1x1x64x64xbf16> to vector<64x64xbf16>
    %cst_55 = arith.constant dense<0.000000e+00> : vector<2x64xf32>
    %77 = tpu.matmul %74, %76, %cst_55 {dimension_numbers = #tpu.dot_dimension_numbers<[1], [0], [0], [1], [0, 0, 1, 1], [], []>} : vector<2x64xbf16>, vector<64x64xbf16>, vector<2x64xf32> -> vector<2x64xf32>
    %c0_56 = arith.constant 0 : index
    %c1_57 = arith.constant 1 : index
    %c0_58 = arith.constant 0 : index
    %c0_59 = arith.constant 0 : index
    %78 = vector.load %arg8[%c0_56, %c1_57, %c0_58, %c0_59] : memref<1x2x1x64xf32, #tpu.memory_space<vmem>>, vector<1x1x1x64xf32>
    %79 = vector.shape_cast %78 : vector<1x1x1x64xf32> to vector<1x64xf32>
    %80 = vector.broadcast %79 : vector<1x64xf32> to vector<2x64xf32>
    %81 = arith.addf %77, %80 : vector<2x64xf32>
    %cst_60 = arith.constant 0.000000e+00 : f32
    %82 = vector.broadcast %cst_60 : f32 to vector<2x64xf32>
    %83 = arith.cmpf ogt, %81, %82 : vector<2x64xf32>
    %cst_61 = arith.constant 0.00999999977 : f32
    %84 = vector.broadcast %cst_61 : f32 to vector<2x64xf32>
    %85 = arith.mulf %84, %81 : vector<2x64xf32>
    %86 = arith.select %83, %81, %85 : vector<2x64xi1>, vector<2x64xf32>
    %87 = arith.truncf %86 : vector<2x64xf32> to vector<2x64xbf16>
    %c0_62 = arith.constant 0 : index
    %c1_63 = arith.constant 1 : index
    %c0_64 = arith.constant 0 : index
    %c0_65 = arith.constant 0 : index
    %88 = vector.load %arg9[%c0_62, %c1_63, %c0_64, %c0_65] : memref<1x2x64x16xbf16, #tpu.memory_space<vmem>>, vector<1x1x64x16xbf16>
    %89 = vector.shape_cast %88 : vector<1x1x64x16xbf16> to vector<64x16xbf16>
    %cst_66 = arith.constant dense<0.000000e+00> : vector<2x16xf32>
    %90 = tpu.matmul %87, %89, %cst_66 {dimension_numbers = #tpu.dot_dimension_numbers<[1], [0], [0], [1], [0, 0, 1, 1], [], []>} : vector<2x64xbf16>, vector<64x16xbf16>, vector<2x16xf32> -> vector<2x16xf32>
    %c0_67 = arith.constant 0 : index
    %c1_68 = arith.constant 1 : index
    %c0_69 = arith.constant 0 : index
    %c0_70 = arith.constant 0 : index
    %91 = vector.load %arg10[%c0_67, %c1_68, %c0_69, %c0_70] : memref<1x2x1x16xf32, #tpu.memory_space<vmem>>, vector<1x1x1x16xf32>
    %92 = vector.shape_cast %91 : vector<1x1x1x16xf32> to vector<1x16xf32>
    %93 = vector.broadcast %92 : vector<1x16xf32> to vector<2x16xf32>
    %94 = arith.addf %90, %93 : vector<2x16xf32>
    %95 = vector.extract_strided_slice %94 {offsets = [0, 0], sizes = [2, 8], strides = [1, 1]} : vector<2x16xf32> to vector<2x8xf32>
    %96 = math.tanh %95 : vector<2x8xf32>
    %97 = vector.extract_strided_slice %94 {offsets = [0, 8], sizes = [2, 8], strides = [1, 1]} : vector<2x16xf32> to vector<2x8xf32>
    %98 = math.exp %96 : vector<2x8xf32>
    %99 = arith.mulf %60, %98 : vector<2x8xf32>
    %100 = arith.addf %99, %97 : vector<2x8xf32>
    %cst_71 = arith.constant dense<0.000000e+00> : vector<2xf32>
    %101 = vector.multi_reduction <add>, %96, %cst_71 [1] : vector<2x8xf32> to vector<2xf32>
    %102 = vector.shape_cast %101 : vector<2xf32> to vector<2x1xf32>
    %103 = arith.addf %57, %102 : vector<2x1xf32>
    %104 = tpu.concatenate %59, %100 in 1 : vector<2x8xf32>, vector<2x8xf32> -> vector<2x16xf32>
    %c0_72 = arith.constant 0 : index
    %c0_73 = arith.constant 0 : index
    %c0_74 = arith.constant 0 : index
    %105 = vector.load %arg11[%c0_72, %c0_73, %c0_74] : memref<1x16x16xf32, #tpu.memory_space<vmem>>, vector<1x16x16xf32>
    %106 = vector.shape_cast %105 : vector<1x16x16xf32> to vector<16x16xf32>
    %cst_75 = arith.constant dense<0.000000e+00> : vector<2x16xf32>
    %107 = tpu.matmul %104, %106, %cst_75 {dimension_numbers = #tpu.dot_dimension_numbers<[1], [0], [0], [1], [0, 0, 1, 1], [], []>} : vector<2x16xf32>, vector<16x16xf32>, vector<2x16xf32> -> vector<2x16xf32>
    %c0_76 = arith.constant 0 : index
    %c0_77 = arith.constant 0 : index
    %108 = vector.load %arg14[%c0_76, %c0_77] : memref<2x16xf32, #tpu.memory_space<vmem>>, vector<2x16xf32>
    tpu.vector_store %arg14[%c0_76, %c0_77], %107 {strides = array<i32>} : memref<2x16xf32, #tpu.memory_space<vmem>>, vector<2x16xf32>,
    %c0_78 = arith.constant 0 : index
    %c0_79 = arith.constant 0 : index
    %109 = vector.load %arg15[%c0_78, %c0_79] : memref<2x1xf32, #tpu.memory_space<vmem>>, vector<2x1xf32>
    tpu.vector_store %arg15[%c0_78, %c0_79], %103 {strides = array<i32>} : memref<2x1xf32, #tpu.memory_space<vmem>>, vector<2x1xf32>,
    %c1_i32 = arith.constant 1 : i32
    %110 = arith.cmpi eq, %arg1, %c1_i32 : i32
    %111 = arith.extui %110 : i1 to i32
    %c0_i32_80 = arith.constant 0 : i32
    %112 = arith.cmpi ne, %111, %c0_i32_80 : i32
    scf.if %112 {
      %c0_81 = arith.constant 0 : index
      %c0_82 = arith.constant 0 : index
      %113 = vector.load %arg12[%c0_81, %c0_82] : memref<2x16xf32, #tpu.memory_space<vmem>>, vector<2x16xf32>
      tpu.vector_store %arg12[%c0_81, %c0_82], %107 {strides = array<i32>} : memref<2x16xf32, #tpu.memory_space<vmem>>, vector<2x16xf32>,
      %c0_83 = arith.constant 0 : index
      %c0_84 = arith.constant 0 : index
      %114 = vector.load %arg13[%c0_83, %c0_84] : memref<2x1xf32, #tpu.memory_space<vmem>>, vector<2x1xf32>
      tpu.vector_store %arg13[%c0_83, %c0_84], %103 {strides = array<i32>} : memref<2x1xf32, #tpu.memory_space<vmem>>, vector<2x1xf32>,
    } else {
    }
    return
  }
  func.func @transform_0(%arg0: i32, %arg1: i32) -> (i32, i32) {
    %c0_i32 = arith.constant 0 : i32
    %c0_i32_0 = arith.constant 0 : i32
    return %arg0, %c0_i32 : i32, i32
  }
  func.func @transform_1(%arg0: i32, %arg1: i32) -> (i32, i32, i32) {
    %c0_i32 = arith.constant 0 : i32
    %c0_i32_0 = arith.constant 0 : i32
    %c0_i32_1 = arith.constant 0 : i32
    return %arg1, %c0_i32, %c0_i32_0 : i32, i32, i32
  }
  func.func @transform_2(%arg0: i32, %arg1: i32) -> (i32, i32, i32) {
    %c0_i32 = arith.constant 0 : i32
    %c0_i32_0 = arith.constant 0 : i32
    %c0_i32_1 = arith.constant 0 : i32
    return %arg1, %c0_i32, %c0_i32_0 : i32, i32, i32
  }
  func.func @transform_3(%arg0: i32, %arg1: i32) -> (i32, i32, i32, i32) {
    %c0_i32 = arith.constant 0 : i32
    %c0_i32_0 = arith.constant 0 : i32
    %c0_i32_1 = arith.constant 0 : i32
    %c0_i32_2 = arith.constant 0 : i32
    return %arg1, %c0_i32, %c0_i32_0, %c0_i32_1 : i32, i32, i32, i32
  }
  func.func @transform_4(%arg0: i32, %arg1: i32) -> (i32, i32, i32, i32) {
    %c0_i32 = arith.constant 0 : i32
    %c0_i32_0 = arith.constant 0 : i32
    %c0_i32_1 = arith.constant 0 : i32
    %c0_i32_2 = arith.constant 0 : i32
    return %arg1, %c0_i32, %c0_i32_0, %c0_i32_1 : i32, i32, i32, i32
  }
  func.func @transform_5(%arg0: i32, %arg1: i32) -> (i32, i32, i32, i32) {
    %c0_i32 = arith.constant 0 : i32
    %c0_i32_0 = arith.constant 0 : i32
    %c0_i32_1 = arith.constant 0 : i32
    %c0_i32_2 = arith.constant 0 : i32
    return %arg1, %c0_i32, %c0_i32_0, %c0_i32_1 : i32, i32, i32, i32
  }
  func.func @transform_6(%arg0: i32, %arg1: i32) -> (i32, i32, i32, i32) {
    %c0_i32 = arith.constant 0 : i32
    %c0_i32_0 = arith.constant 0 : i32
    %c0_i32_1 = arith.constant 0 : i32
    %c0_i32_2 = arith.constant 0 : i32
    return %arg1, %c0_i32, %c0_i32_0, %c0_i32_1 : i32, i32, i32, i32
  }
  func.func @transform_7(%arg0: i32, %arg1: i32) -> (i32, i32, i32, i32) {
    %c0_i32 = arith.constant 0 : i32
    %c0_i32_0 = arith.constant 0 : i32
    %c0_i32_1 = arith.constant 0 : i32
    %c0_i32_2 = arith.constant 0 : i32
    return %arg1, %c0_i32, %c0_i32_0, %c0_i32_1 : i32, i32, i32, i32
  }
  func.func @transform_8(%arg0: i32, %arg1: i32) -> (i32, i32, i32, i32) {
    %c0_i32 = arith.constant 0 : i32
    %c0_i32_0 = arith.constant 0 : i32
    %c0_i32_1 = arith.constant 0 : i32
    %c0_i32_2 = arith.constant 0 : i32
    return %arg1, %c0_i32, %c0_i32_0, %c0_i32_1 : i32, i32, i32, i32
  }
  func.func @transform_9(%arg0: i32, %arg1: i32) -> (i32, i32, i32) {
    %c0_i32 = arith.constant 0 : i32
    %c0_i32_0 = arith.constant 0 : i32
    %c0_i32_1 = arith.constant 0 : i32
    return %arg1, %c0_i32, %c0_i32_0 : i32, i32, i32
  }
  func.func @transform_10(%arg0: i32, %arg1: i32) -> (i32, i32) {
    %c0_i32 = arith.constant 0 : i32
    %c0_i32_0 = arith.constant 0 : i32
    return %arg0, %c0_i32 : i32, i32
  }
  func.func @transform_11(%arg0: i32, %arg1: i32) -> (i32, i32) {
    %c0_i32 = arith.constant 0 : i32
    %c0_i32_0 = arith.constant 0 : i32
    return %arg0, %c0_i32 : i32, i32
  }
}

</mosaic_0001>

<bundles_post_ra>
// kernel: forward.5
= control target key start
LH: loop header
LB: loop body
LE: loop exit
PB: predicated region body
PF: predicated region fallthrough
CT: control target
= control target key end

     0   :  { %s1686_s17 = smov 0   ;;  %s1688_s18 = smov 0   ;;  %s1875_s0 = inlined_call_operand.vmem [shape: f32[2,16], index: 0, kind: input, shape index: {}]   ;;  %s1876_s1 = inlined_call_operand.vmem [shape: f32[2,1,16], index: 1, kind: input, shape index: {}]   ;;  %s1877_s2 = inlined_call_operand.vmem [shape: f32[2,1,16], index: 2, kind: input, shape index: {}]   ;;  %s1878_s3 = inlined_call_operand.vmem [shape: bf16[2,2,8,64], index: 3, kind: input, shape index: {}]   ;;  %s1879_s4 = inlined_call_operand.vmem [shape: f32[2,2,1,64], index: 4, kind: input, shape index: {}]   ;;  %s1880_s5 = inlined_call_operand.vmem [shape: bf16[2,2,64,64], index: 5, kind: input, shape index: {}]   ;;  %s1881_s6 = inlined_call_operand.vmem [shape: f32[2,2,1,64], index: 6, kind: input, shape index: {}]   ;;  %s1882_s7 = inlined_call_operand.vmem [shape: bf16[2,2,64,16], index: 7, kind: input, shape index: {}]   ;;  %s1883_s8 = inlined_call_operand.vmem [shape: f32[2,2,1,16], index: 8, kind: input, shape index: {}]   ;;  %s1884_s9 = inlined_call_operand.vmem [shape: f32[2,16,16], index: 9, kind: input, shape index: {}]   ;;  %s1885_s10 = inlined_call_operand.vmem [shape: f32[2,16], index: 10, kind: output, shape index: {0}]   ;;  %s1886_s11 = inlined_call_operand.vmem [shape: f32[2,1], index: 11, kind: output, shape index: {1}]  }
   0x1   :  { %1888 = sst [smem:[#allocation6_spill]] %s1876_s1  ;;  %s1690_s19 = smov 0  }
   0x2   :  { %1889 = sst [smem:[#allocation7_spill]] %s1878_s3 }
   0x3   :  { %1890 = sst [smem:[#allocation8_spill]] %s1879_s4 }
   0x4 LB: > { %1891 = sst [smem:[#allocation4_spill]] %s1615_s18  ;;  %s31_s20 = sadd.s32 1, %s1615_s18  ;;  %s1619_s19 = sphi %s1690_s19, %s22_s19   ;;  %s1615_s18 = sphi %s1688_s18, %s1898_s18   ;;  %s1611_s17 = sphi %s1686_s17, %s1897_s17  }
   0x5   : > { %p1377_p0 = scmp.ge.s32.totalorder %s1619_s19, 1  ;;  %p32_p1 = scmp.ge.s32.totalorder %s31_s20, 2 }
   0x6   : > { %p434_p2 = scmp.lt.s32.totalorder %s1619_s19, 3 }
   0x7   : > { %s1900_s20 = smov (%p32_p1, %s31_s20), 0 }
   0x8   : > { %1892 = sst [smem:[#allocation5_spill]] %s1900_s20  ;;  %p435_p3 = pnand %p1377_p0, %p434_p2 }
   0x9   : > { %p518_p4 = scmp.lt.s32.totalorder (!%p435_p3), %s1611_s17, 1  ;;  %s1893_s1 = sld [smem:[#allocation6_spill]] (!%p435_p3) }
   0xa   : > { %438 = sbr.rel (%p435_p3) target bundleno = 1929 (0x789), region = 60  ;;  %s1894_s3 = sld [smem:[#allocation7_spill]] (!%p435_p3) }
   0xb   : > { %s1895_s4 = sld [smem:[#allocation8_spill]] (!%p435_p3)  ;;  %p1389_p5 = scmp.ne.s32.totalorder (!%p435_p3), %s1611_s17, 0 }
   0xf   : > { %s1708_s21 = scalar_select %p518_p4, %s1611_s17, 1 }
  0x11   : > { %s520_s24 = scalar_lea.vmem %s1893_s1, %s1708_s21  ;;  %s1446_s28 = sshll.u32 %s1708_s21, 3 }
  0x12   : > { %s1380_s29 = sshll.u32 %s1708_s21, 1  ;;  %s1723_s13 = scalar_lea.vmem %s1894_s3, %s1446_s28 }
  0x13   : > { %s1728_s16 = scalar_lea.vmem %s1895_s4, %s1380_s29  ;;  %s1447_s22 = sshll.u32 %s1708_s21, 6 }
  0x14   : > { %s1734_s1 = scalar_lea.vmem %s1881_s6, %s1380_s29  ;;  %s1739_s27 = scalar_lea.vmem %s1880_s5, %s1447_s22 }
  0x15   : > { %s1744_s28 = scalar_lea.vmem %s1882_s7, %s1447_s22  ;;  %s1749_s15 = scalar_lea.vmem %s1883_s8, %s1380_s29 }
  0x16   : > { %s1449_s3 = sshll.u32 %s1708_s21, 4  ;;  %568 = sbr.rel (%p1389_p5) target bundleno = 30 (0x1e), region = 64 }
  0x17   : > { %s1755_s23 = scalar_lea.vmem %s1884_s9, %s1449_s3 }
  0x1b   : > { %v569_v0 = vld [vmem:[%s1875_s0] sm:$0x3]  ;;  %vm570_vm0 = vcmask 123904   ;;  %vm572_vm1 = vcmask 1024   ;;  %v1621_v1 = vmov 0.0  }
  0x1c   : > { %571 = vst.msk [vmem:[#allocation2] sm:$0x3] %vm570_vm0, %v569_v0 }
  0x1d   : > { %573 = vst.msk [vmem:[#allocation3] sm:$0x3] %vm572_vm1, %v1621_v1 }
  0x1e PF: > { %v593_v2 = vld [vmem:[%s1723_s13] sm:$0xf]  ;;  %vm605_vm2 = vcmask 1043456   ;;  %v1622_v3 = vmov 0.0   ;;  %vm1623_vm3 = vmmov 0   ;;  %s1896_s18 = scalar_lea.vmem %s1877_s2, %s1708_s21  ;;  %v1573_v9 = vld [vmem:[%s1739_s27 + $0x18] sm:$0xff]  }
  0x1f   : > { %1477 = vmatprep.subr.bf16.mxu0 %v1622_v3  ;;  %v607_v4 = vsel %vm605_vm2, %v593_v2, 0  ;;  %v1391_v5 = vld [vmem:[%s520_s24] ss:$0 sm:$0xff]  ;;  %1483 = vmatprep.subr.bf16.mxu1 %v1622_v3  ;;  %vm601_vm4 = vcmask 64512   ;;  %v1574_v10 = vld [vmem:[%s1739_s27 + $0x10] sm:$0xff]   ;;  %v1575_v13 = vld [vmem:[%s1739_s27 + $0x8] sm:$0xff]  }
  0x20   : > { %1478 = vmatpush3.bf16.msra.mxu0 %v607_v4  ;;  %1479 = vmatprep.mubr.msk.bf16.mxu0 %vm1623_vm3, %v1622_v3  ;;  %v1390_v7 = vld [vmem:[%s1896_s18] ss:$0 sm:$0xff]  ;;  %v1577_v15 = vld [vmem:[%s1744_s28 + $0x18] sm:$0xff]   ;;  %v1578_v16 = vld [vmem:[%s1744_s28 + $0x10] sm:$0xff]   ;;  %vm692_vm6 = vcmask 523264   ;;  %s1624_s21 = smov 8  }
  0x21   : > { %1491 = vmatprep.mubr.msk.bf16.mxu1 %vm1623_vm3, %v1622_v3  ;;  %1495 = vmatprep.subr.bf16.mxu0 %v1622_v3  ;;  %v1576_v14 = vld [vmem:[%s1739_s27] sm:$0xff]   ;;  %v1579_v28 = vld [vmem:[%s1744_s28 + $0x8] sm:$0xff]   ;;  %v1581_v48 = vld [vmem:[%s1739_s27 + $0x38] sm:$0xff]   ;;  %s1625_s24 = smov 120   ;;  %vm831_vm10 = vcmask 58368   ;;  %vm1097_vm11 = vcmask 130048  }
  0x22   : > { %1484 = vmatpush3.bf16.msra.mxu1 %v1573_v9  ;;  %v1392_v17 = vld [vmem:[%s1728_s16] ss:$0 sm:$0xff]  ;;  %v1406_v21 = vld [vmem:[%s1723_s13 + $0x4] sm:$0xf]  ;;  %v1582_v49 = vld [vmem:[%s1739_s27 + $0x30] sm:$0xff]   ;;  %vm1173_vm12 = vcmask 1024  }
  0x23   : > { %v575_v6 = vld [vmem:[#allocation2] sm:$0x3]  ;;  %1485 = vmatprep.subr.bf16.mxu1 %v1622_v3  ;;  %v855_v25 = vsel %vm605_vm2, %v1406_v21, 0  ;;  %v1583_v56 = vld [vmem:[%s1739_s27 + $0x28] sm:$0xff]   ;;  %v1585_v58 = vld [vmem:[%s1744_s28 + $0x38] sm:$0xff]   ;;  %vm1171_vm13 = vcmask 123904  }
  0x24   : > { %v583_v8 = vadd.f32 %v1390_v7, %v575_v6  ;;  %v1580_v29 = vld [vmem:[%s1744_s28] sm:$0xff]   ;;  %v1586_v59 = vld [vmem:[%s1744_s28 + $0x30] sm:$0xff]   ;;  %v1587_v6 = vld [vmem:[%s1744_s28 + $0x28] sm:$0xff]   ;;  %p1441_p6 = scmp.ne.s32.totalorder %s1611_s17, 1 }
  0x25   : > { %v1394_v30 = vld [vmem:[%s1734_s1] ss:$0 sm:$0xff]  ;;  %v1408_v60 = vld [vmem:[%s1728_s16 + $0x1] ss:$0 sm:$0xff] }
  0x26   : > { %v1777_v11 = vmul.f32 %v1391_v5, %v583_v8  ;;  %1486 = vmatpush3.bf16.msra.mxu1 %v1574_v10  ;;  %v1400_v39 = vld [vmem:[%s1749_s15] ss:$0 sm:$0xff]  ;;  %v1419_v8 = vld [vmem:[%s1734_s1 + $0x1] ss:$0 sm:$0xff] }
  0x27   : > { %1487 = vmatprep.subr.bf16.mxu1 %v1622_v3  ;;  %v1584_v57 = vld [vmem:[%s1739_s27 + $0x20] sm:$0xff]  }
  0x28   : > { %v592_v12 = vpack.c.bf16 %v1777_v11, %v1777_v11  ;;  %v1588_v7 = vld [vmem:[%s1744_s28 + $0x20] sm:$0xff]  }
  0x2a   : > { %1480 = vmatmul.mubr.msk.bf16.vlgmr.msra.gmra.mxu0 %vm601_vm4, %v592_v12  ;;  %1488 = vmatpush3.bf16.msra.mxu1 %v1575_v13 }
  0x2b   : > { %1503 = vmatprep.mubr.msk.bf16.mxu0 %vm1623_vm3, %v1622_v3  ;;  %1489 = vmatprep.subr.bf16.mxu1 %v1622_v3 }
  0x2c   : > { %1496 = vmatpush3.bf16.msra.mxu0 %v1577_v15 }
  0x2d   : > { %1497 = vmatprep.subr.bf16.mxu0 %v1622_v3 }
  0x2e   : > { %1490 = vmatpush3.bf16.msra.mxu1 %v1576_v14 }
  0x2f   : > { %1507 = vmatprep.subr.bf16.mxu1 %v1622_v3 }
  0x30   : > { %1498 = vmatpush3.bf16.msra.mxu0 %v1578_v16 }
  0x31   : > { %1499 = vmatprep.subr.bf16.mxu0 %v1622_v3 }
  0x34   : > { %1500 = vmatpush3.bf16.msra.mxu0 %v1579_v28 }
  0x35   : > { %1501 = vmatprep.subr.bf16.mxu0 %v1622_v3 }
  0x38   : > { %1502 = vmatpush3.bf16.msra.mxu0 %v1580_v29 }
  0x39   : > { %1513 = vmatprep.subr.bf16.mxu0 %v1622_v3 }
  0xea   : > { %v643_v18 = vpop.f32.mrf.mxu0 }
  0xeb   : > { %v644_v19 = vadd.f32 %v1392_v17, %v643_v18  ;;  %v1434_v17 = vld [vmem:[%s1749_s15 + $0x1] ss:$0 sm:$0xff] }
  0xec   : > { %v1481_v20 = vpop.f32.mrf.mxu0 }
  0xed   : > { %vm649_vm5 = vcmp.gt.f32.partialorder %v644_v19, 0.0  ;;  %v650_v22 = vmul.f32 0.01, %v644_v19 }
  0xee   : > { %v646_v23 = vpop.f32.mrf.mxu0 }
  0xef   : > { %v651_v24 = vsel %vm649_vm5, %v644_v19, %v650_v22 }
  0xf0   : > { %v652_v26 = vpack.c.bf16 %v651_v24, %v651_v24  ;;  %v1482_v27 = vpop.f32.mrf.mxu0  ;;  %v1096_v24 = vld [vmem:[%s1755_s23 + $0x8] sm:$0xff] }
  0xf2   : > { %1492 = vmatmul.mubr.msk.bf16.vlgmr.msra.gmra.mxu1 %vm692_vm6, %v652_v26 }
  0xf3   : > { %1508 = vmatpush3.bf16.msra.mxu1 %v855_v25  ;;  %1509 = vmatprep.mubr.msk.bf16.mxu1 %vm1623_vm3, %v1622_v3  ;;  %v1095_v25 = vld [vmem:[%s1755_s23] sm:$0xff] }
  0xf4   : > { %1525 = vmatprep.subr.bf16.mxu1 %v1622_v3 }
 0x1b2   : > { %v730_v31 = vpop.f32.mrf.mxu1 }
 0x1b3   : > { %v731_v32 = vadd.f32 %v1394_v30, %v730_v31 }
 0x1b4   : > { %v1493_v33 = vpop.f32.mrf.mxu1 }
 0x1b5   : > { %vm736_vm7 = vcmp.gt.f32.partialorder %v731_v32, 0.0  ;;  %v737_v34 = vmul.f32 0.01, %v731_v32 }
 0x1b6   : > { %v733_v35 = vpop.f32.mrf.mxu1 }
 0x1b7   : > { %v738_v36 = vsel %vm736_vm7, %v731_v32, %v737_v34  ;;  %v591_v35 = vld [vmem:[#allocation3] sm:$0x3] }
 0x1b8   : > { %v739_v37 = vpack.c.bf16 %v738_v36, %v738_v36  ;;  %v1494_v38 = vpop.f32.mrf.mxu1 }
 0x1ba   : > { %1504 = vmatmul.mubr.msk.bf16.vlgmr.msra.gmra.mxu0 %vm692_vm6, %v739_v37 }
 0x1bb   : > { %1521 = vmatprep.mubr.msk.bf16.mxu0 %vm1623_vm3, %v1622_v3  ;;  %1514 = vmatpush3.bf16.msra.mxu0 %v1581_v48 }
 0x1bc   : > { %1515 = vmatprep.subr.bf16.mxu0 %v1622_v3 }
 0x1bf   : > { %1516 = vmatpush3.bf16.msra.mxu0 %v1582_v49 }
 0x1c0   : > { %1517 = vmatprep.subr.bf16.mxu0 %v1622_v3 }
 0x1c3   : > { %1518 = vmatpush3.bf16.msra.mxu0 %v1583_v56 }
 0x1c4   : > { %1519 = vmatprep.subr.bf16.mxu0 %v1622_v3 }
 0x1c7   : > { %1520 = vmatpush3.bf16.msra.mxu0 %v1584_v57 }
 0x1c8   : > { %1537 = vmatprep.subr.mxu0 %v1622_v3 }
 0x27a   : > { %v816_v40 = vpop.f32.mrf.mxu0 }
 0x27b   : > { %v817_v41 = vadd.f32 %v1400_v39, %v816_v40 }
 0x27c   : > { %v1505_v42 = vpop.f32.mrf.mxu0 }
 0x27d   : > { %1589 = vtanh.f32 %v817_v41 }
 0x27e   : > { %v819_v43 = vpop.f32.mrf.mxu0 }
 0x280   : > { %v1506_v44 = vpop.f32.mrf.mxu0 }
 0x28a   : > { %v1810_v45 = vpop.eup %1589 }
 0x28b   : > { %v823_v46 = vmul.f32 1.442695, %v1810_v45  ;;  %v832_v23 = vsel %vm831_vm10, %v1810_v45, 0.0 }
 0x28d   : > { %1591 = vpow2.f32 %v823_v46 }
 0x29a   : > { %v1592_v47 = vpop.eup %1591 }
 0x29b   : > { %826 = vrot.lane.b32.xlu0 %v1592_v47, %s1624_s21 }
 0x30d   : > { %v827_v50 = vpop.permute.xlu0 %826 }
 0x30e   : > { %v829_v51 = vmul.f32 %v827_v50, %v1777_v11 }
 0x310   : > { %v830_v52 = vadd.f32 %v829_v51, %v817_v41 }
 0x312   : > { %v1821_v53 = vsel %vm601_vm4, %v1777_v11, %v830_v52 }
 0x313   : > { %v837_v54 = vpack.c.bf16 %v1821_v53, %v1821_v53 }
 0x315   : > { %849 = vrot.lane.b32.xlu0 %v837_v54, %s1625_s24 }
 0x387   : > { %v850_v55 = vpop.permute.xlu0 %849 }
 0x388   : > { %1510 = vmatmul.mubr.msk.bf16.vlgmr.msra.gmra.mxu1 %vm601_vm4, %v850_v55 }
 0x389   : > { %1533 = vmatprep.mubr.msk.bf16.mxu1 %vm1623_vm3, %v1622_v3  ;;  %1526 = vmatpush3.bf16.msra.mxu1 %v1585_v58 }
 0x38a   : > { %1527 = vmatprep.subr.bf16.mxu1 %v1622_v3 }
 0x38d   : > { %1528 = vmatpush3.bf16.msra.mxu1 %v1586_v59 }
 0x38e   : > { %1529 = vmatprep.subr.bf16.mxu1 %v1622_v3 }
 0x391   : > { %1530 = vmatpush3.bf16.msra.mxu1 %v1587_v6 }
 0x392   : > { %1531 = vmatprep.subr.bf16.mxu1 %v1622_v3 }
 0x395   : > { %1532 = vmatpush3.bf16.msra.mxu1 %v1588_v7 }
 0x448   : > { %v891_v61 = vpop.f32.mrf.mxu1 }
 0x449   : > { %v892_v62 = vadd.f32 %v1408_v60, %v891_v61 }
 0x44a   : > { %v1511_v63 = vpop.f32.mrf.mxu1 }
 0x44b   : > { %vm897_vm8 = vcmp.gt.f32.partialorder %v892_v62, 0.0  ;;  %v898_v0 = vmul.f32 0.01, %v892_v62 }
 0x44c   : > { %v894_v1 = vpop.f32.mrf.mxu1 }
 0x44d   : > { %v899_v2 = vsel %vm897_vm8, %v892_v62, %v898_v0 }
 0x44e   : > { %v900_v4 = vpack.c.bf16 %v899_v2, %v899_v2  ;;  %v1512_v5 = vpop.f32.mrf.mxu1 }
 0x450   : > { %1522 = vmatmul.mubr.msk.bf16.vlgmr.msra.gmra.mxu0 %vm692_vm6, %v900_v4 }
 0x451   : > { %1541 = vmatprep.mubr.msk.f32.mxu0 %vm1623_vm3, %v1622_v3  ;;  %1538 = vmatpush3.msra.mxu0 %v1096_v24 }
 0x452   : > { %1539 = vmatprep.subr.mxu0 %v1622_v3 }
 0x453   : > { %1540 = vmatpush3.msra.mxu0 %v1095_v25 }
 0x510   : > { %v979_v9 = vpop.f32.mrf.mxu0 }
 0x511   : > { %v980_v10 = vadd.f32 %v1419_v8, %v979_v9 }
 0x512   : > { %v1523_v11 = vpop.f32.mrf.mxu0 }
 0x513   : > { %vm985_vm9 = vcmp.gt.f32.partialorder %v980_v10, 0.0  ;;  %v986_v12 = vmul.f32 0.01, %v980_v10 }
 0x514   : > { %v982_v13 = vpop.f32.mrf.mxu0 }
 0x515   : > { %v987_v14 = vsel %vm985_vm9, %v980_v10, %v986_v12 }
 0x516   : > { %v988_v15 = vpack.c.bf16 %v987_v14, %v987_v14  ;;  %v1524_v16 = vpop.f32.mrf.mxu0 }
 0x518   : > { %1534 = vmatmul.mubr.msk.bf16.vlgmr.msra.gmra.mxu1 %vm692_vm6, %v988_v15 }
 0x5d8   : > { %v1067_v18 = vpop.f32.mrf.mxu1 }
 0x5d9   : > { %v1068_v19 = vadd.f32 %v1434_v17, %v1067_v18 }
 0x5da   : > { %v1535_v20 = vpop.f32.mrf.mxu1 }
 0x5db   : > { %1078 = vrot.lane.b32.xlu1 %v1068_v19, %s1625_s24  ;;  %1593 = vtanh.f32 %v1068_v19 }
 0x5dc   : > { %v1070_v21 = vpop.f32.mrf.mxu1 }
 0x5de   : > { %v1536_v22 = vpop.f32.mrf.mxu1 }
 0x5df   : > { %1087 = vrot.lane.b32.xlu1 %v1821_v53, %s1625_s24 }
 0x5e8   : > { %v1594_v26 = vpop.eup %1593 }
 0x5e9   : > { %v1074_v27 = vmul.f32 1.442695, %v1594_v26  ;;  %v1082_v32 = vsel %vm831_vm10, %v1594_v26, 0.0 }
 0x5eb   : > { %1595 = vpow2.f32 %v1074_v27 }
 0x5f8   : > { %v1596_v28 = vpop.eup %1595 }
 0x5f9   : > { %v1076_v29 = vmul.f32 %v1596_v28, %v1821_v53 }
 0x603   : > { %833 = vadd.xlane.f32.xlu1 %v832_v23 }
 0x64d   : > { %v1079_v30 = vpop.permute.xlu1 %1078 }
 0x64e   : > { %v1081_v31 = vadd.f32 %v1079_v30, %v1076_v29 }
 0x650   : > { %1091 = vrot.lane.b32.xlu0 %v1081_v31, %s1624_s21 }
 0x651   : > { %v1088_v33 = vpop.permute.xlu1 %1087 }
 0x66f   : > { %1083 = vadd.xlane.f32.xlu0 %v1082_v32 }
 0x68c   : > { %v834_v36 = vpop.xlane.xlu1 %833 }
 0x68d   : > { %v835_v37 = vadd.f32 %v834_v36, %v591_v35 }
 0x6c2   : > { %v1092_v34 = vpop.permute.xlu0 %1091 }
 0x6c3   : > { %v1094_v3 = vsel %vm601_vm4, %v1088_v33, %v1092_v34 }
 0x6c4   : > { %1542 = vmatmul.mubr.msk.f32.vlgmr.msra.gmra.mxu0 %vm1097_vm11, %v1094_v3 }
 0x6f8   : > { %v1084_v38 = vpop.xlane.xlu0 %1083 }
 0x6f9   : > { %v1085_v39 = vadd.f32 %v1084_v38, %v835_v37 }
 0x6fb   : > { %1174 = vst.msk [vmem:[#allocation3] sm:$0x3] %vm1173_vm12, %v1085_v39 }
 0x782   : > { %1178 = sbr.rel (%p1441_p6) target bundleno = 1929 (0x789), region = 68 }
 0x784   : > { %v1167_v40 = vpop.f32.mrf.mxu0 }
 0x785   : > { %1172 = vst.msk [vmem:[#allocation2] sm:$0x3] %vm1171_vm13, %v1167_v40 }
 0x786   : > { %v1543_v41 = vpop.f32.mrf.mxu0 }
 0x787   : > { %1179 = vst.msk [vmem:[%s1885_s10] sm:$0x3] %vm1171_vm13, %v1167_v40 }
 0x788   : > { %1180 = vst.msk [vmem:[%s1886_s11] sm:$0x3] %vm1173_vm12, %v1085_v39 }
 0x789 PF: > { %s22_s19 = sadd.s32 1, %s1619_s19   ;;  %s1897_s17 = sld [smem:[#allocation4_spill]] }
 0x78a   : > { %p19_p7 = scmp.ge.s32.totalorder %s22_s19, 4   ;;  %s1898_s18 = sld [smem:[#allocation5_spill]] }
 0x78c   :  { %21 = sbr.rel (!%p19_p7) target bundleno = 4 (0x4), region = 143 }

// kernel: forward.4
= control target key start
LH: loop header
LB: loop body
LE: loop exit
PB: predicated region body
PF: predicated region fallthrough
CT: control target
= control target key end

     0   :  { %s1913_s17 = smov 0   ;;  %s1915_s18 = smov 0   ;;  %s2127_s0 = inlined_call_operand.vmem [shape: f32[2,32], index: 0, kind: input, shape index: {}]   ;;  %s2128_s1 = inlined_call_operand.vmem [shape: f32[2,1,32], index: 1, kind: input, shape index: {}]   ;;  %s2129_s2 = inlined_call_operand.vmem [shape: f32[2,1,32], index: 2, kind: input, shape index: {}]   ;;  %s2130_s3 = inlined_call_operand.vmem [shape: bf16[2,2,16,128], index: 3, kind: input, shape index: {}]   ;;  %s2131_s4 = inlined_call_operand.vmem [shape: f32[2,2,1,128], index: 4, kind: input, shape index: {}]   ;;  %s2132_s5 = inlined_call_operand.vmem [shape: bf16[2,2,128,128], index: 5, kind: input, shape index: {}]   ;;  %s2133_s6 = inlined_call_operand.vmem [shape: f32[2,2,1,128], index: 6, kind: input, shape index: {}]   ;;  %s2134_s7 = inlined_call_operand.vmem [shape: bf16[2,2,128,32], index: 7, kind: input, shape index: {}]   ;;  %s2135_s8 = inlined_call_operand.vmem [shape: f32[2,2,1,32], index: 8, kind: input, shape index: {}]   ;;  %s2136_s9 = inlined_call_operand.vmem [shape: f32[2,32,32], index: 9, kind: input, shape index: {}]   ;;  %s2137_s10 = inlined_call_operand.vmem [shape: f32[2,32], index: 10, kind: output, shape index: {0}]   ;;  %s2138_s11 = inlined_call_operand.vmem [shape: f32[2,1], index: 11, kind: output, shape index: {1}]  }
   0x1   :  { %2140 = sst [smem:[#allocation6_spill]] %s2128_s1  ;;  %s1917_s19 = smov 0  }
   0x2   :  { %2141 = sst [smem:[#allocation7_spill]] %s2129_s2 }
   0x3   :  { %2142 = sst [smem:[#allocation8_spill]] %s2130_s3 }
   0x4   :  { %2143 = sst [smem:[#allocation9_spill]] %s2131_s4 }
   0x5 LB: > { %2144 = sst [smem:[#allocation4_spill]] %s1842_s18  ;;  %s31_s20 = sadd.s32 1, %s1842_s18  ;;  %s1846_s19 = sphi %s1917_s19, %s22_s19   ;;  %s1842_s18 = sphi %s1915_s18, %s2151_s18   ;;  %s1838_s17 = sphi %s1913_s17, %s2150_s17  }
   0x6   : > { %p1501_p0 = scmp.ge.s32.totalorder %s1846_s19, 1  ;;  %p32_p1 = scmp.ge.s32.totalorder %s31_s20, 2 }
   0x7   : > { %p434_p2 = scmp.lt.s32.totalorder %s1846_s19, 3 }
   0x8   : > { %s2153_s20 = smov (%p32_p1, %s31_s20), 0 }
   0x9   : > { %2145 = sst [smem:[#allocation5_spill]] %s2153_s20  ;;  %p435_p3 = pnand %p1501_p0, %p434_p2 }
   0xa   : > { %p518_p4 = scmp.lt.s32.totalorder (!%p435_p3), %s1838_s17, 1  ;;  %s2146_s1 = sld [smem:[#allocation6_spill]] (!%p435_p3) }
   0xb   : > { %438 = sbr.rel (%p435_p3) target bundleno = 1931 (0x78b), region = 60  ;;  %s2147_s2 = sld [smem:[#allocation7_spill]] (!%p435_p3) }
   0xc   : > { %s2148_s3 = sld [smem:[#allocation8_spill]] (!%p435_p3)  ;;  %p1513_p5 = scmp.ne.s32.totalorder (!%p435_p3), %s1838_s17, 0 }
   0xd   : > { %s2149_s4 = sld [smem:[#allocation9_spill]] (!%p435_p3) }
  0x10   : > { %s1935_s21 = scalar_select %p518_p4, %s1838_s17, 1 }
  0x12   : > { %s520_s24 = scalar_lea.vmem %s2146_s1, %s1935_s21  ;;  %s523_s27 = scalar_lea.vmem %s2147_s2, %s1935_s21 }
  0x13   : > { %s1601_s28 = sshll.u32 %s1935_s21, 4  ;;  %s1504_s29 = sshll.u32 %s1935_s21, 1 }
  0x14   : > { %s1950_s13 = scalar_lea.vmem %s2148_s3, %s1601_s28  ;;  %s1955_s16 = scalar_lea.vmem %s2149_s4, %s1504_s29 }
  0x15   : > { %s1602_s22 = sshll.u32 %s1935_s21, 7  ;;  %s1961_s1 = scalar_lea.vmem %s2133_s6, %s1504_s29 }
  0x16   : > { %s1966_s2 = scalar_lea.vmem %s2132_s5, %s1602_s22  ;;  %s1971_s28 = scalar_lea.vmem %s2134_s7, %s1602_s22 }
  0x17   : > { %s1976_s15 = scalar_lea.vmem %s2135_s8, %s1504_s29  ;;  %s1604_s3 = sshll.u32 %s1935_s21, 5 }
  0x18   : > { %s1982_s23 = scalar_lea.vmem %s2136_s9, %s1604_s3  ;;  %568 = sbr.rel (%p1513_p5) target bundleno = 32 (0x20), region = 64 }
  0x1d   : > { %v569_v0 = vld [vmem:[%s2127_s0] sm:$0x3]  ;;  %vm570_vm0 = vcmask 254976   ;;  %vm572_vm1 = vcmask 1024   ;;  %v1848_v1 = vmov 0.0  }
  0x1e   : > { %571 = vst.msk [vmem:[#allocation2] sm:$0x3] %vm570_vm0, %v569_v0 }
  0x1f   : > { %573 = vst.msk [vmem:[#allocation3] sm:$0x3] %vm572_vm1, %v1848_v1 }
  0x20 PF: > { %v1782_v2 = vld [vmem:[%s1950_s13] sm:$0xff]   ;;  %v1849_v3 = vmov 0.0   ;;  %vm1850_vm2 = vmmov 0   ;;  %v1783_v8 = vld [vmem:[%s1966_s2 + $0x38] sm:$0xff]   ;;  %v1784_v10 = vld [vmem:[%s1966_s2 + $0x30] sm:$0xff]   ;;  %vm608_vm3 = vcmask 130048  }
  0x21   : > { %1650 = vmatprep.subr.bf16.mxu0 %v1849_v3  ;;  %v1515_v4 = vld [vmem:[%s520_s24] ss:$0 sm:$0xff]  ;;  %1656 = vmatprep.subr.bf16.mxu1 %v1849_v3  ;;  %v1785_v12 = vld [vmem:[%s1966_s2 + $0x28] sm:$0xff]   ;;  %v1787_v14 = vld [vmem:[%s1966_s2 + $0x18] sm:$0xff]   ;;  %s1851_s3 = smov 16   ;;  %s1852_s4 = smov 112  }
  0x22   : > { %1651 = vmatpush3.bf16.msra.mxu0 %v1782_v2  ;;  %1652 = vmatprep.mubr.msk.bf16.mxu0 %vm1850_vm2, %v1849_v3  ;;  %v1514_v6 = vld [vmem:[%s523_s27] ss:$0 sm:$0xff]  ;;  %v1788_v15 = vld [vmem:[%s1966_s2 + $0x10] sm:$0xff]   ;;  %v1789_v16 = vld [vmem:[%s1966_s2 + $0x8] sm:$0xff]   ;;  %vm891_vm8 = vcmask 123904   ;;  %vm1221_vm9 = vcmask 261120  }
  0x23   : > { %1672 = vmatprep.mubr.msk.bf16.mxu1 %vm1850_vm2, %v1849_v3  ;;  %1676 = vmatprep.subr.bf16.mxu0 %v1849_v3  ;;  %v1786_v13 = vld [vmem:[%s1966_s2 + $0x20] sm:$0xff]   ;;  %v1791_v18 = vld [vmem:[%s1971_s28 + $0x38] sm:$0xff]   ;;  %v1792_v19 = vld [vmem:[%s1971_s28 + $0x30] sm:$0xff]   ;;  %vm1297_vm10 = vcmask 1024   ;;  %vm1295_vm11 = vcmask 254976   ;;  %p1596_p6 = scmp.ne.s32.totalorder %s1838_s17, 1 }
  0x24   : > { %1657 = vmatpush3.bf16.msra.mxu1 %v1783_v8  ;;  %v1790_v17 = vld [vmem:[%s1966_s2] sm:$0xff]   ;;  %v1793_v20 = vld [vmem:[%s1971_s28 + $0x28] sm:$0xff]   ;;  %v1795_v22 = vld [vmem:[%s1971_s28 + $0x18] sm:$0xff]  }
  0x25   : > { %v575_v5 = vld [vmem:[#allocation2] sm:$0x3]  ;;  %1658 = vmatprep.subr.bf16.mxu1 %v1849_v3  ;;  %v1796_v23 = vld [vmem:[%s1971_s28 + $0x10] sm:$0xff]   ;;  %v1797_v33 = vld [vmem:[%s1971_s28 + $0x8] sm:$0xff]  }
  0x26   : > { %v583_v7 = vadd.f32 %v1514_v6, %v575_v5  ;;  %v1794_v21 = vld [vmem:[%s1971_s28 + $0x20] sm:$0xff]   ;;  %v1799_v52 = vld [vmem:[%s1950_s13 + $0x8] sm:$0xff]   ;;  %v1800_v54 = vld [vmem:[%s1966_s2 + $0x78] sm:$0xff]  }
  0x27   : > { %v1516_v24 = vld [vmem:[%s1955_s16] ss:$0 sm:$0xff]  ;;  %v1801_v55 = vld [vmem:[%s1966_s2 + $0x70] sm:$0xff]   ;;  %v1802_v58 = vld [vmem:[%s1966_s2 + $0x68] sm:$0xff]  }
  0x28   : > { %v1997_v9 = vmul.f32 %v1515_v4, %v583_v7  ;;  %1659 = vmatpush3.bf16.msra.mxu1 %v1784_v10  ;;  %v1798_v34 = vld [vmem:[%s1971_s28] sm:$0xff]   ;;  %v1804_v63 = vld [vmem:[%s1966_s2 + $0x58] sm:$0xff]   ;;  %v1805_v0 = vld [vmem:[%s1966_s2 + $0x50] sm:$0xff]  }
  0x29   : > { %1660 = vmatprep.subr.bf16.mxu1 %v1849_v3  ;;  %v1519_v35 = vld [vmem:[%s1961_s1] ss:$0 sm:$0xff]  ;;  %v1806_v2 = vld [vmem:[%s1966_s2 + $0x48] sm:$0xff]   ;;  %v1808_v5 = vld [vmem:[%s1971_s28 + $0x78] sm:$0xff]  }
  0x2a   : > { %v592_v11 = vpack.c.bf16 %v1997_v9, %v1997_v9  ;;  %v1528_v44 = vld [vmem:[%s1976_s15] ss:$0 sm:$0xff]  ;;  %v1809_v6 = vld [vmem:[%s1971_s28 + $0x70] sm:$0xff]   ;;  %v1810_v7 = vld [vmem:[%s1971_s28 + $0x68] sm:$0xff]  }
  0x2b   : > { %v1803_v61 = vld [vmem:[%s1966_s2 + $0x60] sm:$0xff]   ;;  %v1813_v10 = vld [vmem:[%s1971_s28 + $0x50] sm:$0xff]  }
  0x2c   : > { %1653 = vmatmul.mubr.msk.bf16.vlgmr.msra.gmra.mxu0 %vm608_vm3, %v592_v11  ;;  %1661 = vmatpush3.bf16.msra.mxu1 %v1785_v12  ;;  %v1807_v4 = vld [vmem:[%s1966_s2 + $0x40] sm:$0xff]  }
  0x2d   : > { %1692 = vmatprep.mubr.msk.bf16.mxu0 %vm1850_vm2, %v1849_v3  ;;  %1662 = vmatprep.subr.bf16.mxu1 %v1849_v3  ;;  %v1811_v8 = vld [vmem:[%s1971_s28 + $0x60] sm:$0xff]  }
  0x2e   : > { %1677 = vmatpush3.bf16.msra.mxu0 %v1791_v18  ;;  %v1540_v11 = vld [vmem:[%s1955_s16 + $0x1] ss:$0 sm:$0xff] }
  0x2f   : > { %1678 = vmatprep.subr.bf16.mxu0 %v1849_v3 }
  0x30   : > { %1663 = vmatpush3.bf16.msra.mxu1 %v1786_v13 }
  0x31   : > { %1664 = vmatprep.subr.bf16.mxu1 %v1849_v3 }
  0x32   : > { %1679 = vmatpush3.bf16.msra.mxu0 %v1792_v19 }
  0x33   : > { %1680 = vmatprep.subr.bf16.mxu0 %v1849_v3 }
  0x34   : > { %1665 = vmatpush3.bf16.msra.mxu1 %v1787_v14 }
  0x35   : > { %1666 = vmatprep.subr.bf16.mxu1 %v1849_v3 }
  0x36   : > { %1681 = vmatpush3.bf16.msra.mxu0 %v1793_v20  ;;  %v1814_v20 = vld [vmem:[%s1971_s28 + $0x48] sm:$0xff]  }
  0x37   : > { %1682 = vmatprep.subr.bf16.mxu0 %v1849_v3 }
  0x38   : > { %1667 = vmatpush3.bf16.msra.mxu1 %v1788_v15 }
  0x39   : > { %1668 = vmatprep.subr.bf16.mxu1 %v1849_v3 }
  0x3a   : > { %1683 = vmatpush3.bf16.msra.mxu0 %v1794_v21  ;;  %v1815_v21 = vld [vmem:[%s1971_s28 + $0x40] sm:$0xff]  }
  0x3b   : > { %1684 = vmatprep.subr.bf16.mxu0 %v1849_v3 }
  0x3c   : > { %1669 = vmatpush3.bf16.msra.mxu1 %v1789_v16 }
  0x3d   : > { %1670 = vmatprep.subr.bf16.mxu1 %v1849_v3 }
  0x3e   : > { %1685 = vmatpush3.bf16.msra.mxu0 %v1795_v22  ;;  %v1560_v22 = vld [vmem:[%s1961_s1 + $0x1] ss:$0 sm:$0xff] }
  0x3f   : > { %1686 = vmatprep.subr.bf16.mxu0 %v1849_v3 }
  0x40   : > { %1671 = vmatpush3.bf16.msra.mxu1 %v1790_v17 }
  0x41   : > { %1696 = vmatprep.subr.bf16.mxu1 %v1849_v3 }
  0x42   : > { %1687 = vmatpush3.bf16.msra.mxu0 %v1796_v23 }
  0x43   : > { %1688 = vmatprep.subr.bf16.mxu0 %v1849_v3 }
  0x46   : > { %1689 = vmatpush3.bf16.msra.mxu0 %v1797_v33 }
  0x47   : > { %1690 = vmatprep.subr.bf16.mxu0 %v1849_v3 }
  0x4a   : > { %1691 = vmatpush3.bf16.msra.mxu0 %v1798_v34 }
  0x4b   : > { %1702 = vmatprep.subr.bf16.mxu0 %v1849_v3 }
  0xec   : > { %v646_v25 = vpop.f32.mrf.mxu0 }
  0xed   : > { %v647_v26 = vadd.f32 %v1516_v24, %v646_v25 }
  0xee   : > { %v1654_v27 = vpop.f32.mrf.mxu0 }
  0xef   : > { %vm652_vm4 = vcmp.gt.f32.partialorder %v647_v26, 0.0  ;;  %v653_v28 = vmul.f32 0.01, %v647_v26 }
  0xf0   : > { %v649_v29 = vpop.f32.mrf.mxu0 }
  0xf1   : > { %v654_v30 = vsel %vm652_vm4, %v647_v26, %v653_v28 }
  0xf2   : > { %v1655_v31 = vpop.f32.mrf.mxu0  ;;  %v655_v32 = vpack.c.bf16 %v654_v30, %v654_v30 }
  0xf3   : > { %v1586_v31 = vld [vmem:[%s1976_s15 + $0x1] ss:$0 sm:$0xff] }
  0xf4   : > { %1673 = vmatmul.mubr.bf16.vlgmr.msra.gmra.mxu1 %v655_v32 }
  0xf5   : > { %1698 = vmatprep.mubr.msk.bf16.mxu1 %vm1850_vm2, %v1849_v3  ;;  %1697 = vmatpush3.bf16.msra.mxu1 %v1799_v52 }
  0xf6   : > { %1722 = vmatprep.subr.bf16.mxu1 %v1849_v3 }
 0x1b4   : > { %v761_v36 = vpop.f32.mrf.mxu1 }
 0x1b5   : > { %v762_v37 = vadd.f32 %v1519_v35, %v761_v36 }
 0x1b6   : > { %v1674_v38 = vpop.f32.mrf.mxu1 }
 0x1b7   : > { %vm767_vm5 = vcmp.gt.f32.partialorder %v762_v37, 0.0  ;;  %v768_v39 = vmul.f32 0.01, %v762_v37  ;;  %v1220_v38 = vld [vmem:[%s1982_s23 + $0x18] sm:$0xff] }
 0x1b8   : > { %v764_v40 = vpop.f32.mrf.mxu1 }
 0x1b9   : > { %v769_v41 = vsel %vm767_vm5, %v762_v37, %v768_v39  ;;  %v1219_v39 = vld [vmem:[%s1982_s23 + $0x10] sm:$0xff]  ;;  %v1218_v40 = vld [vmem:[%s1982_s23 + $0x8] sm:$0xff] }
 0x1ba   : > { %v770_v42 = vpack.c.bf16 %v769_v41, %v769_v41  ;;  %v1675_v43 = vpop.f32.mrf.mxu1  ;;  %v1217_v41 = vld [vmem:[%s1982_s23] sm:$0xff] }
 0x1bc   : > { %1693 = vmatmul.mubr.bf16.vlgmr.msra.gmra.mxu0 %v770_v42 }
 0x1bd   : > { %1718 = vmatprep.mubr.msk.bf16.mxu0 %vm1850_vm2, %v1849_v3  ;;  %1703 = vmatpush3.bf16.msra.mxu0 %v1800_v54 }
 0x1be   : > { %1704 = vmatprep.subr.bf16.mxu0 %v1849_v3 }
 0x1c1   : > { %1705 = vmatpush3.bf16.msra.mxu0 %v1801_v55 }
 0x1c2   : > { %1706 = vmatprep.subr.bf16.mxu0 %v1849_v3 }
 0x1c5   : > { %1707 = vmatpush3.bf16.msra.mxu0 %v1802_v58 }
 0x1c6   : > { %1708 = vmatprep.subr.bf16.mxu0 %v1849_v3 }
 0x1c9   : > { %1709 = vmatpush3.bf16.msra.mxu0 %v1803_v61 }
 0x1ca   : > { %1710 = vmatprep.subr.bf16.mxu0 %v1849_v3 }
 0x1cd   : > { %1711 = vmatpush3.bf16.msra.mxu0 %v1804_v63 }
 0x1ce   : > { %1712 = vmatprep.subr.bf16.mxu0 %v1849_v3 }
 0x1d1   : > { %1713 = vmatpush3.bf16.msra.mxu0 %v1805_v0 }
 0x1d2   : > { %1714 = vmatprep.subr.bf16.mxu0 %v1849_v3 }
 0x1d5   : > { %1715 = vmatpush3.bf16.msra.mxu0 %v1806_v2 }
 0x1d6   : > { %1716 = vmatprep.subr.bf16.mxu0 %v1849_v3 }
 0x1d9   : > { %1717 = vmatpush3.bf16.msra.mxu0 %v1807_v4 }
 0x1da   : > { %1742 = vmatprep.subr.mxu0 %v1849_v3 }
 0x27c   : > { %v876_v45 = vpop.f32.mrf.mxu0 }
 0x27d   : > { %v877_v46 = vadd.f32 %v1528_v44, %v876_v45 }
 0x27e   : > { %v1694_v47 = vpop.f32.mrf.mxu0 }
 0x27f   : > { %1816 = vtanh.f32 %v877_v46 }
 0x280   : > { %v879_v48 = vpop.f32.mrf.mxu0 }
 0x282   : > { %v1695_v49 = vpop.f32.mrf.mxu0 }
 0x28c   : > { %v2042_v50 = vpop.eup %1816 }
 0x28d   : > { %v883_v51 = vmul.f32 1.442695, %v2042_v50  ;;  %v892_v37 = vsel %vm891_vm8, %v2042_v50, 0.0 }
 0x28f   : > { %1818 = vpow2.f32 %v883_v51  ;;  %v591_v51 = vld [vmem:[#allocation3] sm:$0x3] }
 0x29c   : > { %v1819_v53 = vpop.eup %1818 }
 0x29d   : > { %886 = vrot.lane.b32.xlu0 %v1819_v53, %s1851_s3 }
 0x30f   : > { %v887_v56 = vpop.permute.xlu0 %886 }
 0x310   : > { %v889_v57 = vmul.f32 %v887_v56, %v1997_v9 }
 0x312   : > { %v890_v59 = vadd.f32 %v889_v57, %v877_v46 }
 0x314   : > { %v2056_v60 = vsel %vm608_vm3, %v1997_v9, %v890_v59  ;;  %v1812_v9 = vld [vmem:[%s1971_s28 + $0x58] sm:$0xff]  }
 0x315   : > { %v897_v62 = vpack.c.bf16 %v2056_v60, %v2056_v60 }
 0x317   : > { %910 = vrot.lane.b32.xlu0 %v897_v62, %s1852_s4 }
 0x389   : > { %v911_v1 = vpop.permute.xlu0 %910 }
 0x38a   : > { %1699 = vmatmul.mubr.msk.bf16.vlgmr.msra.gmra.mxu1 %vm608_vm3, %v911_v1 }
 0x38b   : > { %1738 = vmatprep.mubr.msk.bf16.mxu1 %vm1850_vm2, %v1849_v3  ;;  %1723 = vmatpush3.bf16.msra.mxu1 %v1808_v5 }
 0x38c   : > { %1724 = vmatprep.subr.bf16.mxu1 %v1849_v3 }
 0x38f   : > { %1725 = vmatpush3.bf16.msra.mxu1 %v1809_v6 }
 0x390   : > { %1726 = vmatprep.subr.bf16.mxu1 %v1849_v3 }
 0x393   : > { %1727 = vmatpush3.bf16.msra.mxu1 %v1810_v7 }
 0x394   : > { %1728 = vmatprep.subr.bf16.mxu1 %v1849_v3 }
 0x397   : > { %1729 = vmatpush3.bf16.msra.mxu1 %v1811_v8 }
 0x398   : > { %1730 = vmatprep.subr.bf16.mxu1 %v1849_v3 }
 0x39b   : > { %1731 = vmatpush3.bf16.msra.mxu1 %v1812_v9 }
 0x39c   : > { %1732 = vmatprep.subr.bf16.mxu1 %v1849_v3 }
 0x39f   : > { %1733 = vmatpush3.bf16.msra.mxu1 %v1813_v10 }
 0x3a0   : > { %1734 = vmatprep.subr.bf16.mxu1 %v1849_v3 }
 0x3a3   : > { %1735 = vmatpush3.bf16.msra.mxu1 %v1814_v20 }
 0x3a4   : > { %1736 = vmatprep.subr.bf16.mxu1 %v1849_v3 }
 0x3a7   : > { %1737 = vmatpush3.bf16.msra.mxu1 %v1815_v21 }
 0x44a   : > { %v955_v12 = vpop.f32.mrf.mxu1 }
 0x44b   : > { %v956_v13 = vadd.f32 %v1540_v11, %v955_v12 }
 0x44c   : > { %v1700_v14 = vpop.f32.mrf.mxu1 }
 0x44d   : > { %vm961_vm6 = vcmp.gt.f32.partialorder %v956_v13, 0.0  ;;  %v962_v15 = vmul.f32 0.01, %v956_v13 }
 0x44e   : > { %v958_v16 = vpop.f32.mrf.mxu1 }
 0x44f   : > { %v963_v17 = vsel %vm961_vm6, %v956_v13, %v962_v15 }
 0x450   : > { %v964_v18 = vpack.c.bf16 %v963_v17, %v963_v17  ;;  %v1701_v19 = vpop.f32.mrf.mxu1 }
 0x452   : > { %1719 = vmatmul.mubr.bf16.vlgmr.msra.gmra.mxu0 %v964_v18 }
 0x453   : > { %1750 = vmatprep.mubr.msk.f32.mxu0 %vm1850_vm2, %v1849_v3  ;;  %1743 = vmatpush3.msra.mxu0 %v1220_v38 }
 0x454   : > { %1744 = vmatprep.subr.mxu0 %v1849_v3 }
 0x455   : > { %1745 = vmatpush3.msra.mxu0 %v1219_v39 }
 0x456   : > { %1746 = vmatprep.subr.mxu0 %v1849_v3 }
 0x457   : > { %1747 = vmatpush3.msra.mxu0 %v1218_v40 }
 0x458   : > { %1748 = vmatprep.subr.mxu0 %v1849_v3 }
 0x459   : > { %1749 = vmatpush3.msra.mxu0 %v1217_v41 }
 0x512   : > { %v1072_v23 = vpop.f32.mrf.mxu0 }
 0x513   : > { %v1073_v24 = vadd.f32 %v1560_v22, %v1072_v23 }
 0x514   : > { %v1720_v25 = vpop.f32.mrf.mxu0 }
 0x515   : > { %vm1078_vm7 = vcmp.gt.f32.partialorder %v1073_v24, 0.0  ;;  %v1079_v26 = vmul.f32 0.01, %v1073_v24 }
 0x516   : > { %v1075_v27 = vpop.f32.mrf.mxu0 }
 0x517   : > { %v1080_v28 = vsel %vm1078_vm7, %v1073_v24, %v1079_v26 }
 0x518   : > { %v1081_v29 = vpack.c.bf16 %v1080_v28, %v1080_v28  ;;  %v1721_v30 = vpop.f32.mrf.mxu0 }
 0x51a   : > { %1739 = vmatmul.mubr.bf16.vlgmr.msra.gmra.mxu1 %v1081_v29 }
 0x5da   : > { %v1189_v32 = vpop.f32.mrf.mxu1 }
 0x5db   : > { %v1190_v33 = vadd.f32 %v1586_v31, %v1189_v32 }
 0x5dc   : > { %v1740_v34 = vpop.f32.mrf.mxu1 }
 0x5dd   : > { %1200 = vrot.lane.b32.xlu1 %v1190_v33, %s1852_s4  ;;  %1820 = vtanh.f32 %v1190_v33 }
 0x5de   : > { %v1192_v35 = vpop.f32.mrf.mxu1 }
 0x5e0   : > { %v1741_v36 = vpop.f32.mrf.mxu1 }
 0x5e1   : > { %1209 = vrot.lane.b32.xlu1 %v2056_v60, %s1852_s4 }
 0x5ea   : > { %v1821_v42 = vpop.eup %1820 }
 0x5eb   : > { %v1196_v43 = vmul.f32 1.442695, %v1821_v42  ;;  %v1204_v48 = vsel %vm891_vm8, %v1821_v42, 0.0 }
 0x5ed   : > { %1822 = vpow2.f32 %v1196_v43 }
 0x5fa   : > { %v1823_v44 = vpop.eup %1822 }
 0x5fb   : > { %v1198_v45 = vmul.f32 %v1823_v44, %v2056_v60 }
 0x605   : > { %893 = vadd.xlane.f32.xlu1 %v892_v37 }
 0x64f   : > { %v1201_v46 = vpop.permute.xlu1 %1200 }
 0x650   : > { %v1203_v47 = vadd.f32 %v1201_v46, %v1198_v45 }
 0x652   : > { %1213 = vrot.lane.b32.xlu0 %v1203_v47, %s1851_s3 }
 0x653   : > { %v1210_v49 = vpop.permute.xlu1 %1209 }
 0x671   : > { %1205 = vadd.xlane.f32.xlu0 %v1204_v48 }
 0x68e   : > { %v894_v52 = vpop.xlane.xlu1 %893 }
 0x68f   : > { %v895_v53 = vadd.f32 %v894_v52, %v591_v51 }
 0x6c4   : > { %v1214_v50 = vpop.permute.xlu0 %1213 }
 0x6c5   : > { %v1216_v3 = vsel %vm608_vm3, %v1210_v49, %v1214_v50 }
 0x6c6   : > { %1751 = vmatmul.mubr.msk.f32.vlgmr.msra.gmra.mxu0 %vm1221_vm9, %v1216_v3 }
 0x6fa   : > { %v1206_v54 = vpop.xlane.xlu0 %1205 }
 0x6fb   : > { %v1207_v55 = vadd.f32 %v1206_v54, %v895_v53 }
 0x6fd   : > { %1298 = vst.msk [vmem:[#allocation3] sm:$0x3] %vm1297_vm10, %v1207_v55 }
 0x784   : > { %1302 = sbr.rel (%p1596_p6) target bundleno = 1931 (0x78b), region = 68 }
 0x786   : > { %v1291_v56 = vpop.f32.mrf.mxu0 }
 0x787   : > { %1296 = vst.msk [vmem:[#allocation2] sm:$0x3] %vm1295_vm11, %v1291_v56 }
 0x788   : > { %v1752_v57 = vpop.f32.mrf.mxu0 }
 0x789   : > { %1303 = vst.msk [vmem:[%s2137_s10] sm:$0x3] %vm1295_vm11, %v1291_v56 }
 0x78a   : > { %1304 = vst.msk [vmem:[%s2138_s11] sm:$0x3] %vm1297_vm10, %v1207_v55 }
 0x78b PF: > { %s22_s19 = sadd.s32 1, %s1846_s19   ;;  %s2150_s17 = sld [smem:[#allocation4_spill]] }
 0x78c   : > { %p19_p7 = scmp.ge.s32.totalorder %s22_s19, 4   ;;  %s2151_s18 = sld [smem:[#allocation5_spill]] }
 0x78e   :  { %21 = sbr.rel (!%p19_p7) target bundleno = 5 (0x5), region = 143 }

// kernel: forward.3
= control target key start
LH: loop header
LB: loop body
LE: loop exit
PB: predicated region body
PF: predicated region fallthrough
CT: control target
= control target key end

     0   :  { %s3005_s0 = inlined_call_operand.hbm [shape: f32[2,48], index: 0, kind: input, shape index: {}]   ;;  %s3006_s1 = inlined_call_operand.vmem [shape: f32[2,1,48], index: 1, kind: input, shape index: {}]   ;;  %s3007_s2 = inlined_call_operand.vmem [shape: f32[2,1,48], index: 2, kind: input, shape index: {}]   ;;  %s3008_s3 = inlined_call_operand.hbm [shape: bf16[2,2,24,192], index: 3, kind: input, shape index: {}]   ;;  %s3009_s4 = inlined_call_operand.vmem [shape: f32[2,2,1,192], index: 4, kind: input, shape index: {}]   ;;  %s3010_s5 = inlined_call_operand.hbm [shape: bf16[2,2,192,192], index: 5, kind: input, shape index: {}]   ;;  %s3011_s6 = inlined_call_operand.vmem [shape: f32[2,2,1,192], index: 6, kind: input, shape index: {}]   ;;  %s3012_s7 = inlined_call_operand.hbm [shape: bf16[2,2,192,48], index: 7, kind: input, shape index: {}]   ;;  %s3013_s8 = inlined_call_operand.vmem [shape: f32[2,2,1,48], index: 8, kind: input, shape index: {}]   ;;  %s3014_s9 = inlined_call_operand.hbm [shape: f32[2,48,48], index: 9, kind: input, shape index: {}]   ;;  %s3015_s10 = inlined_call_operand.vmem [shape: f32[2,48], index: 10, kind: output, shape index: {0}]   ;;  %s3016_s11 = inlined_call_operand.vmem [shape: f32[2,1], index: 11, kind: output, shape index: {1}]  }
   0x1   :  { %3028 = sst [smem:[#allocation18_spill]] %s3005_s0 }
   0x2   :  { %3029 = sst [smem:[#allocation19_spill]] %s3006_s1 }
   0x3   :  { %3030 = sst [smem:[#allocation20_spill]] %s3008_s3 }
   0x4   :  { %3031 = sst [smem:[#allocation21_spill]] %s3011_s6 }
   0x5   :  { %3032 = sst [smem:[#allocation22_spill]] %s3012_s7 }
   0x6   :  { %3033 = sst [smem:[#allocation23_spill]] %s3013_s8 }
   0x7   :  { %3034 = sst [smem:[#allocation24_spill]] %s3015_s10 }
   0x8   :  { %3035 = sst [smem:[#allocation25_spill]] %s3016_s11 }
   0x9   :  { %17 = vsyncpa [#allocation5], 0 }
   0xa   :  { %18 = vsyncpa [#allocation7], 0 }
   0xb   :  { %20 = vsyncpa [#allocation7 + $0x1], 0 }
   0xc   :  { %21 = vsyncpa [#allocation10], 0 }
   0xd   :  { %23 = vsyncpa [#allocation10 + $0x1], 0  ;;  %s2600_s17 = smov 0   ;;  %s2602_s18 = smov 0  }
   0xe   :  { %s2604_s19 = smov 0   ;;  %s2606_s20 = smov 0  }
   0xf   :  { %s2608_s21 = smov 0   ;;  %s2610_s22 = smov 0  }
  0x10 LB: > { %3036 = sst [smem:[#allocation15_spill]] %s2511_s19  ;;  %s38_s23 = sadd.s32 1, %s2519_s21  ;;  %s2523_s22 = sphi %s2610_s22, %s29_s22   ;;  %s2519_s21 = sphi %s2608_s21, %s3066_s21   ;;  %s2515_s20 = sphi %s2606_s20, %s3065_s20   ;;  %s2511_s19 = sphi %s2604_s19, %s3061_s19   ;;  %s2507_s18 = sphi %s2602_s18, %s3064_s18   ;;  %s2503_s17 = sphi %s2600_s17, %s3063_s17  }
  0x11   : > { %s126_s24 = sadd.s32 1, %s2511_s19  ;;  %p39_p0 = scmp.ge.s32.totalorder %s38_s23, 2 }
  0x12   : > { %p133_p1 = scmp.ne.s32.totalorder %s2511_s19, %s2507_s18  ;;  %p134_p2 = scmp.eq.s32.totalorder %s2523_s22, 0 }
  0x13   : > { %s3068_s23 = smov (%p39_p0, %s38_s23), 0  ;;  %p2152_p4 = scmp.lt.s32.totalorder %s2523_s22, 2 }
  0x14   : > { %3037 = sst [smem:[#allocation16_spill]] %s3068_s23  ;;  %p135_p3 = por %p134_p2, %p133_p1 }
  0x15   : > { %s123_s25 = ssub.s32 %s2519_s21, %s3068_s23  ;;  %s3020_s26 = sand.u32 1, %s2523_s22  }
  0x16   : > { %p124_p5 = scmp.eq.s32.totalorder %s123_s25, 0  ;;  %s2642_s27 = sand.u32 1, %s2511_s19  }
  0x17   : > { %s3018_s28 = smul.u32 768, %s2519_s21  ;;  %s3039_s3 = sld [smem:[#allocation20_spill]] }
  0x18   : > { %s2646_s29 = scalar_select %p124_p5, %s2511_s19, %s126_s24  }
  0x19   : > { %s3019_s30 = smul.u32 48, %s2642_s27  ;;  %p2654_p6 = pnand %p2152_p4, %p135_p3 }
  0x1a   : > { %3038 = sst [smem:[#allocation17_spill]] %s2646_s29  ;;  %s2662_s23 = scalar_lea.sflag [#allocation7], %s3020_s26 }
  0x1b   : > { %s400_s16 = scalar_lea.vmem [#allocation6], %s3019_s30  ;;  %p3027_p7 = pneg %p2654_p6 }
  0x1c   : > { %s407_s25 = sshll.u32 %s400_s16, 4  ;;  %s2525_s12 = smov [#allocation6]   ;;  %s408_s25 = int_to_ptr.vmem [resolvable:$true] %s407_s25 }
  0x1d   : > { %s406_s14 = scalar_lea.hbm %s3039_s3, %s3018_s28  ;;  %s2340_s24 = scalar_lea.vmem %s408_s25, 768 }
  0x1e   : > { %p2341_p8 = scmp.ne.s32.totalorder %s408_s25, %s2340_s24  ;;  %s2345_s13 = sshll.u32 %s2525_s12, 4  ;;  %s2346_s13 = int_to_ptr.vmem [resolvable:$false] %s2345_s13 }
  0x1f   : > { %s2347_s28 = scalar_lea.vmem %s2346_s13, 1536  ;;  %p2348_p11 = scmp.lt.s32.totalorder %s408_s25, %s2346_s13 }
  0x20   : > { %p2343_p9 = pnand %p2341_p8, %p3027_p7  ;;  %p2349_p12 = scmp.lt.s32.totalorder %s2347_s28, %s2340_s24 }
  0x22   : > { %p2344_p10 = pneg %p2343_p9  ;;  %p2350_p13 = por %p2349_p12, %p2348_p11 }
  0x24   : > { %p2351_p0 = pnand %p2350_p13, %p2344_p10 }
  0x26   : > { %2354 = shalt.err (!%p2351_p0)
}
  0x27   : > { %s3023_s16 = smov 128   ;;  %s3025_s30 = smov 8  }
  0x28   : > { %2141 = dma.hbm_to_vmem [thread:$0]  (!%p2654_p6), %s406_s14, 768, %s408_s25, %s2662_s23, %s3023_s16, %s3023_s16, %s3025_s30  }
  0x29   : > { %s2115_s12 = smul.u32 192, %s2642_s27  ;;  %s3041_s7 = sld [smem:[#allocation22_spill]] }
  0x2a   : > { %s2116_s26 = smul.u32 3072, %s2519_s21  ;;  %s3042_s19 = sand.u32 1, %s2523_s22  }
  0x2b   : > { %s456_s3 = scalar_lea.vmem [#allocation9], %s2115_s12  ;;  %s2682_s11 = scalar_lea.sflag [#allocation10], %s3042_s19 }
  0x2c   : > { %s463_s29 = sshll.u32 %s456_s3, 4  ;;  %s2528_s8 = smov [#allocation9]   ;;  %s464_s29 = int_to_ptr.vmem [resolvable:$true] %s463_s29 }
  0x2d   : > { %s2368_s10 = scalar_lea.vmem %s464_s29, 3072  ;;  %s2373_s14 = sshll.u32 %s2528_s8, 4  ;;  %s2374_s14 = int_to_ptr.vmem [resolvable:$false] %s2373_s14 }
  0x2e   : > { %p2369_p1 = scmp.ne.s32.totalorder %s464_s29, %s2368_s10  ;;  %s2375_s25 = scalar_lea.vmem %s2374_s14, 6144 }
  0x2f   : > { %s462_s24 = scalar_lea.hbm %s3041_s7, %s2116_s26  ;;  %p2376_p4 = scmp.lt.s32.totalorder %s464_s29, %s2374_s14 }
  0x30   : > { %p2371_p2 = pnand %p2369_p1, %p3027_p7  ;;  %p2377_p5 = scmp.lt.s32.totalorder %s2375_s25, %s2368_s10 }
  0x32   : > { %p2372_p3 = pneg %p2371_p2  ;;  %p2378_p8 = por %p2377_p5, %p2376_p4 }
  0x34   : > { %p2379_p9 = pnand %p2378_p8, %p2372_p3 }
  0x36   : > { %2382 = shalt.err (!%p2379_p9)
}
  0x37   : > { %s2529_s3 = smov 64   ;;  %s2530_s19 = smov 4  }
  0x38   : > { %2147 = dma.hbm_to_vmem [thread:$0]  (!%p2654_p6), %s462_s24, 3072, %s464_s29, %s2682_s11, %s2529_s3, %s2529_s3, %s2530_s19  }
  0x39   : > { %s3022_s8 = sadd.s32 4294967295, %s2523_s22   ;;  %p139_p10 = scmp.ne.s32.totalorder %s2507_s18, %s2503_s17 }
  0x3a   : > { %p2695_p11 = scmp.eq.s32.totalorder %s3022_s8, 0  ;;  %p1924_p12 = scmp.ge.s32.totalorder %s2523_s22, 1 }
  0x3b   : > { %p358_p13 = scmp.lt.s32.totalorder %s2523_s22, 3  ;;  %s2531_s17 = smov [#allocation4]  }
  0x3c   : > { %p2703_p0 = por %p2695_p11, %p139_p10  ;;  %s373_s29 = sshll.u32 %s2531_s17, 4  ;;  %s374_s29 = int_to_ptr.vmem [resolvable:$true] %s373_s29 }
  0x3d   : > { %p2707_p1 = pnand %p1924_p12, %p358_p13  ;;  %s2113_s13 = smul.u32 384, %s2642_s27 }
  0x3e   : > { %s2114_s28 = smul.u32 6144, %s2519_s21  ;;  %s2394_s6 = scalar_lea.vmem %s374_s29, 32 }
  0x3f   : > { %p2134_p2 = pneg %p2707_p1  ;;  %s428_s19 = scalar_lea.vmem [#allocation8], %s2113_s13 }
  0x40   : > { %s2724_s3 = scalar_lea.hbm %s3010_s5, %s2114_s28  ;;  %s435_s8 = sshll.u32 %s428_s19, 4  ;;  %s2733_s8 = int_to_ptr.vmem [resolvable:$true] %s435_s8 }
  0x41   : > { %p2717_p3 = pnand %p2134_p2, %p2695_p11  ;;  %s3047_s16 = smul.u32 768, %s2519_s21 }
  0x42   : > { %p2395_p5 = scmp.ne.s32.totalorder %s374_s29, %s2394_s6  ;;  %p2402_p10 = scmp.lt.s32.totalorder %s374_s29, %s374_s29 }
  0x43   : > { %s2731_s7 = scalar_lea.hbm %s3014_s9, %s3047_s16  ;;  %p2385_p4 = pneg %p2717_p3 }
  0x44   : > { %p2403_p12 = scmp.lt.s32.totalorder %s2394_s6, %s2394_s6 }
  0x45   : > { %p2397_p8 = pnand %p2395_p5, %p2385_p4 }
  0x46   : > { %p2404_p13 = por %p2403_p12, %p2402_p10 }
  0x47   : > { %p2398_p9 = pneg %p2397_p8 }
  0x49   : > { %p2405_p2 = pnand %p2404_p13, %p2398_p9 }
  0x4b   : > { %2408 = shalt.err (!%p2405_p2)
}
  0x4c   : > { %s3048_s0 = sld [smem:[#allocation18_spill]]  ;;  %s2422_s30 = scalar_lea.vmem %s2733_s8, 6144 }
  0x4d   : > { %p2423_p7 = scmp.ne.s32.totalorder %s2733_s8, %s2422_s30  ;;  %p3049_p4 = pneg %p2654_p6 }
  0x4e   : > { %s2532_s6 = smov [#allocation8]  }
  0x4f   : > { %p2425_p5 = pnand %p2423_p7, %p3049_p4  ;;  %s2427_s16 = sshll.u32 %s2532_s6, 4  ;;  %s2428_s16 = int_to_ptr.vmem [resolvable:$false] %s2427_s16 }
  0x50   : > { %s2429_s14 = scalar_lea.vmem %s2428_s16, 12288  ;;  %p2430_p9 = scmp.lt.s32.totalorder %s2733_s8, %s2428_s16 }
  0x51   : > { %p2426_p8 = pneg %p2425_p5  ;;  %p2431_p10 = scmp.lt.s32.totalorder %s2429_s14, %s2422_s30 }
  0x52   : > { %2137 = dma.hbm_to_vmem [thread:$0]  (!%p2717_p3), %s3048_s0, 32, %s374_s29, [#allocation5]  }
  0x53   : > { %p2432_p12 = por %p2431_p10, %p2430_p9 }
  0x55   : > { %p2433_p13 = pnand %p2432_p12, %p2426_p8 }
  0x57   : > { %2436 = shalt.err (!%p2433_p13)
}
  0x58   : > { %s3050_s24 = smov 8   ;;  %s3051_s25 = smov 128  }
  0x59   : > { %2144 = dma.hbm_to_vmem [thread:$0]  (!%p2654_p6), %s2724_s3, 6144, %s2733_s8, %s2662_s23, %s3051_s25, %s3051_s25, %s3050_s24  }
  0x5a   : > { %s3052_s29 = smul.u32 48, %s2642_s27  ;;  %p3053_p3 = pmov %p3049_p4 }
  0x5b   : > { %s2533_s28 = smov [#allocation11]  }
  0x5c   : > { %s484_s19 = scalar_lea.vmem [#allocation11], %s3052_s29  ;;  %s2455_s30 = sshll.u32 %s2533_s28, 4  ;;  %s2456_s30 = int_to_ptr.vmem [resolvable:$false] %s2455_s30 }
  0x5d   : > { %s491_s17 = sshll.u32 %s484_s19, 4  ;;  %s2457_s6 = scalar_lea.vmem %s2456_s30, 1536  ;;  %s492_s17 = int_to_ptr.vmem [resolvable:$true] %s491_s17 }
  0x5e   : > { %s2450_s13 = scalar_lea.vmem %s492_s17, 768  ;;  %p2458_p5 = scmp.lt.s32.totalorder %s492_s17, %s2456_s30 }
  0x5f   : > { %p2451_p7 = scmp.ne.s32.totalorder %s492_s17, %s2450_s13  ;;  %p2459_p8 = scmp.lt.s32.totalorder %s2457_s6, %s2450_s13 }
  0x61   : > { %p2453_p2 = pnand %p2451_p7, %p3053_p3  ;;  %p2460_p9 = por %p2459_p8, %p2458_p5 }
  0x63   : > { %p2454_p4 = pneg %p2453_p2 }
  0x65   : > { %p2461_p10 = pnand %p2460_p9, %p2454_p4 }
  0x67   : > { %2464 = shalt.err (!%p2461_p10)
}
  0x68   : > { %2150 = dma.hbm_to_vmem [thread:$0]  (!%p2654_p6), %s2731_s7, 768, %s492_s17, %s2682_s11, %s3051_s25, %s3051_s25, %s3050_s24  }
  0x69   : > { %503 = sbr.rel (%p2707_p1) target bundleno = 2047 (0x7ff), region = 60 }
  0x6e   : > { %2490 = dma.done.wait (%p2695_p11), [#allocation5], 32  }
  0x6f   : > { %2492 = vsyncadd (%p2695_p11), [#allocation5], 4294967264  ;;  %s3054_s23 = sadd.s32 4294967295, %s2523_s22   ;;  %s511_s15 = sand.u32 1, %s2507_s18  }
  0x70   : > { %s509_s27 = sand.u32 1, %s3054_s23   ;;  %s2119_s8 = smul.u32 48, %s511_s15 }
  0x71   : > { %s510_s3 = scalar_lea.sflag [#allocation7], %s509_s27 }
  0x72   : > { %s2777_s16 = scalar_lea.vmem [#allocation6], %s2119_s8 }
  0x73   : > { %2494 = dma.done.wait (%p2703_p0), %s510_s3, 6912  }
  0x74   : > { %2496 = vsyncadd (%p2703_p0), %s510_s3, 4294960384  ;;  %s2120_s7 = smul.u32 384, %s511_s15  ;;  %s528_s12 = scalar_lea.sflag [#allocation10], %s509_s27 }
  0x75   : > { %s2121_s11 = smul.u32 192, %s511_s15 }
  0x76   : > { %s2783_s10 = scalar_lea.vmem [#allocation8], %s2120_s7 }
  0x77   : > { %s2785_s14 = scalar_lea.vmem [#allocation9], %s2121_s11 }
  0x78   : > { %2498 = dma.done.wait (%p2703_p0), %s528_s12, 3840  }
  0x79   : > { %2500 = vsyncadd (%p2703_p0), %s528_s12, 4294963456  ;;  %p615_p6 = scmp.lt.s32.totalorder %s2515_s20, 1  ;;  %s3055_s1 = sld [smem:[#allocation19_spill]] }
  0x7a   : > { %s3056_s7 = sld [smem:[#allocation21_spill]]  ;;  %p1936_p11 = scmp.ne.s32.totalorder %s2515_s20, 0 }
  0x7b   : > { %s616_s24 = scalar_select %p615_p6, %s2515_s20, 1 }
  0x7c   : > { %s3057_s25 = sld [smem:[#allocation23_spill]] }
  0x7d   : > { %s620_s28 = scalar_lea.vmem %s3007_s2, %s616_s24  ;;  %s1933_s30 = sshll.u32 %s616_s24, 2 }
  0x7e   : > { %s1935_s6 = sshll.u32 %s616_s24, 1  ;;  %s2802_s15 = scalar_lea.vmem %s3009_s4, %s1933_s30 }
  0x7f   : > { %s617_s19 = scalar_lea.vmem %s3055_s1, %s616_s24  ;;  %s2814_s1 = scalar_lea.vmem [#allocation11], %s2119_s8 }
  0x80   : > { %s2807_s11 = scalar_lea.vmem %s3056_s7, %s1933_s30  ;;  %645 = sbr.rel (%p1936_p11) target bundleno = 136 (0x88), region = 84 }
  0x82   : > { %s2812_s29 = scalar_lea.vmem %s3057_s25, %s1935_s6 }
  0x85   : > { %v646_v0 = vld [vmem:[#allocation4] sm:$0x3]  ;;  %vm647_vm0 = vcmask 386048   ;;  %vm649_vm1 = vcmask 1024   ;;  %v2534_v1 = vmov 0.0  }
  0x86   : > { %648 = vst.msk [vmem:[#allocation2] sm:$0x3] %vm647_vm0, %v646_v0 }
  0x87   : > { %650 = vst.msk [vmem:[#allocation3] sm:$0x3] %vm649_vm1, %v2534_v1 }
  0x88 PF: > { %v672_v2 = vld [vmem:[%s2777_s16 + $0x10] sm:$0xff]  ;;  %vm704_vm2 = vcmask 1043456   ;;  %v2215_v5 = vld [vmem:[%s2777_s16 + $0x4] ss:$8 sps:$4 sm:$0xff]   ;;  %v2535_v6 = vmov 0   ;;  %vm700_vm3 = vcmask 195584   ;;  %v675_v48 = vlaneseq }
  0x89   : > { %v1942_v3 = vcombine.high %v672_v2, %v672_v2  ;;  %v1941_v4 = vcombine.low %v672_v2, %v672_v2  ;;  %743 = vmatprep.mubr.bf16.mxu0 %v2535_v6  ;;  %v1938_v7 = vld [vmem:[%s617_s19] ss:$0 sm:$0xff]  ;;  %v2218_v13 = vld [vmem:[%s2783_s10 + $0x74] ss:$8 sps:$4 sm:$0xff]   ;;  %v2221_v15 = vld [vmem:[%s2783_s10 + $0x64] ss:$8 sps:$4 sm:$0xff]  }
  0x8a   : > { %v2217_v8 = vld [vmem:[%s2777_s16] ss:$8 sps:$4 sm:$0xff]   ;;  %920 = vmatprep.subr.bf16.mxu1 %v2218_v13  ;;  %v2224_v19 = vld [vmem:[%s2783_s10 + $0x54] ss:$8 sps:$4 sm:$0xff]   ;;  %v2227_v21 = vld [vmem:[%s2783_s10 + $0x44] ss:$8 sps:$4 sm:$0xff]  }
  0x8b   : > { %v1937_v10 = vld [vmem:[%s620_s28] ss:$0 sm:$0xff]  ;;  %1943 = vmatprep.subr.msk.bf16.mxu0 %vm704_vm2, %v1942_v3  ;;  %v706_v11 = vsel %vm704_vm2, %v1941_v4, 0  ;;  %v2223_v17 = vld [vmem:[%s2783_s10 + $0x60] ss:$8 sps:$4 sm:$0xff]   ;;  %v2255_v40 = vld [vmem:[%s2785_s14 + $0x30] sm:$0xff]  }
  0x8c   : > { %v2220_v14 = vld [vmem:[%s2783_s10 + $0x70] ss:$8 sps:$4 sm:$0xff]   ;;  %724 = vmatpush1.bf16.msra.mxu0 %v706_v11  ;;  %v2229_v22 = vld [vmem:[%s2783_s10 + $0x40] ss:$8 sps:$4 sm:$0xff]   ;;  %v2230_v23 = vld [vmem:[%s2783_s10 + $0x34] ss:$8 sps:$4 sm:$0xff]  }
  0x8d   : > { %v652_v9 = vld [vmem:[#allocation2] sm:$0x3]  ;;  %725 = vmatprep.subr.bf16.mxu0 %v2215_v5  ;;  %921 = vmatpush1.bf16.msra.mxu1 %v2220_v14  ;;  %v2233_v25 = vld [vmem:[%s2783_s10 + $0x24] ss:$8 sps:$4 sm:$0xff]   ;;  %v2235_v26 = vld [vmem:[%s2783_s10 + $0x20] ss:$8 sps:$4 sm:$0xff]  }
  0x8e   : > { %v660_v12 = vadd.f32 %v1937_v10, %v652_v9  ;;  %922 = vmatprep.subr.bf16.mxu1 %v2221_v15  ;;  %v2226_v20 = vld [vmem:[%s2783_s10 + $0x50] ss:$8 sps:$4 sm:$0xff]   ;;  %v2236_v27 = vld [vmem:[%s2783_s10 + $0x14] ss:$8 sps:$4 sm:$0xff]   ;;  %v2239_v29 = vld [vmem:[%s2783_s10 + $0x4] ss:$8 sps:$4 sm:$0xff]  }
  0x8f   : > { %v2232_v24 = vld [vmem:[%s2783_s10 + $0x30] ss:$8 sps:$4 sm:$0xff]   ;;  %v2241_v30 = vld [vmem:[%s2783_s10] ss:$8 sps:$4 sm:$0xff]   ;;  %v2242_v31 = vld [vmem:[%s2783_s10 + $0xb4] ss:$8 sps:$4 sm:$0xff]  }
  0x90   : > { %v2826_v16 = vmul.f32 %v1938_v7, %v660_v12  ;;  %726 = vmatpush1.bf16.msra.mxu0 %v2217_v8  ;;  %v2238_v28 = vld [vmem:[%s2783_s10 + $0x10] ss:$8 sps:$4 sm:$0xff]   ;;  %v2245_v33 = vld [vmem:[%s2783_s10 + $0xa4] ss:$8 sps:$4 sm:$0xff]   ;;  %v2247_v34 = vld [vmem:[%s2783_s10 + $0xa0] ss:$8 sps:$4 sm:$0xff]  }
  0x91   : > { %1075 = vmatprep.subr.bf16.mxu0 %v2535_v6  ;;  %923 = vmatpush1.bf16.msra.mxu1 %v2223_v17  ;;  %v2244_v32 = vld [vmem:[%s2783_s10 + $0xb0] ss:$8 sps:$4 sm:$0xff]   ;;  %v2248_v35 = vld [vmem:[%s2783_s10 + $0x94] ss:$8 sps:$4 sm:$0xff]   ;;  %v2251_v37 = vld [vmem:[%s2783_s10 + $0x84] ss:$8 sps:$4 sm:$0xff]  }
  0x92   : > { %v669_v18 = vpack.c.bf16 %v2826_v16, %v2826_v16  ;;  %924 = vmatprep.subr.bf16.mxu1 %v2224_v19  ;;  %v2250_v36 = vld [vmem:[%s2783_s10 + $0x90] ss:$8 sps:$4 sm:$0xff]   ;;  %v2253_v38 = vld [vmem:[%s2783_s10 + $0x80] ss:$8 sps:$4 sm:$0xff]   ;;  %v676_v49 = vshrl.u32 %v675_v48, 7  ;;  %vm916_vm6 = vcmask 523264  }
  0x93   : > { %v2254_v39 = vld [vmem:[%s2785_s14 + $0x38] sm:$0xff]   ;;  %v2256_v41 = vld [vmem:[%s2785_s14 + $0x28] sm:$0xff]   ;;  %v2257_v42 = vld [vmem:[%s2785_s14 + $0x20] sm:$0xff]   ;;  %s2536_s0 = smov 24   ;;  %s2537_s8 = smov 104   ;;  %vm1124_vm13 = vcmask 189440  }
  0x94   : > { %1944 = vmatmul.mubr.msk.bf16.vlgmr.msra.gmra.mxu0 %vm700_vm3, %v669_v18  ;;  %v2258_v43 = vld [vmem:[%s2785_s14 + $0x18] sm:$0xff]   ;;  %v2259_v44 = vld [vmem:[%s2785_s14 + $0x10] sm:$0xff]   ;;  %v2260_v45 = vld [vmem:[%s2785_s14 + $0x8] sm:$0xff]   ;;  %v2871_v50 = vsub.s32 0, %v676_v49  ;;  %v2874_v52 = vsub.s32 1, %v676_v49  ;;  %vm2539_vm14 = vmmov 0  }
  0x95   : > { %925 = vmatpush1.bf16.msra.mxu1 %v2226_v20  ;;  %1076 = vmatpush1.bf16.msra.mxu0 %v2254_v39  ;;  %v2261_v46 = vld [vmem:[%s2785_s14] sm:$0xff]   ;;  %v2262_v47 = vld [vmem:[%s2785_s14 + $0x58] sm:$0xff]   ;;  %v2263_v3 = vld [vmem:[%s2785_s14 + $0x50] sm:$0xff]   ;;  %vm1610_vm15 = vcmask 392192   ;;  %vm1686_vm0 = vcmask 1024   ;;  %vm1684_vm1 = vcmask 386048  }
  0x96   : > { %926 = vmatprep.subr.bf16.mxu1 %v2227_v21  ;;  %1077 = vmatprep.subr.bf16.mxu0 %v2535_v6  ;;  %v673_v51 = vld [vmem:[%s2802_s15] sm:$0x3]  ;;  %v2264_v4 = vld [vmem:[%s2785_s14 + $0x48] sm:$0xff]   ;;  %v2265_v5 = vld [vmem:[%s2785_s14 + $0x40] sm:$0xff]   ;;  %p2084_p0 = scmp.ne.s32.totalorder %s2515_s20, 1 }
  0x97   : > { %v678_v53 = vrot.slane %v673_v51, %v2871_v50  ;;  %v682_v54 = vrot.slane %v673_v51, %v2874_v52  ;;  %v784_v7 = vld [vmem:[%s2807_s11] sm:$0x3]  ;;  %v2273_v39 = vld [vmem:[%s2783_s10 + $0x134] ss:$8 sps:$4 sm:$0xff]   ;;  %v2280_v51 = vld [vmem:[%s2783_s10 + $0x100] ss:$8 sps:$4 sm:$0xff]  }
  0x98   : > { %v789_v8 = vrot.slane %v784_v7, %v2871_v50  ;;  %v793_v9 = vrot.slane %v784_v7, %v2874_v52  ;;  %v2308_v7 = vld [vmem:[%s2785_s14 + $0x90] sm:$0xff]   ;;  %s3059_s19 = sld [smem:[#allocation25_spill]] (!%p2084_p0) }
  0x99   : > { %927 = vmatpush1.bf16.msra.mxu1 %v2229_v22  ;;  %1078 = vmatpush1.bf16.msra.mxu0 %v2255_v40  ;;  %v2276_v40 = vld [vmem:[%s2783_s10 + $0x124] ss:$8 sps:$4 sm:$0xff]  }
  0x9a   : > { %928 = vmatprep.subr.bf16.mxu1 %v2230_v23  ;;  %1079 = vmatprep.subr.bf16.mxu0 %v2535_v6  ;;  %v1970_v23 = vld [vmem:[%s2812_s29] ss:$0 sm:$0xff] }
  0x9d   : > { %929 = vmatpush1.bf16.msra.mxu1 %v2232_v24  ;;  %1080 = vmatpush1.bf16.msra.mxu0 %v2256_v41  ;;  %v2274_v41 = vld [vmem:[%s2783_s10 + $0x120] ss:$8 sps:$4 sm:$0xff]  }
  0x9e   : > { %930 = vmatprep.subr.bf16.mxu1 %v2233_v25  ;;  %1081 = vmatprep.subr.bf16.mxu0 %v2535_v6 }
  0xa1   : > { %931 = vmatpush1.bf16.msra.mxu1 %v2235_v26  ;;  %1082 = vmatpush1.bf16.msra.mxu0 %v2257_v42  ;;  %v2279_v42 = vld [vmem:[%s2783_s10 + $0x114] ss:$8 sps:$4 sm:$0xff]  }
  0xa2   : > { %932 = vmatprep.subr.bf16.mxu1 %v2236_v27  ;;  %1083 = vmatprep.subr.bf16.mxu0 %v2535_v6 }
  0xa5   : > { %933 = vmatpush1.bf16.msra.mxu1 %v2238_v28  ;;  %1084 = vmatpush1.bf16.msra.mxu0 %v2258_v43 }
  0xa6   : > { %934 = vmatprep.subr.bf16.mxu1 %v2239_v29  ;;  %1085 = vmatprep.subr.bf16.mxu0 %v2535_v6 }
  0xa9   : > { %935 = vmatpush1.bf16.msra.mxu1 %v2241_v30  ;;  %1086 = vmatpush1.bf16.msra.mxu0 %v2259_v44 }
  0xaa   : > { %944 = vmatprep.subr.bf16.mxu1 %v2242_v31  ;;  %1087 = vmatprep.subr.bf16.mxu0 %v2535_v6  ;;  %v1986_v31 = vld [vmem:[%s2777_s16 + $0x28] sm:$0xff] }
  0xad   : > { %945 = vmatpush2.bf16.msra.mxu1 %v2244_v32  ;;  %1088 = vmatpush1.bf16.msra.mxu0 %v2260_v45  ;;  %v1991_v32 = vcombine.high %v1986_v31, %v1986_v31  ;;  %v2277_v45 = vld [vmem:[%s2783_s10 + $0x110] ss:$8 sps:$4 sm:$0xff]  }
  0xae   : > { %946 = vmatprep.subr.bf16.mxu1 %v2245_v33  ;;  %1089 = vmatprep.subr.bf16.mxu0 %v2535_v6  ;;  %v1990_v33 = vcombine.low %v1986_v31, %v1986_v31 }
  0xb1   : > { %947 = vmatpush2.bf16.msra.mxu1 %v2247_v34  ;;  %1090 = vmatpush1.bf16.msra.mxu0 %v2261_v46  ;;  %v2270_v34 = vld [vmem:[%s2777_s16 + $0x1c] ss:$8 sps:$4 sm:$0xff]  }
  0xb2   : > { %948 = vmatprep.subr.bf16.mxu1 %v2248_v35  ;;  %1099 = vmatprep.subr.bf16.mxu0 %v2535_v6  ;;  %v1170_v35 = vsel %vm704_vm2, %v1990_v33, 0  ;;  %v2317_v33 = vld [vmem:[%s2785_s14 + $0xa8] sm:$0xff]  }
  0xb5   : > { %949 = vmatpush2.bf16.msra.mxu1 %v2250_v36  ;;  %1100 = vmatpush2.bf16.msra.mxu0 %v2262_v47  ;;  %v2268_v36 = vld [vmem:[%s2777_s16 + $0x18] ss:$8 sps:$4 sm:$0xff]   ;;  %v2282_v47 = vld [vmem:[%s2783_s10 + $0x104] ss:$8 sps:$4 sm:$0xff]  }
  0xb6   : > { %950 = vmatprep.subr.bf16.mxu1 %v2251_v37  ;;  %1101 = vmatprep.subr.bf16.mxu0 %v2535_v6 }
  0xb9   : > { %951 = vmatpush2.bf16.msra.mxu1 %v2253_v38  ;;  %1102 = vmatpush2.bf16.msra.mxu0 %v2263_v3  ;;  %v2271_v38 = vld [vmem:[%s2783_s10 + $0x130] ss:$8 sps:$4 sm:$0xff]   ;;  %v2306_v3 = vld [vmem:[%s2783_s10 + $0x144] ss:$8 sps:$4 sm:$0xff]  }
  0xba   : > { %1103 = vmatprep.subr.bf16.mxu0 %v2535_v6  ;;  %1992 = vmatprep.subr.msk.bf16.mxu1 %vm704_vm2, %v1991_v32  ;;  %v2316_v32 = vld [vmem:[%s2785_s14 + $0xb0] sm:$0xff]  }
  0xbd   : > { %1104 = vmatpush2.bf16.msra.mxu0 %v2264_v4  ;;  %v2304_v4 = vld [vmem:[%s2783_s10 + $0x140] ss:$8 sps:$4 sm:$0xff]  }
  0xbe   : > { %1105 = vmatprep.subr.bf16.mxu0 %v2535_v6 }
  0xc1   : > { %1106 = vmatpush2.bf16.msra.mxu0 %v2265_v5  ;;  %v2307_v5 = vld [vmem:[%s2785_s14 + $0x98] sm:$0xff]  }
  0xc2   : > { %1385 = vmatprep.subr.bf16.mxu0 %v2273_v39 }
 0x154   : > { %v745_v55 = vpop.f32.mrf.mxu0 }
 0x155   : > { %v746_v56 = vadd.f32 %v745_v55, %v678_v53  ;;  %v2285_v53 = vld [vmem:[%s2783_s10 + $0xf4] ss:$8 sps:$4 sm:$0xff]   ;;  %v2286_v55 = vld [vmem:[%s2783_s10 + $0xe0] ss:$8 sps:$4 sm:$0xff]  }
 0x156   : > { %v747_v57 = vpop.f32.mrf.mxu0 }
 0x157   : > { %vm752_vm4 = vcmp.gt.f32.partialorder %v746_v56, 0.0  ;;  %v754_v58 = vmul.f32 0.01, %v746_v56  ;;  %v748_v59 = vadd.f32 %v747_v57, %v682_v54  ;;  %v2283_v54 = vld [vmem:[%s2783_s10 + $0xf0] ss:$8 sps:$4 sm:$0xff]  }
 0x158   : > { %v749_v60 = vpop.f32.mrf.mxu0  ;;  %v2289_v57 = vld [vmem:[%s2783_s10 + $0xd0] ss:$8 sps:$4 sm:$0xff]  }
 0x159   : > { %v755_v61 = vmul.f32 0.01, %v748_v59  ;;  %vm753_vm5 = vcmp.gt.f32.partialorder %v748_v59, 0.0  ;;  %v756_v63 = vsel %vm752_vm4, %v746_v56, %v754_v58  ;;  %v2291_v56 = vld [vmem:[%s2783_s10 + $0xd4] ss:$8 sps:$4 sm:$0xff]  }
 0x15a   : > { %v750_v62 = vpop.f32.mrf.mxu0  ;;  %v758_v2 = vpack.c.bf16 %v756_v63, %v756_v63  ;;  %v2294_v58 = vld [vmem:[%s2783_s10 + $0xc4] ss:$8 sps:$4 sm:$0xff]   ;;  %v2297_v60 = vld [vmem:[%s2783_s10 + $0x174] ss:$8 sps:$4 sm:$0xff]   ;;  %v2298_v63 = vld [vmem:[%s2783_s10 + $0x160] ss:$8 sps:$4 sm:$0xff]  }
 0x15b   : > { %v757_v0 = vsel %vm753_vm5, %v748_v59, %v755_v61  ;;  %v2292_v59 = vld [vmem:[%s2783_s10 + $0xc0] ss:$8 sps:$4 sm:$0xff]   ;;  %v2295_v61 = vld [vmem:[%s2783_s10 + $0x170] ss:$8 sps:$4 sm:$0xff]   ;;  %v2300_v62 = vld [vmem:[%s2783_s10 + $0x164] ss:$8 sps:$4 sm:$0xff]  }
 0x15c   : > { %v759_v1 = vpack.c.bf16 %v757_v0, %v757_v0 }
 0x15e   : > { %1969 = vmatprep.mubr.msk.bf16.mxu1 %vm916_vm6, %v759_v1  ;;  %v2303_v1 = vld [vmem:[%s2783_s10 + $0x154] ss:$8 sps:$4 sm:$0xff]  }
 0x15f   : > { %953 = vmatmul.mubr.bf16.vlgmr.msra.gmra.mxu1 %v758_v2  ;;  %v2301_v2 = vld [vmem:[%s2783_s10 + $0x150] ss:$8 sps:$4 sm:$0xff]  }
 0x160   : > { %1207 = vmatprep.mubr.bf16.mxu1 %v2535_v6  ;;  %1188 = vmatpush1.bf16.msra.mxu1 %v1170_v35  ;;  %v2018_v35 = vld [vmem:[%s2807_s11 + $0x2] sm:$0x3] }
 0x161   : > { %1189 = vmatprep.subr.bf16.mxu1 %v2270_v34  ;;  %v2318_v34 = vld [vmem:[%s2785_s14 + $0xa0] sm:$0xff]  }
 0x164   : > { %1190 = vmatpush1.bf16.msra.mxu1 %v2268_v36  ;;  %v1255_v36 = vrot.slane %v2018_v35, %v2871_v50 }
 0x165   : > { %1542 = vmatprep.subr.bf16.mxu1 %v2535_v6 }
 0x21f   : > { %v954_v10 = vpop.f32.mrf.mxu1 }
 0x220   : > { %v955_v11 = vadd.f32 %v954_v10, %v789_v8  ;;  %v2309_v8 = vld [vmem:[%s2785_s14 + $0x88] sm:$0xff]   ;;  %v2311_v10 = vld [vmem:[%s2785_s14 + $0x78] sm:$0xff]  }
 0x221   : > { %v956_v12 = vpop.f32.mrf.mxu1 }
 0x222   : > { %vm961_vm7 = vcmp.gt.f32.partialorder %v955_v11, 0.0  ;;  %v963_v13 = vmul.f32 0.01, %v955_v11  ;;  %v957_v14 = vadd.f32 %v956_v12, %v793_v9  ;;  %v2310_v9 = vld [vmem:[%s2785_s14 + $0x80] sm:$0xff]   ;;  %v2313_v12 = vld [vmem:[%s2785_s14 + $0x68] sm:$0xff]  }
 0x223   : > { %v958_v15 = vpop.f32.mrf.mxu1 }
 0x224   : > { %vm962_vm8 = vcmp.gt.f32.partialorder %v957_v14, 0.0  ;;  %v964_v17 = vmul.f32 0.01, %v957_v14  ;;  %v965_v18 = vsel %vm961_vm7, %v955_v11, %v963_v13  ;;  %v2312_v11 = vld [vmem:[%s2785_s14 + $0x70] sm:$0xff]   ;;  %v2314_v13 = vld [vmem:[%s2785_s14 + $0x60] sm:$0xff]  }
 0x225   : > { %v959_v19 = vpop.f32.mrf.mxu1  ;;  %v967_v22 = vpack.c.bf16 %v965_v18, %v965_v18  ;;  %v1987_v15 = vld [vmem:[%s2802_s15 + $0x2] sm:$0x3] }
 0x226   : > { %v966_v20 = vsel %vm962_vm8, %v957_v14, %v964_v17  ;;  %v2315_v14 = vld [vmem:[%s2785_s14 + $0xb8] sm:$0xff]   ;;  %v1141_v17 = vrot.slane %v1987_v15, %v2871_v50  ;;  %v1145_v18 = vrot.slane %v1987_v15, %v2874_v52 }
 0x227   : > { %v968_v21 = vpack.c.bf16 %v966_v20, %v966_v20  ;;  %v2069_v50 = vld [vmem:[%s2812_s29 + $0x1] ss:$0 sm:$0xff] }
 0x229   : > { %1983 = vmatprep.mubr.msk.bf16.mxu0 %vm916_vm6, %v968_v21 }
 0x22a   : > { %1108 = vmatmul.mubr.bf16.vlgmr.msra.gmra.mxu0 %v967_v22 }
 0x22b   : > { %1386 = vmatpush1.bf16.msra.mxu0 %v2271_v38 }
 0x22c   : > { %1387 = vmatprep.subr.bf16.mxu0 %v2276_v40 }
 0x22f   : > { %1388 = vmatpush1.bf16.msra.mxu0 %v2274_v41 }
 0x230   : > { %1389 = vmatprep.subr.bf16.mxu0 %v2279_v42 }
 0x233   : > { %1390 = vmatpush1.bf16.msra.mxu0 %v2277_v45 }
 0x234   : > { %1391 = vmatprep.subr.bf16.mxu0 %v2282_v47 }
 0x237   : > { %1392 = vmatpush1.bf16.msra.mxu0 %v2280_v51 }
 0x238   : > { %1393 = vmatprep.subr.bf16.mxu0 %v2285_v53 }
 0x23b   : > { %1394 = vmatpush1.bf16.msra.mxu0 %v2283_v54 }
 0x2ea   : > { %v1109_v24 = vpop.f32.mrf.mxu0 }
 0x2eb   : > { %v1110_v25 = vadd.f32 %v1970_v23, %v1109_v24 }
 0x2ec   : > { %v1111_v26 = vpop.f32.mrf.mxu0 }
 0x2ed   : > { %2319 = vtanh.f32 %v1110_v25 }
 0x2ee   : > { %v1112_v27 = vpop.f32.mrf.mxu0 }
 0x2f0   : > { %v1113_v28 = vpop.f32.mrf.mxu0 }
 0x2fa   : > { %v2890_v29 = vpop.eup %2319 }
 0x2fb   : > { %v1116_v30 = vmul.f32 1.442695, %v2890_v29 }
 0x2fd   : > { %2321 = vpow2.f32 %v1116_v30 }
 0x30a   : > { %v2322_v37 = vpop.eup %2321 }
 0x30b   : > { %1119 = vrot.lane.b32.xlu0 %v2322_v37, %s2536_s0  ;;  %v1259_v37 = vrot.slane %v2018_v35, %v2874_v52 }
 0x37d   : > { %v1120_v43 = vpop.permute.xlu0 %1119 }
 0x37e   : > { %v1122_v44 = vmul.f32 %v1120_v43, %v2826_v16 }
 0x380   : > { %v1123_v46 = vadd.f32 %v1122_v44, %v1110_v25 }
 0x382   : > { %v2910_v48 = vsel %vm700_vm3, %v2826_v16, %v1123_v46  ;;  %v2288_v16 = vld [vmem:[%s2783_s10 + $0xe4] ss:$8 sps:$4 sm:$0xff]   ;;  %s3058_s10 = sld [smem:[#allocation24_spill]] (!%p2084_p0) }
 0x383   : > { %v1130_v49 = vpack.c.bf16 %v2910_v48, %v2910_v48  ;;  %1395 = vmatprep.subr.bf16.mxu0 %v2288_v16 }
 0x384   : > { %1396 = vmatpush1.bf16.msra.mxu0 %v2286_v55  ;;  %v1125_v55 = vsel %vm1124_vm13, %v2890_v29, 0.0 }
 0x385   : > { %1149 = vrot.lane.b32.xlu0 %v1130_v49, %s2537_s8  ;;  %1397 = vmatprep.subr.bf16.mxu0 %v2291_v56  ;;  %v1609_v56 = vld [vmem:[%s2814_s1 + $0x28] sm:$0xff] }
 0x388   : > { %1398 = vmatpush1.bf16.msra.mxu0 %v2289_v57  ;;  %v2538_v57 = vmov 0.0  }
 0x389   : > { %1399 = vmatprep.subr.bf16.mxu0 %v2294_v58  ;;  %v1608_v58 = vld [vmem:[%s2814_s1 + $0x20] sm:$0xff] }
 0x38c   : > { %1400 = vmatpush1.bf16.msra.mxu0 %v2292_v59  ;;  %v1607_v59 = vld [vmem:[%s2814_s1 + $0x18] sm:$0xff] }
 0x38d   : > { %1409 = vmatprep.subr.bf16.mxu0 %v2297_v60  ;;  %v1606_v60 = vld [vmem:[%s2814_s1 + $0x10] sm:$0xff] }
 0x390   : > { %1410 = vmatpush2.bf16.msra.mxu0 %v2295_v61  ;;  %v1605_v61 = vld [vmem:[%s2814_s1 + $0x8] sm:$0xff] }
 0x391   : > { %1411 = vmatprep.subr.bf16.mxu0 %v2300_v62 }
 0x394   : > { %1412 = vmatpush2.bf16.msra.mxu0 %v2298_v63  ;;  %v1604_v63 = vld [vmem:[%s2814_s1] sm:$0xff] }
 0x395   : > { %1413 = vmatprep.subr.bf16.mxu0 %v2303_v1 }
 0x398   : > { %1414 = vmatpush2.bf16.msra.mxu0 %v2301_v2 }
 0x399   : > { %1415 = vmatprep.subr.bf16.mxu0 %v2306_v3 }
 0x39c   : > { %1416 = vmatpush2.bf16.msra.mxu0 %v2304_v4 }
 0x39d   : > { %2096 = vmatprep.subr.mxu0 %v2538_v57 }
 0x3f7   : > { %v1150_v0 = vpop.permute.xlu0 %1149 }
 0x3f8   : > { %1993 = vmatmul.mubr.msk.bf16.vlgmr.msra.gmra.mxu1 %vm700_vm3, %v1150_v0 }
 0x3f9   : > { %1543 = vmatpush1.bf16.msra.mxu1 %v2307_v5 }
 0x3fa   : > { %1544 = vmatprep.subr.bf16.mxu1 %v2535_v6 }
 0x3fd   : > { %1545 = vmatpush1.bf16.msra.mxu1 %v2308_v7 }
 0x3fe   : > { %1546 = vmatprep.subr.bf16.mxu1 %v2535_v6 }
 0x401   : > { %1547 = vmatpush1.bf16.msra.mxu1 %v2309_v8 }
 0x402   : > { %1548 = vmatprep.subr.bf16.mxu1 %v2535_v6 }
 0x405   : > { %1549 = vmatpush1.bf16.msra.mxu1 %v2310_v9  ;;  %v668_v9 = vld [vmem:[#allocation3] sm:$0x3] }
 0x406   : > { %1550 = vmatprep.subr.bf16.mxu1 %v2535_v6 }
 0x409   : > { %1551 = vmatpush1.bf16.msra.mxu1 %v2311_v10 }
 0x40a   : > { %1552 = vmatprep.subr.bf16.mxu1 %v2535_v6 }
 0x40d   : > { %1553 = vmatpush1.bf16.msra.mxu1 %v2312_v11 }
 0x40e   : > { %1554 = vmatprep.subr.bf16.mxu1 %v2535_v6 }
 0x411   : > { %1555 = vmatpush1.bf16.msra.mxu1 %v2313_v12 }
 0x412   : > { %1556 = vmatprep.subr.bf16.mxu1 %v2535_v6 }
 0x415   : > { %1557 = vmatpush1.bf16.msra.mxu1 %v2314_v13 }
 0x416   : > { %1566 = vmatprep.subr.bf16.mxu1 %v2535_v6 }
 0x419   : > { %1567 = vmatpush2.bf16.msra.mxu1 %v2315_v14 }
 0x41a   : > { %1568 = vmatprep.subr.bf16.mxu1 %v2535_v6 }
 0x41d   : > { %1569 = vmatpush2.bf16.msra.mxu1 %v2316_v32 }
 0x41e   : > { %1570 = vmatprep.subr.bf16.mxu1 %v2535_v6 }
 0x421   : > { %1571 = vmatpush2.bf16.msra.mxu1 %v2317_v33 }
 0x422   : > { %1572 = vmatprep.subr.bf16.mxu1 %v2535_v6 }
 0x425   : > { %1573 = vmatpush2.bf16.msra.mxu1 %v2318_v34 }
 0x4b8   : > { %v1209_v19 = vpop.f32.mrf.mxu1 }
 0x4b9   : > { %v1210_v20 = vadd.f32 %v1209_v19, %v1141_v17 }
 0x4ba   : > { %v1211_v21 = vpop.f32.mrf.mxu1 }
 0x4bb   : > { %vm1216_vm9 = vcmp.gt.f32.partialorder %v1210_v20, 0.0  ;;  %v1218_v22 = vmul.f32 0.01, %v1210_v20  ;;  %v1212_v23 = vadd.f32 %v1211_v21, %v1145_v18 }
 0x4bc   : > { %v1213_v24 = vpop.f32.mrf.mxu1 }
 0x4bd   : > { %vm1217_vm10 = vcmp.gt.f32.partialorder %v1212_v23, 0.0  ;;  %v1219_v25 = vmul.f32 0.01, %v1212_v23  ;;  %v1220_v26 = vsel %vm1216_vm9, %v1210_v20, %v1218_v22 }
 0x4be   : > { %v1214_v27 = vpop.f32.mrf.mxu1  ;;  %v1222_v31 = vpack.c.bf16 %v1220_v26, %v1220_v26 }
 0x4bf   : > { %v1221_v28 = vsel %vm1217_vm10, %v1212_v23, %v1219_v25 }
 0x4c0   : > { %v1223_v30 = vpack.c.bf16 %v1221_v28, %v1221_v28 }
 0x4c2   : > { %2043 = vmatprep.mubr.msk.bf16.mxu0 %vm916_vm6, %v1223_v30 }
 0x4c3   : > { %1418 = vmatmul.mubr.bf16.vlgmr.msra.gmra.mxu0 %v1222_v31 }
 0x4c4   : > { %2097 = vmatpush3.msra.mxu0 %v1609_v56  ;;  %2108 = vmatprep.mubr.msk.f32.mxu0 %vm2539_vm14, %v2538_v57 }
 0x4c5   : > { %2098 = vmatprep.subr.mxu0 %v2538_v57 }
 0x4c6   : > { %2099 = vmatpush3.msra.mxu0 %v1608_v58 }
 0x4c7   : > { %2100 = vmatprep.subr.mxu0 %v2538_v57 }
 0x4c8   : > { %2101 = vmatpush3.msra.mxu0 %v1607_v59 }
 0x4c9   : > { %2102 = vmatprep.subr.mxu0 %v2538_v57 }
 0x4ca   : > { %2103 = vmatpush3.msra.mxu0 %v1606_v60 }
 0x4cb   : > { %2104 = vmatprep.subr.mxu0 %v2538_v57 }
 0x4cc   : > { %2105 = vmatpush3.msra.mxu0 %v1605_v61 }
 0x4cd   : > { %2106 = vmatprep.subr.mxu0 %v2538_v57 }
 0x4ce   : > { %2107 = vmatpush3.msra.mxu0 %v1604_v63 }
 0x583   : > { %v1419_v38 = vpop.f32.mrf.mxu0 }
 0x584   : > { %v1420_v39 = vadd.f32 %v1419_v38, %v1255_v36 }
 0x585   : > { %v1421_v40 = vpop.f32.mrf.mxu0 }
 0x586   : > { %vm1426_vm11 = vcmp.gt.f32.partialorder %v1420_v39, 0.0  ;;  %v1428_v41 = vmul.f32 0.01, %v1420_v39  ;;  %v1422_v42 = vadd.f32 %v1421_v40, %v1259_v37 }
 0x587   : > { %v1423_v43 = vpop.f32.mrf.mxu0 }
 0x588   : > { %vm1427_vm12 = vcmp.gt.f32.partialorder %v1422_v42, 0.0  ;;  %v1429_v44 = vmul.f32 0.01, %v1422_v42  ;;  %v1430_v45 = vsel %vm1426_vm11, %v1420_v39, %v1428_v41 }
 0x589   : > { %v1424_v46 = vpop.f32.mrf.mxu0  ;;  %v1432_v49 = vpack.c.bf16 %v1430_v45, %v1430_v45 }
 0x58a   : > { %v1431_v6 = vsel %vm1427_vm12, %v1422_v42, %v1429_v44 }
 0x58b   : > { %v1433_v47 = vpack.c.bf16 %v1431_v6, %v1431_v6 }
 0x58d   : > { %2082 = vmatprep.mubr.msk.bf16.mxu1 %vm916_vm6, %v1433_v47 }
 0x58e   : > { %1575 = vmatmul.mubr.bf16.vlgmr.msra.gmra.mxu1 %v1432_v49 }
 0x64e   : > { %v1576_v52 = vpop.f32.mrf.mxu1 }
 0x64f   : > { %v1577_v51 = vadd.f32 %v2069_v50, %v1576_v52 }
 0x650   : > { %v1578_v53 = vpop.f32.mrf.mxu1 }
 0x651   : > { %1587 = vrot.lane.b32.xlu1 %v1577_v51, %s2537_s8  ;;  %2323 = vtanh.f32 %v1577_v51 }
 0x652   : > { %v1579_v54 = vpop.f32.mrf.mxu1 }
 0x654   : > { %v1580_v16 = vpop.f32.mrf.mxu1 }
 0x655   : > { %1596 = vrot.lane.b32.xlu1 %v2910_v48, %s2537_s8 }
 0x65e   : > { %v2324_v29 = vpop.eup %2323 }
 0x65f   : > { %v1583_v62 = vmul.f32 1.442695, %v2324_v29  ;;  %v1591_v4 = vsel %vm1124_vm13, %v2324_v29, 0.0 }
 0x661   : > { %2325 = vpow2.f32 %v1583_v62 }
 0x66e   : > { %v2326_v0 = vpop.eup %2325 }
 0x66f   : > { %v1585_v1 = vmul.f32 %v2326_v0, %v2910_v48 }
 0x679   : > { %1126 = vadd.xlane.f32.xlu1 %v1125_v55 }
 0x6c3   : > { %v1588_v2 = vpop.permute.xlu1 %1587 }
 0x6c4   : > { %v1590_v3 = vadd.f32 %v1588_v2, %v1585_v1 }
 0x6c6   : > { %1600 = vrot.lane.b32.xlu0 %v1590_v3, %s2536_s0 }
 0x6c7   : > { %v1597_v5 = vpop.permute.xlu1 %1596 }
 0x6e5   : > { %1592 = vadd.xlane.f32.xlu0 %v1591_v4 }
 0x702   : > { %v1127_v10 = vpop.xlane.xlu1 %1126 }
 0x703   : > { %v1128_v11 = vadd.f32 %v1127_v10, %v668_v9 }
 0x738   : > { %v1601_v7 = vpop.permute.xlu0 %1600 }
 0x739   : > { %v1603_v8 = vsel %vm700_vm3, %v1597_v5, %v1601_v7 }
 0x73a   : > { %2109 = vmatmul.mubr.msk.f32.vlgmr.msra.gmra.mxu0 %vm1610_vm15, %v1603_v8 }
 0x76e   : > { %v1593_v12 = vpop.xlane.xlu0 %1592 }
 0x76f   : > { %v1594_v13 = vadd.f32 %v1593_v12, %v1128_v11 }
 0x771   : > { %1687 = vst.msk [vmem:[#allocation3] sm:$0x3] %vm1686_vm0, %v1594_v13 }
 0x7f8   : > { %1691 = sbr.rel (%p2084_p0) target bundleno = 2047 (0x7ff), region = 88 }
 0x7fa   : > { %v1680_v48 = vpop.f32.mrf.mxu0 }
 0x7fb   : > { %1685 = vst.msk [vmem:[#allocation2] sm:$0x3] %vm1684_vm1, %v1680_v48 }
 0x7fc   : > { %v2110_v14 = vpop.f32.mrf.mxu0 }
 0x7fd   : > { %1692 = vst.msk [vmem:[%s3058_s10] sm:$0x3] %vm1684_vm1, %v1680_v48 }
 0x7fe   : > { %1693 = vst.msk [vmem:[%s3059_s19] sm:$0x3] %vm1686_vm0, %v1594_v13 }
 0x7ff PF: > { %s29_s22 = sadd.s32 1, %s2523_s22   ;;  %s3060_s13 = sld [smem:[#allocation15_spill]] }
 0x800   : > { %p26_p1 = scmp.ge.s32.totalorder %s29_s22, 4   ;;  %s3061_s19 = sld [smem:[#allocation17_spill]] }
 0x801   : > { %s3062_s28 = sld [smem:[#allocation16_spill]]  ;;  %s3063_s17 = smov %s2507_s18 }
 0x802   : > { %s3065_s20 = smov %s2519_s21 }
 0x803   :  { %28 = sbr.rel (!%p26_p1) target bundleno = 16 (0x10), region = 182 }
 0x805   : > { %s3064_s18 = smov %s3060_s13 }
 0x807   : > { %s3066_s21 = smov %s3062_s28 }
 0x808   :  { %1727 = vsyncpa [#allocation5], 1 }
 0x809   :  { %1729 = vsyncpa [#allocation5 + $0x1], 1 }
 0x80a   :  { %1730 = vsyncpa [#allocation7], 1 }
 0x80b   :  { %1732 = vsyncpa [#allocation7 + $0x1], 1 }
 0x80c   :  { %1733 = vsyncpa [#allocation10], 1 }
 0x80d   :  { %1735 = vsyncpa [#allocation10 + $0x1], 1 }

</bundles_post_ra>
